<compile_context>
chip_gen: v7x
topology: tpu7x:2x2x1
jax: 0.10.0
libtpu: 0.0.40
codegen_flags: <defaults>
</compile_context>

<pallas_src>
import functools

import jax
import jax.numpy as jnp
from jax import lax
from jax.experimental import pallas as pl
from jax.experimental.pallas import tpu as pltpu

_NEG_INF = -1e30


def _round_up(x, m):
    return ((x + m - 1) // m) * m


# ---------------------------------------------------------------------------
# Kernel 1: GATConv(F_in -> hidden, heads=H, concat=True) + bias + ELU
# Grid axis 0 tiles destination-node rows; the adjacency-bias rows stream
# through VMEM (BlockSpec double-buffering) while x and the parameter slab
# stay resident (constant index_map -> fetched once).
# ---------------------------------------------------------------------------
def _gat_layer1_kernel(adjb_ref, xt_ref, xf_ref, p_ref, h1_ref, *,
                       heads, hidden_dim, f_in, a_off, b_off, negative_slope):
    hf = heads * hidden_dim

    w1 = p_ref[0:f_in, :].astype(jnp.bfloat16)                 # [F_in, HF]
    a1 = p_ref[a_off:a_off + hf, :]                            # [HF, HF] cols 0..2H-1 used
    b1 = p_ref[b_off:b_off + 8, :][0:1, :]                     # [1, HF]

    adj_bias = adjb_ref[...].astype(jnp.float32)               # [T, N] additive mask

    # feature projection: all source nodes + this tile's dst rows (bf16 MXU)
    xp_all = jnp.dot(xf_ref[...].astype(jnp.bfloat16), w1,
                     preferred_element_type=jnp.float32)        # [N, HF]
    xp_dst = jnp.dot(xt_ref[...].astype(jnp.bfloat16), w1,
                     preferred_element_type=jnp.float32)        # [T, HF]

    # attention scores; a1 column h = dst proj of head h, column H+h = src proj.
    # s_src comes out already [*, N]-shaped -> no explicit transpose.
    s_dst = jnp.dot(xp_dst, a1, preferred_element_type=jnp.float32)      # [T, HF]
    s_src = lax.dot_general(a1, xp_all,
                            dimension_numbers=(((0,), (1,)), ((), ())),
                            preferred_element_type=jnp.float32)          # [HF, N]

    xp_all_b = xp_all.astype(jnp.bfloat16)

    outs = []
    # Static unroll over heads: the large [T, N] temporaries are dead after
    # each head's aggregation matmul; only tiny [T, Fh] head outputs stay
    # live.  TILE is kept modest so concurrent temporaries never spill.
    for h in range(heads):
        e = s_dst[:, h:h + 1] + s_src[heads + h:heads + h + 1, :]         # [T, N]
        e = jnp.maximum(e, negative_slope * e) + adj_bias                  # LeakyReLU + mask
        m = jnp.max(e, axis=-1, keepdims=True)
        p = jnp.exp(e - m)
        attn = p * pl.reciprocal(jnp.sum(p, axis=-1, keepdims=True),
                                 approx=True)
        xh = xp_all_b[:, h * hidden_dim:(h + 1) * hidden_dim]              # [N, Fh]
        outs.append(jnp.dot(attn.astype(jnp.bfloat16), xh,
                            preferred_element_type=jnp.float32))           # [T, Fh]

    h1 = jnp.concatenate(outs, axis=-1) + b1                               # [T, HF]
    # Dropout (p=0.6) is identity in eval mode.
    # TODO(synk): training-mode stochastic dropout is not implemented.
    h1_ref[...] = jnp.where(h1 > 0, h1, jnp.exp(h1) - 1.0)                 # ELU


# ---------------------------------------------------------------------------
# Kernel 2: GATConv(H*Fh -> F_out, heads=1) + bias + final Softmax(dim=-1)
# Output is lane-padded to 128 columns (padded cols masked with -1e30 before
# the softmax and sliced off in the wrapper).
# ---------------------------------------------------------------------------
def _gat_layer2_kernel(adjb_ref, h1t_ref, h1f_ref, p_ref, o_ref, *,
                       hf, out_pad, a_off, b_off, negative_slope):
    w2 = p_ref[0:hf, :].astype(jnp.bfloat16)                    # [HF, OUT_PAD]
    a2 = p_ref[a_off:a_off + out_pad, :]                        # [OUT_PAD, OUT_PAD] cols 0/1 used
    bb = p_ref[b_off:b_off + 8, :]
    b2 = bb[0:1, :]                                             # [1, OUT_PAD]
    col_bias = bb[1:2, :]                                       # 0 real cols, -1e30 pad cols

    adj_bias = adjb_ref[...].astype(jnp.float32)                # [T, N]

    xp_all = jnp.dot(h1f_ref[...].astype(jnp.bfloat16), w2,
                     preferred_element_type=jnp.float32)         # [N, OUT_PAD]
    xp_dst = jnp.dot(h1t_ref[...].astype(jnp.bfloat16), w2,
                     preferred_element_type=jnp.float32)         # [T, OUT_PAD]

    s_dst = jnp.dot(xp_dst, a2, preferred_element_type=jnp.float32)       # [T, OUT_PAD]
    s_src = lax.dot_general(a2, xp_all,
                            dimension_numbers=(((0,), (1,)), ((), ())),
                            preferred_element_type=jnp.float32)           # [OUT_PAD, N]

    e = s_dst[:, 0:1] + s_src[1:2, :]                                      # [T, N]
    e = jnp.maximum(e, negative_slope * e) + adj_bias
    m = jnp.max(e, axis=-1, keepdims=True)
    p = jnp.exp(e - m)
    attn = p * pl.reciprocal(jnp.sum(p, axis=-1, keepdims=True), approx=True)

    y = jnp.dot(attn.astype(jnp.bfloat16), xp_all.astype(jnp.bfloat16),
                preferred_element_type=jnp.float32) + b2                   # [T, OUT_PAD]

    # final Softmax(dim=-1) over the real output columns (exact divide so
    # rows sum to 1 to f32 precision)
    y = y + col_bias
    m2 = jnp.max(y, axis=-1, keepdims=True)
    p2 = jnp.exp(y - m2)
    o_ref[...] = p2 / jnp.sum(p2, axis=-1, keepdims=True)


# ---------------------------------------------------------------------------
# Wrapper
# ---------------------------------------------------------------------------
def _block_diag_heads(att):
    """[H, F] per-head attention vectors -> [H*F, H] block-diagonal projection."""
    H, F = att.shape
    eye = jnp.eye(H, dtype=att.dtype)
    return (att[:, :, None] * eye[:, None, :]).reshape(H * F, H)


def graph_attention_network(x, edge_index, params, *, num_nodes, heads,
                            hidden_dim, output_dim, negative_slope=0.2,
                            tile_n=256):
    N = num_nodes
    F_in = x.shape[1]
    HF = heads * hidden_dim
    assert 2 * heads <= HF, "attention projection must fit in the HF-wide slab"
    OUT_PAD = _round_up(max(output_dim, 128), 128)

    # row tile: multiple of 8 (sublane) and <= padded node count
    tile = min(_round_up(tile_n, 8), _round_up(N, 8))
    n_pad = _round_up(N, tile)
    grid = (n_pad // tile,)

    # Additive adjacency mask (bf16 halves the dominant O(N^2) HBM stream):
    # 0 where edge j->i (or self loop) exists, -1e30 otherwise.
    adj_bias = jnp.full((n_pad, n_pad), _NEG_INF, jnp.float32)
    adj_bias = adj_bias.at[edge_index[1], edge_index[0]].set(0.0)
    idx = jnp.arange(N)
    adj_bias = adj_bias.at[idx, idx].set(0.0)          # add_self_loops=True
    adj_bias = adj_bias.astype(jnp.bfloat16)

    x_pad = jnp.zeros((n_pad, F_in), jnp.float32).at[:N].set(x)

    # ---- parameter slab, layer 1 (single lane-dense resident input) -------
    a1_off = _round_up(F_in, 8)
    b1_off = a1_off + HF
    slab1 = jnp.zeros((b1_off + 8, HF), jnp.float32)
    slab1 = slab1.at[:F_in, :].set(params["W1"])
    a1 = jnp.concatenate([_block_diag_heads(params["att_dst1"]),
                          _block_diag_heads(params["att_src1"])], axis=1)
    slab1 = slab1.at[a1_off:a1_off + HF, :2 * heads].set(a1)
    slab1 = slab1.at[b1_off, :].set(params["bias1"])

    # ---- parameter slab, layer 2 -------------------------------------------
    a2_off = _round_up(HF, 8)
    b2_off = a2_off + OUT_PAD
    slab2 = jnp.zeros((b2_off + 8, OUT_PAD), jnp.float32)
    slab2 = slab2.at[:HF, :output_dim].set(params["W2"])
    slab2 = slab2.at[a2_off:a2_off + output_dim, 0].set(
        params["att_dst2"].reshape(-1))
    slab2 = slab2.at[a2_off:a2_off + output_dim, 1].set(
        params["att_src2"].reshape(-1))
    slab2 = slab2.at[b2_off, :output_dim].set(params["bias2"])
    slab2 = slab2.at[b2_off + 1, :].set(_NEG_INF)       # mask padded output cols
    slab2 = slab2.at[b2_off + 1, :output_dim].set(0.0)

    cparams = pltpu.CompilerParams(
        dimension_semantics=("parallel",),               # megacore on v7x
        vmem_limit_bytes=64 * 1024 * 1024)                # explicit VMEM budget

    # ---- layer 1: row-tiled GATConv + ELU ----------------------------------
    k1 = functools.partial(_gat_layer1_kernel, heads=heads,
                           hidden_dim=hidden_dim, f_in=F_in,
                           a_off=a1_off, b_off=b1_off,
                           negative_slope=negative_slope)
    h1 = pl.pallas_call(
        k1,
        out_shape=jax.ShapeDtypeStruct((n_pad, HF), jnp.float32),
        grid=grid,
        in_specs=[
            pl.BlockSpec((tile, n_pad), lambda i: (i, 0)),    # adj bias (streamed)
            pl.BlockSpec((tile, F_in), lambda i: (i, 0)),     # x, dst tile
            pl.BlockSpec((n_pad, F_in), lambda i: (0, 0)),    # x, all sources (resident)
            pl.BlockSpec(slab1.shape, lambda i: (0, 0)),      # packed params (resident)
        ],
        out_specs=pl.BlockSpec((tile, HF), lambda i: (i, 0)),
        compiler_params=cparams,
    )(adj_bias, x_pad, x_pad, slab1)

    # ---- layer 2: row-tiled GATConv + final softmax -------------------------
    k2 = functools.partial(_gat_layer2_kernel, hf=HF, out_pad=OUT_PAD,
                           a_off=a2_off, b_off=b2_off,
                           negative_slope=negative_slope)
    out_pad = pl.pallas_call(
        k2,
        out_shape=jax.ShapeDtypeStruct((n_pad, OUT_PAD), jnp.float32),
        grid=grid,
        in_specs=[
            pl.BlockSpec((tile, n_pad), lambda i: (i, 0)),    # adj bias (streamed)
            pl.BlockSpec((tile, HF), lambda i: (i, 0)),       # h1, dst tile
            pl.BlockSpec((n_pad, HF), lambda i: (0, 0)),      # h1, all sources (resident)
            pl.BlockSpec(slab2.shape, lambda i: (0, 0)),      # packed params (resident)
        ],
        out_specs=pl.BlockSpec((tile, OUT_PAD), lambda i: (i, 0)),
        compiler_params=cparams,
    )(adj_bias, h1, h1, slab2)

    return out_pad[:N, :output_dim]


# ---------------------------------------------------------------------------
# Main
# ---------------------------------------------------------------------------
if __name__ == "__main__":
    N = 64            # number of graph nodes
    INPUT_DIM = 8
    HIDDEN_DIM = 8
    OUTPUT_DIM = 4
    HEADS = 8

    key = jax.random.PRNGKey(0)
    keys = jax.random.split(key, 8)

    # node features
    x = jax.random.normal(keys[0], (N, INPUT_DIM), jnp.float32)

    # deterministic ring graph (bidirectional)
    src = jnp.arange(N)
    dst = (src + 1) % N
    edge_index = jnp.stack([jnp.concatenate([src, dst]),
                            jnp.concatenate([dst, src])]).astype(jnp.int32)

    # parameters (glorot-ish random init, deterministic)
    def glorot(k, shape):
        fan = sum(shape)
        return jax.random.normal(k, shape, jnp.float32) * jnp.sqrt(2.0 / fan)

    params = {
        "W1": glorot(keys[1], (INPUT_DIM, HEADS * HIDDEN_DIM)),
        "att_src1": glorot(keys[2], (HEADS, HIDDEN_DIM)),
        "att_dst1": glorot(keys[3], (HEADS, HIDDEN_DIM)),
        "bias1": jnp.zeros((HEADS * HIDDEN_DIM,), jnp.float32),
        "W2": glorot(keys[4], (HEADS * HIDDEN_DIM, OUTPUT_DIM)),
        "att_src2": glorot(keys[5], (1, OUTPUT_DIM)),
        "att_dst2": glorot(keys[6], (1, OUTPUT_DIM)),
        "bias2": jnp.zeros((OUTPUT_DIM,), jnp.float32),
    }

    fwd = jax.jit(functools.partial(
        graph_attention_network, num_nodes=N, heads=HEADS,
        hidden_dim=HIDDEN_DIM, output_dim=OUTPUT_DIM, tile_n=32))

    out = jax.block_until_ready(fwd(x, edge_index, params))

    assert out.shape == (N, OUTPUT_DIM)
    assert bool(jnp.all(jnp.isfinite(out)))
    # final layer is softmax over dim=-1: rows sum to 1
    assert bool(jnp.allclose(jnp.sum(out, axis=-1), 1.0, atol=1e-4))

    print("KERNEL_OK")
</pallas_src>

<mosaic_0001>
module attributes {stable_mosaic.version = 11 : i64} {
  func.func @_gat_layer1_kernel(%arg0: i32, %arg1: memref<32x64xbf16, #tpu.memory_space<vmem>>, %arg2: memref<32x8xf32, #tpu.memory_space<vmem>>, %arg3: memref<64x8xf32, #tpu.memory_space<vmem>>, %arg4: memref<80x64xf32, #tpu.memory_space<vmem>>, %arg5: memref<32x64xf32, #tpu.memory_space<vmem>>) attributes {dimension_semantics = [#tpu.dimension_semantics<parallel>], iteration_bounds = array<i64: 2>, scalar_prefetch = 0 : i64, scratch_operands = 0 : i64, tpu.core_type = #tpu.core_type<tc>, window_params = [{transform_indices = @transform_0, window_bounds = array<i64: 32, 64>}, {transform_indices = @transform_1, window_bounds = array<i64: 32, 8>}, {pipeline_mode = #tpu.pipeline_mode<synchronous>, transform_indices = @transform_2, window_bounds = array<i64: 64, 8>}, {pipeline_mode = #tpu.pipeline_mode<synchronous>, transform_indices = @transform_3, window_bounds = array<i64: 80, 64>}, {transform_indices = @transform_4, window_bounds = array<i64: 32, 64>}]} {
    %c0 = arith.constant 0 : index
    %c0_0 = arith.constant 0 : index
    %0 = vector.load %arg4[%c0, %c0_0] : memref<80x64xf32, #tpu.memory_space<vmem>>, vector<8x64xf32>
    %1 = arith.truncf %0 : vector<8x64xf32> to vector<8x64xbf16>
    %c8 = arith.constant 8 : index
    %c0_1 = arith.constant 0 : index
    %2 = vector.load %arg4[%c8, %c0_1] : memref<80x64xf32, #tpu.memory_space<vmem>>, vector<64x64xf32>
    %c72 = arith.constant 72 : index
    %c0_2 = arith.constant 0 : index
    %3 = vector.load %arg4[%c72, %c0_2] : memref<80x64xf32, #tpu.memory_space<vmem>>, vector<8x64xf32>
    %4 = vector.extract_strided_slice %3 {offsets = [0, 0], sizes = [1, 64], strides = [1, 1]} : vector<8x64xf32> to vector<1x64xf32>
    %c0_3 = arith.constant 0 : index
    %c0_4 = arith.constant 0 : index
    %5 = vector.load %arg1[%c0_3, %c0_4] : memref<32x64xbf16, #tpu.memory_space<vmem>>, vector<32x64xbf16>
    %6 = arith.extf %5 : vector<32x64xbf16> to vector<32x64xf32>
    %c0_5 = arith.constant 0 : index
    %c0_6 = arith.constant 0 : index
    %7 = vector.load %arg3[%c0_5, %c0_6] : memref<64x8xf32, #tpu.memory_space<vmem>>, vector<64x8xf32>
    %8 = arith.truncf %7 : vector<64x8xf32> to vector<64x8xbf16>
    %cst = arith.constant dense<0.000000e+00> : vector<64x64xf32>
    %9 = tpu.matmul %8, %1, %cst {dimension_numbers = #tpu.dot_dimension_numbers<[1], [0], [0], [1], [0, 0, 1, 1], [], []>} : vector<64x8xbf16>, vector<8x64xbf16>, vector<64x64xf32> -> vector<64x64xf32>
    %c0_7 = arith.constant 0 : index
    %c0_8 = arith.constant 0 : index
    %10 = vector.load %arg2[%c0_7, %c0_8] : memref<32x8xf32, #tpu.memory_space<vmem>>, vector<32x8xf32>
    %11 = arith.truncf %10 : vector<32x8xf32> to vector<32x8xbf16>
    %cst_9 = arith.constant dense<0.000000e+00> : vector<32x64xf32>
    %12 = tpu.matmul %11, %1, %cst_9 {dimension_numbers = #tpu.dot_dimension_numbers<[1], [0], [0], [1], [0, 0, 1, 1], [], []>} : vector<32x8xbf16>, vector<8x64xbf16>, vector<32x64xf32> -> vector<32x64xf32>
    %cst_10 = arith.constant dense<0.000000e+00> : vector<32x64xf32>
    %13 = tpu.matmul %12, %2, %cst_10 {dimension_numbers = #tpu.dot_dimension_numbers<[1], [0], [0], [1], [0, 0, 1, 1], [], []>} : vector<32x64xf32>, vector<64x64xf32>, vector<32x64xf32> -> vector<32x64xf32>
    %cst_11 = arith.constant dense<0.000000e+00> : vector<64x64xf32>
    %14 = tpu.matmul %2, %9, %cst_11 {dimension_numbers = #tpu.dot_dimension_numbers<[0], [1], [1], [0], [0, 1, 1, 0], [], []>} : vector<64x64xf32>, vector<64x64xf32>, vector<64x64xf32> -> vector<64x64xf32>
    %15 = arith.truncf %9 : vector<64x64xf32> to vector<64x64xbf16>
    %16 = vector.extract_strided_slice %13 {offsets = [0, 0], sizes = [32, 1], strides = [1, 1]} : vector<32x64xf32> to vector<32x1xf32>
    %17 = vector.extract_strided_slice %14 {offsets = [8, 0], sizes = [1, 64], strides = [1, 1]} : vector<64x64xf32> to vector<1x64xf32>
    %18 = vector.broadcast %16 : vector<32x1xf32> to vector<32x64xf32>
    %19 = vector.broadcast %17 : vector<1x64xf32> to vector<32x64xf32>
    %20 = arith.addf %18, %19 : vector<32x64xf32>
    %cst_12 = arith.constant 2.000000e-01 : f32
    %21 = vector.broadcast %cst_12 : f32 to vector<32x64xf32>
    %22 = arith.mulf %21, %20 : vector<32x64xf32>
    %23 = arith.maximumf %20, %22 : vector<32x64xf32>
    %24 = arith.addf %23, %6 : vector<32x64xf32>
    %cst_13 = arith.constant dense<0xFF800000> : vector<32xf32>
    %25 = vector.multi_reduction <maximumf>, %24, %cst_13 [1] : vector<32x64xf32> to vector<32xf32>
    %26 = vector.shape_cast %25 : vector<32xf32> to vector<32x1xf32>
    %27 = vector.broadcast %26 : vector<32x1xf32> to vector<32x64xf32>
    %28 = arith.subf %24, %27 : vector<32x64xf32>
    %29 = math.exp %28 : vector<32x64xf32>
    %cst_14 = arith.constant dense<0.000000e+00> : vector<32xf32>
    %30 = vector.multi_reduction <add>, %29, %cst_14 [1] : vector<32x64xf32> to vector<32xf32>
    %31 = vector.shape_cast %30 : vector<32xf32> to vector<32x1xf32>
    %32 = tpu.reciprocal %31 {approx = true} : vector<32x1xf32> -> vector<32x1xf32>
    %33 = vector.broadcast %32 : vector<32x1xf32> to vector<32x64xf32>
    %34 = arith.mulf %29, %33 : vector<32x64xf32>
    %35 = vector.extract_strided_slice %15 {offsets = [0, 0], sizes = [64, 8], strides = [1, 1]} : vector<64x64xbf16> to vector<64x8xbf16>
    %36 = arith.truncf %34 : vector<32x64xf32> to vector<32x64xbf16>
    %cst_15 = arith.constant dense<0.000000e+00> : vector<32x8xf32>
    %37 = tpu.matmul %36, %35, %cst_15 {dimension_numbers = #tpu.dot_dimension_numbers<[1], [0], [0], [1], [0, 0, 1, 1], [], []>} : vector<32x64xbf16>, vector<64x8xbf16>, vector<32x8xf32> -> vector<32x8xf32>
    %38 = vector.extract_strided_slice %13 {offsets = [0, 1], sizes = [32, 1], strides = [1, 1]} : vector<32x64xf32> to vector<32x1xf32>
    %39 = vector.extract_strided_slice %14 {offsets = [9, 0], sizes = [1, 64], strides = [1, 1]} : vector<64x64xf32> to vector<1x64xf32>
    %40 = vector.broadcast %38 : vector<32x1xf32> to vector<32x64xf32>
    %41 = vector.broadcast %39 : vector<1x64xf32> to vector<32x64xf32>
    %42 = arith.addf %40, %41 : vector<32x64xf32>
    %cst_16 = arith.constant 2.000000e-01 : f32
    %43 = vector.broadcast %cst_16 : f32 to vector<32x64xf32>
    %44 = arith.mulf %43, %42 : vector<32x64xf32>
    %45 = arith.maximumf %42, %44 : vector<32x64xf32>
    %46 = arith.addf %45, %6 : vector<32x64xf32>
    %cst_17 = arith.constant dense<0xFF800000> : vector<32xf32>
    %47 = vector.multi_reduction <maximumf>, %46, %cst_17 [1] : vector<32x64xf32> to vector<32xf32>
    %48 = vector.shape_cast %47 : vector<32xf32> to vector<32x1xf32>
    %49 = vector.broadcast %48 : vector<32x1xf32> to vector<32x64xf32>
    %50 = arith.subf %46, %49 : vector<32x64xf32>
    %51 = math.exp %50 : vector<32x64xf32>
    %cst_18 = arith.constant dense<0.000000e+00> : vector<32xf32>
    %52 = vector.multi_reduction <add>, %51, %cst_18 [1] : vector<32x64xf32> to vector<32xf32>
    %53 = vector.shape_cast %52 : vector<32xf32> to vector<32x1xf32>
    %54 = tpu.reciprocal %53 {approx = true} : vector<32x1xf32> -> vector<32x1xf32>
    %55 = vector.broadcast %54 : vector<32x1xf32> to vector<32x64xf32>
    %56 = arith.mulf %51, %55 : vector<32x64xf32>
    %57 = vector.extract_strided_slice %15 {offsets = [0, 8], sizes = [64, 8], strides = [1, 1]} : vector<64x64xbf16> to vector<64x8xbf16>
    %58 = arith.truncf %56 : vector<32x64xf32> to vector<32x64xbf16>
    %cst_19 = arith.constant dense<0.000000e+00> : vector<32x8xf32>
    %59 = tpu.matmul %58, %57, %cst_19 {dimension_numbers = #tpu.dot_dimension_numbers<[1], [0], [0], [1], [0, 0, 1, 1], [], []>} : vector<32x64xbf16>, vector<64x8xbf16>, vector<32x8xf32> -> vector<32x8xf32>
    %60 = vector.extract_strided_slice %13 {offsets = [0, 2], sizes = [32, 1], strides = [1, 1]} : vector<32x64xf32> to vector<32x1xf32>
    %61 = vector.extract_strided_slice %14 {offsets = [10, 0], sizes = [1, 64], strides = [1, 1]} : vector<64x64xf32> to vector<1x64xf32>
    %62 = vector.broadcast %60 : vector<32x1xf32> to vector<32x64xf32>
    %63 = vector.broadcast %61 : vector<1x64xf32> to vector<32x64xf32>
    %64 = arith.addf %62, %63 : vector<32x64xf32>
    %cst_20 = arith.constant 2.000000e-01 : f32
    %65 = vector.broadcast %cst_20 : f32 to vector<32x64xf32>
    %66 = arith.mulf %65, %64 : vector<32x64xf32>
    %67 = arith.maximumf %64, %66 : vector<32x64xf32>
    %68 = arith.addf %67, %6 : vector<32x64xf32>
    %cst_21 = arith.constant dense<0xFF800000> : vector<32xf32>
    %69 = vector.multi_reduction <maximumf>, %68, %cst_21 [1] : vector<32x64xf32> to vector<32xf32>
    %70 = vector.shape_cast %69 : vector<32xf32> to vector<32x1xf32>
    %71 = vector.broadcast %70 : vector<32x1xf32> to vector<32x64xf32>
    %72 = arith.subf %68, %71 : vector<32x64xf32>
    %73 = math.exp %72 : vector<32x64xf32>
    %cst_22 = arith.constant dense<0.000000e+00> : vector<32xf32>
    %74 = vector.multi_reduction <add>, %73, %cst_22 [1] : vector<32x64xf32> to vector<32xf32>
    %75 = vector.shape_cast %74 : vector<32xf32> to vector<32x1xf32>
    %76 = tpu.reciprocal %75 {approx = true} : vector<32x1xf32> -> vector<32x1xf32>
    %77 = vector.broadcast %76 : vector<32x1xf32> to vector<32x64xf32>
    %78 = arith.mulf %73, %77 : vector<32x64xf32>
    %79 = vector.extract_strided_slice %15 {offsets = [0, 16], sizes = [64, 8], strides = [1, 1]} : vector<64x64xbf16> to vector<64x8xbf16>
    %80 = arith.truncf %78 : vector<32x64xf32> to vector<32x64xbf16>
    %cst_23 = arith.constant dense<0.000000e+00> : vector<32x8xf32>
    %81 = tpu.matmul %80, %79, %cst_23 {dimension_numbers = #tpu.dot_dimension_numbers<[1], [0], [0], [1], [0, 0, 1, 1], [], []>} : vector<32x64xbf16>, vector<64x8xbf16>, vector<32x8xf32> -> vector<32x8xf32>
    %82 = vector.extract_strided_slice %13 {offsets = [0, 3], sizes = [32, 1], strides = [1, 1]} : vector<32x64xf32> to vector<32x1xf32>
    %83 = vector.extract_strided_slice %14 {offsets = [11, 0], sizes = [1, 64], strides = [1, 1]} : vector<64x64xf32> to vector<1x64xf32>
    %84 = vector.broadcast %82 : vector<32x1xf32> to vector<32x64xf32>
    %85 = vector.broadcast %83 : vector<1x64xf32> to vector<32x64xf32>
    %86 = arith.addf %84, %85 : vector<32x64xf32>
    %cst_24 = arith.constant 2.000000e-01 : f32
    %87 = vector.broadcast %cst_24 : f32 to vector<32x64xf32>
    %88 = arith.mulf %87, %86 : vector<32x64xf32>
    %89 = arith.maximumf %86, %88 : vector<32x64xf32>
    %90 = arith.addf %89, %6 : vector<32x64xf32>
    %cst_25 = arith.constant dense<0xFF800000> : vector<32xf32>
    %91 = vector.multi_reduction <maximumf>, %90, %cst_25 [1] : vector<32x64xf32> to vector<32xf32>
    %92 = vector.shape_cast %91 : vector<32xf32> to vector<32x1xf32>
    %93 = vector.broadcast %92 : vector<32x1xf32> to vector<32x64xf32>
    %94 = arith.subf %90, %93 : vector<32x64xf32>
    %95 = math.exp %94 : vector<32x64xf32>
    %cst_26 = arith.constant dense<0.000000e+00> : vector<32xf32>
    %96 = vector.multi_reduction <add>, %95, %cst_26 [1] : vector<32x64xf32> to vector<32xf32>
    %97 = vector.shape_cast %96 : vector<32xf32> to vector<32x1xf32>
    %98 = tpu.reciprocal %97 {approx = true} : vector<32x1xf32> -> vector<32x1xf32>
    %99 = vector.broadcast %98 : vector<32x1xf32> to vector<32x64xf32>
    %100 = arith.mulf %95, %99 : vector<32x64xf32>
    %101 = vector.extract_strided_slice %15 {offsets = [0, 24], sizes = [64, 8], strides = [1, 1]} : vector<64x64xbf16> to vector<64x8xbf16>
    %102 = arith.truncf %100 : vector<32x64xf32> to vector<32x64xbf16>
    %cst_27 = arith.constant dense<0.000000e+00> : vector<32x8xf32>
    %103 = tpu.matmul %102, %101, %cst_27 {dimension_numbers = #tpu.dot_dimension_numbers<[1], [0], [0], [1], [0, 0, 1, 1], [], []>} : vector<32x64xbf16>, vector<64x8xbf16>, vector<32x8xf32> -> vector<32x8xf32>
    %104 = vector.extract_strided_slice %13 {offsets = [0, 4], sizes = [32, 1], strides = [1, 1]} : vector<32x64xf32> to vector<32x1xf32>
    %105 = vector.extract_strided_slice %14 {offsets = [12, 0], sizes = [1, 64], strides = [1, 1]} : vector<64x64xf32> to vector<1x64xf32>
    %106 = vector.broadcast %104 : vector<32x1xf32> to vector<32x64xf32>
    %107 = vector.broadcast %105 : vector<1x64xf32> to vector<32x64xf32>
    %108 = arith.addf %106, %107 : vector<32x64xf32>
    %cst_28 = arith.constant 2.000000e-01 : f32
    %109 = vector.broadcast %cst_28 : f32 to vector<32x64xf32>
    %110 = arith.mulf %109, %108 : vector<32x64xf32>
    %111 = arith.maximumf %108, %110 : vector<32x64xf32>
    %112 = arith.addf %111, %6 : vector<32x64xf32>
    %cst_29 = arith.constant dense<0xFF800000> : vector<32xf32>
    %113 = vector.multi_reduction <maximumf>, %112, %cst_29 [1] : vector<32x64xf32> to vector<32xf32>
    %114 = vector.shape_cast %113 : vector<32xf32> to vector<32x1xf32>
    %115 = vector.broadcast %114 : vector<32x1xf32> to vector<32x64xf32>
    %116 = arith.subf %112, %115 : vector<32x64xf32>
    %117 = math.exp %116 : vector<32x64xf32>
    %cst_30 = arith.constant dense<0.000000e+00> : vector<32xf32>
    %118 = vector.multi_reduction <add>, %117, %cst_30 [1] : vector<32x64xf32> to vector<32xf32>
    %119 = vector.shape_cast %118 : vector<32xf32> to vector<32x1xf32>
    %120 = tpu.reciprocal %119 {approx = true} : vector<32x1xf32> -> vector<32x1xf32>
    %121 = vector.broadcast %120 : vector<32x1xf32> to vector<32x64xf32>
    %122 = arith.mulf %117, %121 : vector<32x64xf32>
    %123 = vector.extract_strided_slice %15 {offsets = [0, 32], sizes = [64, 8], strides = [1, 1]} : vector<64x64xbf16> to vector<64x8xbf16>
    %124 = arith.truncf %122 : vector<32x64xf32> to vector<32x64xbf16>
    %cst_31 = arith.constant dense<0.000000e+00> : vector<32x8xf32>
    %125 = tpu.matmul %124, %123, %cst_31 {dimension_numbers = #tpu.dot_dimension_numbers<[1], [0], [0], [1], [0, 0, 1, 1], [], []>} : vector<32x64xbf16>, vector<64x8xbf16>, vector<32x8xf32> -> vector<32x8xf32>
    %126 = vector.extract_strided_slice %13 {offsets = [0, 5], sizes = [32, 1], strides = [1, 1]} : vector<32x64xf32> to vector<32x1xf32>
    %127 = vector.extract_strided_slice %14 {offsets = [13, 0], sizes = [1, 64], strides = [1, 1]} : vector<64x64xf32> to vector<1x64xf32>
    %128 = vector.broadcast %126 : vector<32x1xf32> to vector<32x64xf32>
    %129 = vector.broadcast %127 : vector<1x64xf32> to vector<32x64xf32>
    %130 = arith.addf %128, %129 : vector<32x64xf32>
    %cst_32 = arith.constant 2.000000e-01 : f32
    %131 = vector.broadcast %cst_32 : f32 to vector<32x64xf32>
    %132 = arith.mulf %131, %130 : vector<32x64xf32>
    %133 = arith.maximumf %130, %132 : vector<32x64xf32>
    %134 = arith.addf %133, %6 : vector<32x64xf32>
    %cst_33 = arith.constant dense<0xFF800000> : vector<32xf32>
    %135 = vector.multi_reduction <maximumf>, %134, %cst_33 [1] : vector<32x64xf32> to vector<32xf32>
    %136 = vector.shape_cast %135 : vector<32xf32> to vector<32x1xf32>
    %137 = vector.broadcast %136 : vector<32x1xf32> to vector<32x64xf32>
    %138 = arith.subf %134, %137 : vector<32x64xf32>
    %139 = math.exp %138 : vector<32x64xf32>
    %cst_34 = arith.constant dense<0.000000e+00> : vector<32xf32>
    %140 = vector.multi_reduction <add>, %139, %cst_34 [1] : vector<32x64xf32> to vector<32xf32>
    %141 = vector.shape_cast %140 : vector<32xf32> to vector<32x1xf32>
    %142 = tpu.reciprocal %141 {approx = true} : vector<32x1xf32> -> vector<32x1xf32>
    %143 = vector.broadcast %142 : vector<32x1xf32> to vector<32x64xf32>
    %144 = arith.mulf %139, %143 : vector<32x64xf32>
    %145 = vector.extract_strided_slice %15 {offsets = [0, 40], sizes = [64, 8], strides = [1, 1]} : vector<64x64xbf16> to vector<64x8xbf16>
    %146 = arith.truncf %144 : vector<32x64xf32> to vector<32x64xbf16>
    %cst_35 = arith.constant dense<0.000000e+00> : vector<32x8xf32>
    %147 = tpu.matmul %146, %145, %cst_35 {dimension_numbers = #tpu.dot_dimension_numbers<[1], [0], [0], [1], [0, 0, 1, 1], [], []>} : vector<32x64xbf16>, vector<64x8xbf16>, vector<32x8xf32> -> vector<32x8xf32>
    %148 = vector.extract_strided_slice %13 {offsets = [0, 6], sizes = [32, 1], strides = [1, 1]} : vector<32x64xf32> to vector<32x1xf32>
    %149 = vector.extract_strided_slice %14 {offsets = [14, 0], sizes = [1, 64], strides = [1, 1]} : vector<64x64xf32> to vector<1x64xf32>
    %150 = vector.broadcast %148 : vector<32x1xf32> to vector<32x64xf32>
    %151 = vector.broadcast %149 : vector<1x64xf32> to vector<32x64xf32>
    %152 = arith.addf %150, %151 : vector<32x64xf32>
    %cst_36 = arith.constant 2.000000e-01 : f32
    %153 = vector.broadcast %cst_36 : f32 to vector<32x64xf32>
    %154 = arith.mulf %153, %152 : vector<32x64xf32>
    %155 = arith.maximumf %152, %154 : vector<32x64xf32>
    %156 = arith.addf %155, %6 : vector<32x64xf32>
    %cst_37 = arith.constant dense<0xFF800000> : vector<32xf32>
    %157 = vector.multi_reduction <maximumf>, %156, %cst_37 [1] : vector<32x64xf32> to vector<32xf32>
    %158 = vector.shape_cast %157 : vector<32xf32> to vector<32x1xf32>
    %159 = vector.broadcast %158 : vector<32x1xf32> to vector<32x64xf32>
    %160 = arith.subf %156, %159 : vector<32x64xf32>
    %161 = math.exp %160 : vector<32x64xf32>
    %cst_38 = arith.constant dense<0.000000e+00> : vector<32xf32>
    %162 = vector.multi_reduction <add>, %161, %cst_38 [1] : vector<32x64xf32> to vector<32xf32>
    %163 = vector.shape_cast %162 : vector<32xf32> to vector<32x1xf32>
    %164 = tpu.reciprocal %163 {approx = true} : vector<32x1xf32> -> vector<32x1xf32>
    %165 = vector.broadcast %164 : vector<32x1xf32> to vector<32x64xf32>
    %166 = arith.mulf %161, %165 : vector<32x64xf32>
    %167 = vector.extract_strided_slice %15 {offsets = [0, 48], sizes = [64, 8], strides = [1, 1]} : vector<64x64xbf16> to vector<64x8xbf16>
    %168 = arith.truncf %166 : vector<32x64xf32> to vector<32x64xbf16>
    %cst_39 = arith.constant dense<0.000000e+00> : vector<32x8xf32>
    %169 = tpu.matmul %168, %167, %cst_39 {dimension_numbers = #tpu.dot_dimension_numbers<[1], [0], [0], [1], [0, 0, 1, 1], [], []>} : vector<32x64xbf16>, vector<64x8xbf16>, vector<32x8xf32> -> vector<32x8xf32>
    %170 = vector.extract_strided_slice %13 {offsets = [0, 7], sizes = [32, 1], strides = [1, 1]} : vector<32x64xf32> to vector<32x1xf32>
    %171 = vector.extract_strided_slice %14 {offsets = [15, 0], sizes = [1, 64], strides = [1, 1]} : vector<64x64xf32> to vector<1x64xf32>
    %172 = vector.broadcast %170 : vector<32x1xf32> to vector<32x64xf32>
    %173 = vector.broadcast %171 : vector<1x64xf32> to vector<32x64xf32>
    %174 = arith.addf %172, %173 : vector<32x64xf32>
    %cst_40 = arith.constant 2.000000e-01 : f32
    %175 = vector.broadcast %cst_40 : f32 to vector<32x64xf32>
    %176 = arith.mulf %175, %174 : vector<32x64xf32>
    %177 = arith.maximumf %174, %176 : vector<32x64xf32>
    %178 = arith.addf %177, %6 : vector<32x64xf32>
    %cst_41 = arith.constant dense<0xFF800000> : vector<32xf32>
    %179 = vector.multi_reduction <maximumf>, %178, %cst_41 [1] : vector<32x64xf32> to vector<32xf32>
    %180 = vector.shape_cast %179 : vector<32xf32> to vector<32x1xf32>
    %181 = vector.broadcast %180 : vector<32x1xf32> to vector<32x64xf32>
    %182 = arith.subf %178, %181 : vector<32x64xf32>
    %183 = math.exp %182 : vector<32x64xf32>
    %cst_42 = arith.constant dense<0.000000e+00> : vector<32xf32>
    %184 = vector.multi_reduction <add>, %183, %cst_42 [1] : vector<32x64xf32> to vector<32xf32>
    %185 = vector.shape_cast %184 : vector<32xf32> to vector<32x1xf32>
    %186 = tpu.reciprocal %185 {approx = true} : vector<32x1xf32> -> vector<32x1xf32>
    %187 = vector.broadcast %186 : vector<32x1xf32> to vector<32x64xf32>
    %188 = arith.mulf %183, %187 : vector<32x64xf32>
    %189 = vector.extract_strided_slice %15 {offsets = [0, 56], sizes = [64, 8], strides = [1, 1]} : vector<64x64xbf16> to vector<64x8xbf16>
    %190 = arith.truncf %188 : vector<32x64xf32> to vector<32x64xbf16>
    %cst_43 = arith.constant dense<0.000000e+00> : vector<32x8xf32>
    %191 = tpu.matmul %190, %189, %cst_43 {dimension_numbers = #tpu.dot_dimension_numbers<[1], [0], [0], [1], [0, 0, 1, 1], [], []>} : vector<32x64xbf16>, vector<64x8xbf16>, vector<32x8xf32> -> vector<32x8xf32>
    %192 = tpu.concatenate %37, %59, %81, %103, %125, %147, %169, %191 in 1 : vector<32x8xf32>, vector<32x8xf32>, vector<32x8xf32>, vector<32x8xf32>, vector<32x8xf32>, vector<32x8xf32>, vector<32x8xf32>, vector<32x8xf32> -> vector<32x64xf32>
    %193 = vector.broadcast %4 : vector<1x64xf32> to vector<32x64xf32>
    %194 = arith.addf %192, %193 : vector<32x64xf32>
    %cst_44 = arith.constant 0.000000e+00 : f32
    %195 = vector.broadcast %cst_44 : f32 to vector<32x64xf32>
    %196 = arith.cmpf ogt, %194, %195 : vector<32x64xf32>
    %197 = math.exp %194 : vector<32x64xf32>
    %cst_45 = arith.constant 1.000000e+00 : f32
    %198 = vector.broadcast %cst_45 : f32 to vector<32x64xf32>
    %199 = arith.subf %197, %198 : vector<32x64xf32>
    %200 = arith.select %196, %194, %199 : vector<32x64xi1>, vector<32x64xf32>
    %c0_46 = arith.constant 0 : index
    %c0_47 = arith.constant 0 : index
    %201 = vector.load %arg5[%c0_46, %c0_47] : memref<32x64xf32, #tpu.memory_space<vmem>>, vector<32x64xf32>
    tpu.vector_store %arg5[%c0_46, %c0_47], %200 {strides = array<i32>} : memref<32x64xf32, #tpu.memory_space<vmem>>, vector<32x64xf32>,
    return
  }
  func.func @transform_0(%arg0: i32) -> (i32, i32) {
    %c0_i32 = arith.constant 0 : i32
    %c0_i32_0 = arith.constant 0 : i32
    return %arg0, %c0_i32 : i32, i32
  }
  func.func @transform_1(%arg0: i32) -> (i32, i32) {
    %c0_i32 = arith.constant 0 : i32
    %c0_i32_0 = arith.constant 0 : i32
    return %arg0, %c0_i32 : i32, i32
  }
  func.func @transform_2(%arg0: i32) -> (i32, i32) {
    %c0_i32 = arith.constant 0 : i32
    %c0_i32_0 = arith.constant 0 : i32
    %c0_i32_1 = arith.constant 0 : i32
    return %c0_i32, %c0_i32_0 : i32, i32
  }
  func.func @transform_3(%arg0: i32) -> (i32, i32) {
    %c0_i32 = arith.constant 0 : i32
    %c0_i32_0 = arith.constant 0 : i32
    %c0_i32_1 = arith.constant 0 : i32
    return %c0_i32, %c0_i32_0 : i32, i32
  }
  func.func @transform_4(%arg0: i32) -> (i32, i32) {
    %c0_i32 = arith.constant 0 : i32
    %c0_i32_0 = arith.constant 0 : i32
    return %arg0, %c0_i32 : i32, i32
  }
}

module attributes {stable_mosaic.version = 11 : i64} {
  func.func @_gat_layer2_kernel(%arg0: i32, %arg1: memref<32x64xbf16, #tpu.memory_space<vmem>>, %arg2: memref<32x64xf32, #tpu.memory_space<vmem>>, %arg3: memref<64x64xf32, #tpu.memory_space<vmem>>, %arg4: memref<200x128xf32, #tpu.memory_space<vmem>>, %arg5: memref<32x128xf32, #tpu.memory_space<vmem>>) attributes {dimension_semantics = [#tpu.dimension_semantics<parallel>], iteration_bounds = array<i64: 2>, scalar_prefetch = 0 : i64, scratch_operands = 0 : i64, tpu.core_type = #tpu.core_type<tc>, window_params = [{transform_indices = @transform_0, window_bounds = array<i64: 32, 64>}, {transform_indices = @transform_1, window_bounds = array<i64: 32, 64>}, {pipeline_mode = #tpu.pipeline_mode<synchronous>, transform_indices = @transform_2, window_bounds = array<i64: 64, 64>}, {pipeline_mode = #tpu.pipeline_mode<synchronous>, transform_indices = @transform_3, window_bounds = array<i64: 200, 128>}, {transform_indices = @transform_4, window_bounds = array<i64: 32, 128>}]} {
    %c0 = arith.constant 0 : index
    %c0_0 = arith.constant 0 : index
    %0 = vector.load %arg4[%c0, %c0_0] : memref<200x128xf32, #tpu.memory_space<vmem>>, vector<64x128xf32>
    %1 = arith.truncf %0 : vector<64x128xf32> to vector<64x128xbf16>
    %c64 = arith.constant 64 : index
    %c0_1 = arith.constant 0 : index
    %2 = vector.load %arg4[%c64, %c0_1] : memref<200x128xf32, #tpu.memory_space<vmem>>, vector<128x128xf32>
    %c192 = arith.constant 192 : index
    %c0_2 = arith.constant 0 : index
    %3 = vector.load %arg4[%c192, %c0_2] : memref<200x128xf32, #tpu.memory_space<vmem>>, vector<8x128xf32>
    %4 = vector.extract_strided_slice %3 {offsets = [0, 0], sizes = [1, 128], strides = [1, 1]} : vector<8x128xf32> to vector<1x128xf32>
    %5 = vector.extract_strided_slice %3 {offsets = [1, 0], sizes = [1, 128], strides = [1, 1]} : vector<8x128xf32> to vector<1x128xf32>
    %c0_3 = arith.constant 0 : index
    %c0_4 = arith.constant 0 : index
    %6 = vector.load %arg1[%c0_3, %c0_4] : memref<32x64xbf16, #tpu.memory_space<vmem>>, vector<32x64xbf16>
    %7 = arith.extf %6 : vector<32x64xbf16> to vector<32x64xf32>
    %c0_5 = arith.constant 0 : index
    %c0_6 = arith.constant 0 : index
    %8 = vector.load %arg3[%c0_5, %c0_6] : memref<64x64xf32, #tpu.memory_space<vmem>>, vector<64x64xf32>
    %9 = arith.truncf %8 : vector<64x64xf32> to vector<64x64xbf16>
    %cst = arith.constant dense<0.000000e+00> : vector<64x128xf32>
    %10 = tpu.matmul %9, %1, %cst {dimension_numbers = #tpu.dot_dimension_numbers<[1], [0], [0], [1], [0, 0, 1, 1], [], []>} : vector<64x64xbf16>, vector<64x128xbf16>, vector<64x128xf32> -> vector<64x128xf32>
    %c0_7 = arith.constant 0 : index
    %c0_8 = arith.constant 0 : index
    %11 = vector.load %arg2[%c0_7, %c0_8] : memref<32x64xf32, #tpu.memory_space<vmem>>, vector<32x64xf32>
    %12 = arith.truncf %11 : vector<32x64xf32> to vector<32x64xbf16>
    %cst_9 = arith.constant dense<0.000000e+00> : vector<32x128xf32>
    %13 = tpu.matmul %12, %1, %cst_9 {dimension_numbers = #tpu.dot_dimension_numbers<[1], [0], [0], [1], [0, 0, 1, 1], [], []>} : vector<32x64xbf16>, vector<64x128xbf16>, vector<32x128xf32> -> vector<32x128xf32>
    %cst_10 = arith.constant dense<0.000000e+00> : vector<32x128xf32>
    %14 = tpu.matmul %13, %2, %cst_10 {dimension_numbers = #tpu.dot_dimension_numbers<[1], [0], [0], [1], [0, 0, 1, 1], [], []>} : vector<32x128xf32>, vector<128x128xf32>, vector<32x128xf32> -> vector<32x128xf32>
    %cst_11 = arith.constant dense<0.000000e+00> : vector<128x64xf32>
    %15 = tpu.matmul %2, %10, %cst_11 {dimension_numbers = #tpu.dot_dimension_numbers<[0], [1], [1], [0], [0, 1, 1, 0], [], []>} : vector<128x128xf32>, vector<64x128xf32>, vector<128x64xf32> -> vector<128x64xf32>
    %16 = vector.extract_strided_slice %14 {offsets = [0, 0], sizes = [32, 1], strides = [1, 1]} : vector<32x128xf32> to vector<32x1xf32>
    %17 = vector.extract_strided_slice %15 {offsets = [1, 0], sizes = [1, 64], strides = [1, 1]} : vector<128x64xf32> to vector<1x64xf32>
    %18 = vector.broadcast %16 : vector<32x1xf32> to vector<32x64xf32>
    %19 = vector.broadcast %17 : vector<1x64xf32> to vector<32x64xf32>
    %20 = arith.addf %18, %19 : vector<32x64xf32>
    %cst_12 = arith.constant 2.000000e-01 : f32
    %21 = vector.broadcast %cst_12 : f32 to vector<32x64xf32>
    %22 = arith.mulf %21, %20 : vector<32x64xf32>
    %23 = arith.maximumf %20, %22 : vector<32x64xf32>
    %24 = arith.addf %23, %7 : vector<32x64xf32>
    %cst_13 = arith.constant dense<0xFF800000> : vector<32xf32>
    %25 = vector.multi_reduction <maximumf>, %24, %cst_13 [1] : vector<32x64xf32> to vector<32xf32>
    %26 = vector.shape_cast %25 : vector<32xf32> to vector<32x1xf32>
    %27 = vector.broadcast %26 : vector<32x1xf32> to vector<32x64xf32>
    %28 = arith.subf %24, %27 : vector<32x64xf32>
    %29 = math.exp %28 : vector<32x64xf32>
    %cst_14 = arith.constant dense<0.000000e+00> : vector<32xf32>
    %30 = vector.multi_reduction <add>, %29, %cst_14 [1] : vector<32x64xf32> to vector<32xf32>
    %31 = vector.shape_cast %30 : vector<32xf32> to vector<32x1xf32>
    %32 = tpu.reciprocal %31 {approx = true} : vector<32x1xf32> -> vector<32x1xf32>
    %33 = vector.broadcast %32 : vector<32x1xf32> to vector<32x64xf32>
    %34 = arith.mulf %29, %33 : vector<32x64xf32>
    %35 = arith.truncf %34 : vector<32x64xf32> to vector<32x64xbf16>
    %36 = arith.truncf %10 : vector<64x128xf32> to vector<64x128xbf16>
    %cst_15 = arith.constant dense<0.000000e+00> : vector<32x128xf32>
    %37 = tpu.matmul %35, %36, %cst_15 {dimension_numbers = #tpu.dot_dimension_numbers<[1], [0], [0], [1], [0, 0, 1, 1], [], []>} : vector<32x64xbf16>, vector<64x128xbf16>, vector<32x128xf32> -> vector<32x128xf32>
    %38 = vector.broadcast %4 : vector<1x128xf32> to vector<32x128xf32>
    %39 = arith.addf %37, %38 : vector<32x128xf32>
    %40 = vector.broadcast %5 : vector<1x128xf32> to vector<32x128xf32>
    %41 = arith.addf %39, %40 : vector<32x128xf32>
    %cst_16 = arith.constant dense<0xFF800000> : vector<32xf32>
    %42 = vector.multi_reduction <maximumf>, %41, %cst_16 [1] : vector<32x128xf32> to vector<32xf32>
    %43 = vector.shape_cast %42 : vector<32xf32> to vector<32x1xf32>
    %44 = vector.broadcast %43 : vector<32x1xf32> to vector<32x128xf32>
    %45 = arith.subf %41, %44 : vector<32x128xf32>
    %46 = math.exp %45 : vector<32x128xf32>
    %cst_17 = arith.constant dense<0.000000e+00> : vector<32xf32>
    %47 = vector.multi_reduction <add>, %46, %cst_17 [1] : vector<32x128xf32> to vector<32xf32>
    %48 = vector.shape_cast %47 : vector<32xf32> to vector<32x1xf32>
    %49 = vector.broadcast %48 : vector<32x1xf32> to vector<32x128xf32>
    %50 = arith.divf %46, %49 : vector<32x128xf32>
    %c0_18 = arith.constant 0 : index
    %c0_19 = arith.constant 0 : index
    %51 = vector.load %arg5[%c0_18, %c0_19] : memref<32x128xf32, #tpu.memory_space<vmem>>, vector<32x128xf32>
    tpu.vector_store %arg5[%c0_18, %c0_19], %50 {strides = array<i32>} : memref<32x128xf32, #tpu.memory_space<vmem>>, vector<32x128xf32>,
    return
  }
  func.func @transform_0(%arg0: i32) -> (i32, i32) {
    %c0_i32 = arith.constant 0 : i32
    %c0_i32_0 = arith.constant 0 : i32
    return %arg0, %c0_i32 : i32, i32
  }
  func.func @transform_1(%arg0: i32) -> (i32, i32) {
    %c0_i32 = arith.constant 0 : i32
    %c0_i32_0 = arith.constant 0 : i32
    return %arg0, %c0_i32 : i32, i32
  }
  func.func @transform_2(%arg0: i32) -> (i32, i32) {
    %c0_i32 = arith.constant 0 : i32
    %c0_i32_0 = arith.constant 0 : i32
    %c0_i32_1 = arith.constant 0 : i32
    return %c0_i32, %c0_i32_0 : i32, i32
  }
  func.func @transform_3(%arg0: i32) -> (i32, i32) {
    %c0_i32 = arith.constant 0 : i32
    %c0_i32_0 = arith.constant 0 : i32
    %c0_i32_1 = arith.constant 0 : i32
    return %c0_i32, %c0_i32_0 : i32, i32
  }
  func.func @transform_4(%arg0: i32) -> (i32, i32) {
    %c0_i32 = arith.constant 0 : i32
    %c0_i32_0 = arith.constant 0 : i32
    return %arg0, %c0_i32 : i32, i32
  }
}

</mosaic_0001>

<bundles_post_ra>
// kernel: graph_attention_network.3
= control target key start
LH: loop header
LB: loop body
LE: loop exit
PB: predicated region body
PF: predicated region fallthrough
CT: control target
= control target key end

     0   :  { %s2000_s0 = inlined_call_operand.hbm [shape: bf16[64,64], index: 0, kind: input, shape index: {}]   ;;  %s2001_s1 = inlined_call_operand.hbm [shape: f32[64,64], index: 1, kind: input, shape index: {}, may-alias: {1,2}]   ;;  %s2002_s2 = inlined_call_operand.hbm [shape: f32[64,64], index: 2, kind: input, shape index: {}, may-alias: {1,2}]   ;;  %s2003_s3 = inlined_call_operand.hbm [shape: f32[200,128], index: 3, kind: input, shape index: {}]   ;;  %s2004_s4 = inlined_call_operand.hbm [shape: f32[64,128], index: 4, kind: output, shape index: {}]  }
   0x1   :  { %2010 = sst [smem:[#allocation16_spill]] %s2000_s0 }
   0x2   :  { %2011 = sst [smem:[#allocation17_spill]] %s2002_s2 }
   0x3   :  { %9 = vsyncpa [#allocation3], 0 }
   0x4   :  { %11 = vsyncpa [#allocation3 + $0x1], 0 }
   0x5   :  { %12 = vsyncpa [#allocation6], 0 }
   0x6   :  { %14 = vsyncpa [#allocation6 + $0x1], 0 }
   0x7   :  { %15 = vsyncpa [#allocation9], 0 }
   0x8   :  { %16 = vsyncpa [#allocation4], 0 }
   0x9   :  { %18 = vsyncpa [#allocation4 + $0x1], 0  ;;  %s1668_s15 = smov 0   ;;  %s1670_s16 = smov 0  }
   0xa   :  { %s1672_s17 = smov 0   ;;  %s1674_s18 = smov 0  }
   0xb LB: > { %s1689_s19 = sadd.s32 4294967295, %s1629_s18   ;;  %s1050_s20 = sadd.s32 4294967294, %s1629_s18   ;;  %s1629_s18 = sphi %s1674_s18, %s2034_s18   ;;  %s1625_s17 = sphi %s1672_s17, %s2033_s17   ;;  %s1621_s16 = sphi %s1670_s16, %s2032_s16   ;;  %s1617_s15 = sphi %s1668_s15, %s2031_s15  }
   0xc   : > { %p44_p0 = scmp.ne.s32.totalorder %s1621_s16, %s1617_s15  ;;  %p2005_p1 = scmp.eq.s32.totalorder %s1689_s19, 0 }
   0xd   : > { %p142_p3 = scmp.eq.s32.totalorder %s1050_s20, 1  ;;  %p1051_p5 = scmp.ge.s32.totalorder %s1629_s18, 1 }
   0xe   : > { %p1698_p4 = por %p2005_p1, %p44_p0  ;;  %p149_p7 = scmp.lt.s32.totalorder %s1629_s18, 3 }
   0xf   : > { %p1703_p6 = por %p142_p3, %p44_p0  ;;  %s1631_s24 = smov [#allocation7]  }
  0x10   : > { %s2012_s21 = scalar_select %p1698_p4, 1, 0 }
  0x11   : > { %s2013_s22 = scalar_select %p1703_p6, 1, 0 }
  0x12   : > { %p1708_p8 = pnand %p1051_p5, %p149_p7  ;;  %s161_s25 = sshll.u32 %s1631_s24, 4  ;;  %s1712_s25 = int_to_ptr.vmem [resolvable:$true] %s161_s25 }
  0x13   : > { %s1632_s27 = smov [#allocation8]   ;;  %s2016_s2 = sld [smem:[#allocation17_spill]] }
  0x14   : > { %p1336_p9 = pneg %p1708_p8  ;;  %s174_s28 = sshll.u32 %s1632_s27, 4  ;;  %s1723_s28 = int_to_ptr.vmem [resolvable:$true] %s174_s28 }
  0x16   : > { %p1719_p11 = pnand %p1336_p9, %p2005_p1 }
  0x18   : > { %p1437_p13 = pneg %p1719_p11 }
  0x19   : > { %s1435_s5 = scalar_lea.hbm %s2016_s2, 1024 }
  0x1a   : > { %p1436_p12 = scmp.ne.s32.totalorder %s2016_s2, %s1435_s5  ;;  %p1442_p5 = scmp.lt.u32.totalorder %s1435_s5, %s2016_s2 }
  0x1c   : > { %p1438_p0 = pnand %p1437_p13, %p1436_p12 }
  0x1e   : > { %p1439_p3 = pneg %p1438_p0 }
  0x20   : > { %p1444_p7 = pnand %p1442_p5, %p1439_p3 }
  0x22   : > { %1447 = shalt.err (!%p1444_p7)
}
  0x23   : > { %s1448_s10 = scalar_lea.vmem %s1712_s25, 1024  ;;  %p1456_p2 = scmp.lt.s32.totalorder %s1712_s25, %s1712_s25 }
  0x24   : > { %p1449_p9 = scmp.ne.s32.totalorder %s1712_s25, %s1448_s10  ;;  %p1457_p12 = scmp.lt.s32.totalorder %s1448_s10, %s1448_s10 }
  0x26   : > { %p1451_p10 = pnand %p1449_p9, %p1437_p13  ;;  %p1458_p0 = por %p1457_p12, %p1456_p2 }
  0x28   : > { %p1452_p1 = pneg %p1451_p10 }
  0x2a   : > { %p1459_p6 = pnand %p1458_p0, %p1452_p1 }
  0x2c   : > { %1462 = shalt.err (!%p1459_p6)
}
  0x2d   : > { %s2008_s11 = smov 128   ;;  %s2009_s12 = smov 8  }
  0x2e   : > { %1339 = dma.hbm_to_vmem [thread:$0]  (!%p1719_p11), %s2016_s2, 1024, %s1712_s25, [#allocation6], %s2008_s11, %s2008_s11, %s2009_s12  }
  0x2f   : > { %s1463_s27 = scalar_lea.hbm %s2003_s3, 3200 }
  0x30   : > { %p1464_p1 = scmp.ne.s32.totalorder %s2003_s3, %s1463_s27  ;;  %p1470_p10 = scmp.lt.u32.totalorder %s1463_s27, %s2003_s3 }
  0x32   : > { %p1466_p2 = pnand %p1464_p1, %p1437_p13 }
  0x34   : > { %p1467_p6 = pneg %p1466_p2 }
  0x36   : > { %p1472_p3 = pnand %p1470_p10, %p1467_p6 }
  0x38   : > { %1475 = shalt.err (!%p1472_p3)
}
  0x39   : > { %s1476_s25 = scalar_lea.vmem %s1723_s28, 3200  ;;  %p1484_p12 = scmp.lt.s32.totalorder %s1723_s28, %s1723_s28 }
  0x3a   : > { %p1477_p5 = scmp.ne.s32.totalorder %s1723_s28, %s1476_s25  ;;  %p1485_p0 = scmp.lt.s32.totalorder %s1476_s25, %s1476_s25 }
  0x3c   : > { %p1479_p7 = pnand %p1477_p5, %p1437_p13  ;;  %p1486_p1 = por %p1485_p0, %p1484_p12 }
  0x3e   : > { %p1480_p9 = pneg %p1479_p7 }
  0x40   : > { %p1487_p2 = pnand %p1486_p1, %p1480_p9 }
  0x42   : > { %1490 = shalt.err (!%p1487_p2)
}
  0x43   : > { %1342 = dma.hbm_to_vmem [thread:$0]  (!%p1719_p11), %s2003_s3, 3200, %s1723_s28, [#allocation9], %s2008_s11, %s2008_s11, %s2009_s12  }
  0x44   : > { %s1784_s26 = sadd.s32 1, %s1629_s18   ;;  %s31_s9 = sadd.s32 1, %s1625_s17 }
  0x45   : > { %s28_s10 = ssub.s32 %s1629_s18, %s1784_s26  ;;  %p38_p13 = scmp.ne.s32.totalorder %s1625_s17, %s1621_s16 }
  0x46   : > { %p29_p6 = scmp.eq.s32.totalorder %s28_s10, 0  ;;  %p39_p10 = scmp.eq.s32.totalorder %s1629_s18, 0 }
  0x47   : > { %p2017_p3 = scmp.eq.s32.totalorder %s1689_s19, 1  ;;  %p1356_p7 = scmp.lt.s32.totalorder %s1629_s18, 2 }
  0x48   : > { %s1800_s14 = scalar_select %p29_p6, %s1625_s17, %s31_s9  }
  0x49   : > { %p1794_p5 = por %p2017_p3, %p38_p13  ;;  %p40_p9 = por %p39_p10, %p38_p13 }
  0x4a   : > { %s1803_s20 = sand.u32 1, %s1625_s17   ;;  %s1080_s24 = sshll.u32 %s1629_s18, 8 }
  0x4b   : > { %s2018_s13 = scalar_select %p1794_p5, 1, 0 }
  0x4c   : > { %s1055_s28 = sshll.u32 %s1803_s20, 4  ;;  %s2019_s0 = sld [smem:[#allocation16_spill]] }
  0x4d   : > { %s192_s5 = scalar_lea.vmem [#allocation2], %s1055_s28  ;;  %p1814_p11 = pnand %p1356_p7, %p40_p9 }
  0x4e   : > { %s199_s6 = sshll.u32 %s192_s5, 4  ;;  %s209_s7 = sand.u32 1, %s1629_s18   ;;  %s1812_s6 = int_to_ptr.vmem [resolvable:$true] %s199_s6 }
  0x4f   : > { %s189_s8 = scalar_lea.sflag [#allocation3], %s1803_s20  ;;  %p1493_p0 = pneg %p1814_p11 }
  0x52   : > { %s1810_s30 = scalar_lea.hbm %s2019_s0, %s1080_s24  ;;  %s1496_s24 = scalar_lea.hbm %s2019_s0, 512 }
  0x53   : > { %s1491_s9 = scalar_lea.hbm %s1810_s30, 256  ;;  %p1497_p13 = scmp.lt.u32.totalorder %s1810_s30, %s2019_s0 }
  0x54   : > { %p1492_p12 = scmp.ne.s32.totalorder %s1810_s30, %s1491_s9  ;;  %p1498_p6 = scmp.lt.u32.totalorder %s1496_s24, %s1491_s9 }
  0x55   : > { %p1500_p3 = scmp.lt.u32.totalorder %s1491_s9, %s1810_s30 }
  0x56   : > { %p1494_p1 = pnand %p1493_p0, %p1492_p12  ;;  %p1499_p10 = por %p1498_p6, %p1497_p13 }
  0x58   : > { %p1495_p2 = pneg %p1494_p1  ;;  %p1501_p7 = por %p1500_p3, %p1499_p10 }
  0x5a   : > { %p1502_p9 = pnand %p1501_p7, %p1495_p2 }
  0x5c   : > { %1505 = shalt.err (!%p1502_p9)
}
  0x5d   : > { %s1506_s5 = scalar_lea.vmem %s1812_s6, 256  ;;  %s1635_s10 = smov [#allocation2]  }
  0x5e   : > { %p1507_p12 = scmp.ne.s32.totalorder %s1812_s6, %s1506_s5  ;;  %s1511_s28 = sshll.u32 %s1635_s10, 4  ;;  %s1512_s28 = int_to_ptr.vmem [resolvable:$false] %s1511_s28 }
  0x5f   : > { %s1513_s27 = scalar_lea.vmem %s1512_s28, 512  ;;  %p1514_p4 = scmp.lt.s32.totalorder %s1812_s6, %s1512_s28 }
  0x60   : > { %p1509_p1 = pnand %p1507_p12, %p1493_p0  ;;  %p1515_p13 = scmp.lt.s32.totalorder %s1513_s27, %s1506_s5 }
  0x62   : > { %p1510_p5 = pneg %p1509_p1  ;;  %p1516_p6 = por %p1515_p13, %p1514_p4 }
  0x64   : > { %p1517_p10 = pnand %p1516_p6, %p1510_p5 }
  0x66   : > { %1520 = shalt.err (!%p1517_p10)
}
  0x67   : > { %s1636_s9 = smov 64   ;;  %s1637_s24 = smov 4  }
  0x68   : > { %1346 = dma.hbm_to_vmem [thread:$0]  (!%p1814_p11), %s1810_s30, 256, %s1812_s6, %s189_s8, %s1636_s9, %s1636_s9, %s1637_s24  }
  0x69   : > { %s1058_s29 = sshll.u32 %s1803_s20, 5  ;;  %s1081_s10 = sshll.u32 %s1629_s18, 9 }
  0x6a   : > { %s1852_s27 = scalar_lea.hbm %s2001_s1, %s1081_s10  ;;  %s213_s11 = scalar_lea.vmem [#allocation5], %s1058_s29 }
  0x6b   : > { %s220_s12 = sshll.u32 %s213_s11, 4  ;;  %s1858_s0 = scalar_lea.sflag [#allocation6], %s209_s7  ;;  %s1854_s12 = int_to_ptr.vmem [resolvable:$true] %s220_s12 }
  0x6c   : > { %s1521_s2 = scalar_lea.hbm %s1852_s27, 512  ;;  %s1526_s6 = scalar_lea.hbm %s2001_s1, 1024 }
  0x6d   : > { %p1522_p4 = scmp.ne.s32.totalorder %s1852_s27, %s1521_s2  ;;  %p1527_p3 = scmp.lt.u32.totalorder %s1852_s27, %s2001_s1 }
  0x6e   : > { %p1528_p7 = scmp.lt.u32.totalorder %s1526_s6, %s1521_s2  ;;  %p1530_p12 = scmp.lt.u32.totalorder %s1521_s2, %s1852_s27 }
  0x6f   : > { %p1524_p5 = pnand %p1522_p4, %p1493_p0 }
  0x70   : > { %p1529_p9 = por %p1528_p7, %p1527_p3 }
  0x71   : > { %p1525_p2 = pneg %p1524_p5 }
  0x72   : > { %p1531_p1 = por %p1530_p12, %p1529_p9 }
  0x74   : > { %p1532_p13 = pnand %p1531_p1, %p1525_p2 }
  0x76   : > { %1535 = shalt.err (!%p1532_p13)
}
  0x77   : > { %s1536_s11 = scalar_lea.vmem %s1854_s12, 512  ;;  %s1638_s7 = smov [#allocation5]  }
  0x78   : > { %p1537_p6 = scmp.ne.s32.totalorder %s1854_s12, %s1536_s11  ;;  %s1541_s24 = sshll.u32 %s1638_s7, 4  ;;  %s1542_s24 = int_to_ptr.vmem [resolvable:$false] %s1541_s24 }
  0x79   : > { %s1543_s29 = scalar_lea.vmem %s1542_s24, 1024  ;;  %p1544_p5 = scmp.lt.s32.totalorder %s1854_s12, %s1542_s24 }
  0x7a   : > { %p1539_p10 = pnand %p1537_p6, %p1493_p0  ;;  %p1545_p3 = scmp.lt.s32.totalorder %s1543_s29, %s1536_s11 }
  0x7c   : > { %p1540_p4 = pneg %p1539_p10  ;;  %p1546_p7 = por %p1545_p3, %p1544_p5 }
  0x7e   : > { %p1547_p9 = pnand %p1546_p7, %p1540_p4 }
  0x80   : > { %1550 = shalt.err (!%p1547_p9)
}
  0x81   : > { %s2021_s2 = smov 8   ;;  %s2022_s10 = smov 128  }
  0x82   : > { %1349 = dma.hbm_to_vmem [thread:$0]  (!%p1814_p11), %s1852_s27, 512, %s1854_s12, %s1858_s0, %s2022_s10, %s2022_s10, %s2021_s2  }
  0x83   : > { %232 = sbr.rel (%p1708_p8) target bundleno = 1613 (0x64d), region = 36  ;;  %s1890_s28 = sand.u32 (!%p1708_p8), 1, %s1621_s16  }
  0x84   : > { %s1062_s5 = sshll.u32 (!%p1708_p8), %s1890_s28, 4  ;;  %s235_s20 = scalar_lea.sflag (!%p1708_p8), [#allocation3], %s1890_s28 }
  0x85   : > { %s1894_s30 = scalar_lea.vmem (!%p1708_p8), [#allocation2], %s1062_s5  ;;  %p2023_p0 = scmp.ne.s32.totalorder (!%p1708_p8), %s2012_s21, 0 }
  0x8a   : > { %1596 = dma.done.wait (%p2023_p0), %s235_s20, 256  }
  0x8b   : > { %1598 = vsyncadd (%p2023_p0), %s235_s20, 4294967040  ;;  %s243_s0 = sand.u32 1, %s1689_s19   ;;  %s1063_s23 = sshll.u32 %s1890_s28, 5 }
  0x8c   : > { %s244_s12 = scalar_lea.sflag [#allocation6], %s243_s0  ;;  %s1904_s25 = scalar_lea.vmem [#allocation5], %s1063_s23 }
  0x8d   : > { %1600 = dma.done.wait (%p2023_p0), %s244_s12, 512  }
  0x8e   : > { %1602 = vsyncadd (%p2023_p0), %s244_s12, 4294966784  ;;  %p2024_p8 = scmp.eq.s32.totalorder %s1689_s19, 0 }
  0x90   : > { %1604 = dma.done.wait (%p2024_p8), [#allocation6], 1024   ;;  %p2025_p11 = pmov %p2024_p8 }
  0x91   : > { %p2026_p2 = pmov %p2024_p8 }
  0x92   : > { %1606 = vsyncadd (%p2025_p11), [#allocation6], 4294966272 }
  0x93   : > { %1608 = dma.done.wait (%p2026_p2), [#allocation9], 3200   ;;  %p2027_p12 = pmov %p2026_p2 }
  0x94   : > { %v289_v0 = vld [vmem:[#allocation8] sm:$0xff]  ;;  %v290_v1 = vld [vmem:[#allocation8 + $0x8] sm:$0xff]  ;;  %v291_v2 = vld [vmem:[#allocation8 + $0x10] sm:$0xff]  ;;  %vm338_vm0 = vcmask 523264   ;;  %v1639_v54 = vmov 0   ;;  %s284_s21 = scalar_lea.vmem [#allocation10], %s1063_s23 }
  0x95   : > { %1610 = vsyncadd (%p2027_p12), [#allocation9], 4294964096  ;;  %v297_v3 = vpack.c.bf16 %v290_v1, %v289_v0  ;;  %v292_v4 = vld [vmem:[#allocation8 + $0x18] sm:$0xff]  ;;  %v293_v6 = vld [vmem:[#allocation8 + $0x20] sm:$0xff]  ;;  %1401 = vset.pattern.permute.xlu1 %v1639_v54  ;;  %s1082_s27 = sshll.u32 %s1689_s19, 9  ;;  %s935_s6 = sshll.u32 %s284_s21, 4  ;;  %s1956_s6 = int_to_ptr.vmem [resolvable:$true] %s935_s6 }
  0x96   : > { %v298_v5 = vpack.c.bf16 %v292_v4, %v291_v2  ;;  %v294_v7 = vld [vmem:[#allocation8 + $0x28] sm:$0xff]  ;;  %v416_v8 = vld [vmem:[%s1904_s25] sm:$0xff]  ;;  %v295_v15 = vld [vmem:[#allocation8 + $0x30] sm:$0xff]  ;;  %s1954_s11 = scalar_lea.hbm %s2004_s4, %s1082_s27  ;;  %s922_s7 = scalar_lea.sflag [#allocation4], %s1890_s28 }
  0x97   : > { %1172 = vmatprep.subr.bf16.mxu1 %v297_v3  ;;  %v417_v9 = vld [vmem:[%s1904_s25 + $0x8] sm:$0xff]  ;;  %1156 = vmatprep.subr.bf16.mxu0 %v297_v3  ;;  %v326_v11 = vld [vmem:[#allocation7] sm:$0xff]  ;;  %v299_v13 = vpack.c.bf16 %v294_v7, %v293_v6  ;;  %v296_v16 = vld [vmem:[#allocation8 + $0x38] sm:$0xff]  ;;  %s1551_s24 = scalar_lea.vmem %s1956_s6, 512  ;;  %p2028_p13 = scmp.ne.s32.totalorder %s2018_s13, 0 }
  0x98   : > { %1173 = vmatpush3.bf16.msra.mxu1 %v297_v3  ;;  %v420_v10 = vpack.c.bf16 %v417_v9, %v416_v8  ;;  %1157 = vmatpush3.bf16.msra.mxu0 %v297_v3  ;;  %v327_v12 = vld [vmem:[#allocation7 + $0x8] sm:$0xff]  ;;  %v301_v17 = vld [vmem:[#allocation8 + $0x40] sm:$0xff]  ;;  %v300_v18 = vpack.c.bf16 %v296_v16, %v295_v15  ;;  %v418_v20 = vld [vmem:[%s1904_s25 + $0x10] sm:$0xff]  ;;  %v744_v15 = vlaneseq  ;;  %p1552_p1 = scmp.ne.s32.totalorder %s1956_s6, %s1551_s24  ;;  %s1640_s19 = smov [#allocation10]  }
  0x99   : > { %1174 = vmatprep.subr.bf16.mxu1 %v298_v5  ;;  %1158 = vmatprep.subr.bf16.mxu0 %v298_v5  ;;  %v334_v14 = vpack.c.bf16 %v327_v12, %v326_v11  ;;  %v302_v19 = vld [vmem:[#allocation8 + $0x48] sm:$0xff]  ;;  %v419_v21 = vld [vmem:[%s1904_s25 + $0x18] sm:$0xff]  ;;  %v328_v22 = vld [vmem:[#allocation7 + $0x10] sm:$0xff]  ;;  %s1555_s29 = sshll.u32 %s1640_s19, 4  ;;  %s1556_s29 = int_to_ptr.vmem [resolvable:$false] %s1555_s29 }
  0x9a   : > { %1180 = vmatprep.mubr.msk.bf16.mxu1 %vm338_vm0, %v420_v10  ;;  %562 = vxpose.xlu0.b32.start [1/16] %v301_v17, 128  ;;  %v329_v23 = vld [vmem:[#allocation7 + $0x18] sm:$0xff]  ;;  %v330_v24 = vld [vmem:[#allocation7 + $0x20] sm:$0xff]  ;;  %v331_v25 = vld [vmem:[#allocation7 + $0x28] sm:$0xff]  ;;  %v1274_v26 = vpack.c.bf16 %v302_v19, %v301_v17  ;;  %v421_v29 = vpack.c.bf16 %v419_v21, %v418_v20  ;;  %v1928_v16 = vshrl.u32 %v744_v15, 7  ;;  %p1553_p6 = pnand %p1552_p1, %p2028_p13  ;;  %s1557_s2 = scalar_lea.vmem %s1556_s29, 1024 }
  0x9b   : > { %1164 = vmatprep.mubr.msk.bf16.mxu0 %vm338_vm0, %v334_v14  ;;  %v303_v27 = vld [vmem:[#allocation8 + $0x50] sm:$0xff]  ;;  %v304_v28 = vld [vmem:[#allocation8 + $0x58] sm:$0xff]  ;;  %v335_v30 = vpack.c.bf16 %v329_v23, %v328_v22  ;;  %v336_v31 = vpack.c.bf16 %v331_v25, %v330_v24  ;;  %v305_v33 = vld [vmem:[#allocation8 + $0x60] sm:$0xff]  ;;  %p1558_p4 = scmp.lt.s32.totalorder %s1956_s6, %s1556_s29  ;;  %p1559_p5 = scmp.lt.s32.totalorder %s1557_s2, %s1551_s24 }
  0x9c   : > { %1175 = vmatpush3.bf16.msra.mxu1 %v298_v5  ;;  %1159 = vmatpush3.bf16.msra.mxu0 %v298_v5  ;;  %v1278_v32 = vpack.c.bf16 %v304_v28, %v303_v27  ;;  %v306_v34 = vld [vmem:[#allocation8 + $0x68] sm:$0xff]  ;;  %v332_v35 = vld [vmem:[#allocation7 + $0x30] sm:$0xff]  ;;  %v333_v36 = vld [vmem:[#allocation7 + $0x38] sm:$0xff]  ;;  %v746_v17 = vsub.s32 1, %v1928_v16  ;;  %p1554_p10 = pneg %p1553_p6 }
  0x9d   : > { %1176 = vmatprep.subr.bf16.mxu1 %v299_v13  ;;  %1160 = vmatprep.subr.bf16.mxu0 %v299_v13  ;;  %v1282_v37 = vpack.c.bf16 %v306_v34, %v305_v33  ;;  %v307_v38 = vld [vmem:[#allocation8 + $0x70] sm:$0xff]  ;;  %v308_v39 = vld [vmem:[#allocation8 + $0x78] sm:$0xff]  ;;  %v337_v40 = vpack.c.bf16 %v333_v36, %v332_v35  ;;  %v309_v42 = vld [vmem:[#allocation8 + $0x80] sm:$0xff]  ;;  %p1560_p3 = por %p1559_p5, %p1558_p4 }
  0x9e   : > { %563 = vxpose.xlu0.b32.cont [2/16] %v302_v19, 128  ;;  %v1286_v41 = vpack.c.bf16 %v308_v39, %v307_v38  ;;  %v310_v43 = vld [vmem:[#allocation8 + $0x88] sm:$0xff]  ;;  %v311_v45 = vld [vmem:[#allocation8 + $0x90] sm:$0xff]  ;;  %v312_v46 = vld [vmem:[#allocation8 + $0x98] sm:$0xff] }
  0x9f   : > { %v1290_v44 = vpack.c.bf16 %v310_v43, %v309_v42  ;;  %v1294_v47 = vpack.c.bf16 %v312_v46, %v311_v45  ;;  %v313_v48 = vld [vmem:[#allocation8 + $0xa0] sm:$0xff]  ;;  %v314_v49 = vld [vmem:[#allocation8 + $0xa8] sm:$0xff]  ;;  %v315_v51 = vld [vmem:[#allocation8 + $0xb0] sm:$0xff]  ;;  %p1561_p7 = pnand %p1560_p3, %p1554_p10 }
  0xa0   : > { %1177 = vmatpush3.bf16.msra.mxu1 %v299_v13  ;;  %1161 = vmatpush3.bf16.msra.mxu0 %v299_v13  ;;  %v1298_v50 = vpack.c.bf16 %v314_v49, %v313_v48  ;;  %v316_v52 = vld [vmem:[#allocation8 + $0xb8] sm:$0xff]  ;;  %v1084_v20 = vld [vmem:[%s1894_s30] sm:$0xff]  }
  0xa1   : > { %1178 = vmatprep.subr.bf16.mxu1 %v300_v18  ;;  %1162 = vmatprep.subr.bf16.mxu0 %v300_v18  ;;  %v1302_v53 = vpack.c.bf16 %v316_v52, %v315_v51  ;;  %v1086_v23 = vunpack.c.h.bf16 %v1084_v20 }
  0xa2   : > { %564 = vxpose.xlu0.b32.cont [3/16] %v303_v27, 128 }
  0xa4   : > { %1179 = vmatpush3.bf16.msra.mxu1 %v300_v18  ;;  %1163 = vmatpush3.bf16.msra.mxu0 %v300_v18 }
  0xa5   : > { %1275 = vmatprep.subr.bf16.mxu0 %v1274_v26 }
  0xa6   : > { %565 = vxpose.xlu0.b32.cont [4/16] %v304_v28, 128 }
  0xa7   : > { %1181 = vmatmul.mubr.msk.bf16.vlgmr.msra.gmra.mrb[0].mxu1 %vm338_vm0, %v421_v29  ;;  %1165 = vmatmul.mubr.msk.bf16.vlgmr.msra.gmra.mrb[0].mxu0 %vm338_vm0, %v335_v30  ;;  %v1085_v29 = vunpack.c.l.bf16 %v1084_v20 }
  0xa8   : > { %1168 = vmatprep.mubr.msk.bf16.mxu0 %vm338_vm0, %v336_v31  ;;  %1277 = vmatpush3.bf16.msra.mxu0 %v1274_v26  ;;  %v1091_v31 = vld [vmem:[%s1894_s30 + $0x8] sm:$0xff]  }
  0xa9   : > { %1279 = vmatprep.subr.bf16.mxu0 %v1278_v32 }
  0xaa   : > { %566 = vxpose.xlu0.b32.cont [5/16] %v305_v33, 128 }
  0xac   : > { %1281 = vmatpush3.bf16.msra.mxu0 %v1278_v32 }
  0xad   : > { %1283 = vmatprep.subr.bf16.mxu0 %v1282_v37 }
  0xae   : > { %567 = vxpose.xlu0.b32.cont [6/16] %v306_v34, 128 }
  0xaf   : > { %1169 = vmatmul.mubr.msk.bf16.gmra.mrb[4].mxu0 %vm338_vm0, %v337_v40 }
  0xb0   : > { %1285 = vmatpush3.bf16.msra.mxu0 %v1282_v37  ;;  %v1089_v37 = vunpack.c.l.bf16 %v1091_v31 }
  0xb1   : > { %1287 = vmatprep.subr.bf16.mxu0 %v1286_v41 }
  0xb2   : > { %568 = vxpose.xlu0.b32.cont [7/16] %v307_v38, 128 }
  0xb4   : > { %1289 = vmatpush3.bf16.msra.mxu0 %v1286_v41 }
  0xb5   : > { %1291 = vmatprep.subr.bf16.mxu0 %v1290_v44 }
  0xb6   : > { %569 = vxpose.xlu0.b32.cont [8/16] %v308_v39, 128 }
  0xb8   : > { %1293 = vmatpush3.bf16.msra.mxu0 %v1290_v44  ;;  %v1090_v44 = vunpack.c.h.bf16 %v1091_v31 }
  0xb9   : > { %1295 = vmatprep.subr.bf16.mxu0 %v1294_v47 }
  0xba   : > { %570 = vxpose.xlu0.b32.cont [9/16] %v309_v42, 128 }
  0xbc   : > { %1297 = vmatpush3.bf16.msra.mxu0 %v1294_v47 }
  0xbd   : > { %1299 = vmatprep.subr.bf16.mxu0 %v1298_v50 }
  0xbe   : > { %571 = vxpose.xlu0.b32.cont [10/16] %v310_v43, 128 }
  0xc0   : > { %1301 = vmatpush3.bf16.msra.mxu0 %v1298_v50 }
  0xc1   : > { %1303 = vmatprep.subr.bf16.mxu0 %v1302_v53 }
  0xc2   : > { %572 = vxpose.xlu0.b32.cont [11/16] %v311_v45, 128 }
  0xc4   : > { %1305 = vmatpush3.bf16.msra.mxu0 %v1302_v53 }
  0xc6   : > { %573 = vxpose.xlu0.b32.cont [12/16] %v312_v46, 128 }
  0xca   : > { %574 = vxpose.xlu0.b32.cont [13/16] %v313_v48, 128 }
  0xce   : > { %575 = vxpose.xlu0.b32.cont [14/16] %v314_v49, 128 }
  0xd2   : > { %576 = vxpose.xlu0.b32.cont [15/16] %v315_v51, 128 }
  0xd6   : > { %577 = vxpose.xlu0.b32.end [16/16] %v316_v52, 128 }
  0xff   : > { %1402 = vset.pattern.permute.xlu0 %v1639_v54 }
 0x11a   : > { %v578_v55 = vpop.trf.xlu0 }
 0x11b   : > { %1238 = vmatprep.mubr.f32.mxu1 %v578_v55 }
 0x11e   : > { %v579_v8 = vpop.trf.xlu0 }
 0x122   : > { %v580_v49 = vpop.trf.xlu0 }
 0x126   : > { %v581_v50 = vpop.trf.xlu0 }
 0x12a   : > { %v582_v51 = vpop.trf.xlu0 }
 0x12e   : > { %v583_v52 = vpop.trf.xlu0 }
 0x132   : > { %v584_v53 = vpop.trf.xlu0 }
 0x136   : > { %v585_v54 = vpop.trf.xlu0 }
 0x13a   : > { %v586_v55 = vpop.trf.xlu0 }
 0x17a   : > { %v1182_v56 = vpop.f32.mrb[0].mxu1  ;;  %v1166_v57 = vpop.f32.mrb[0].mxu0 }
 0x17b   : > { %v462_v58 = vpop.f32.mrb[1].mxu1  ;;  %v385_v59 = vpop.f32.mrb[1].mxu0 }
 0x17c   : > { %v1183_v60 = vpop.f32.mrb[2].mxu1  ;;  %1216 = vmatprep.mubr.f32.mxu0 %v462_v58  ;;  %v1167_v61 = vpop.f32.mrb[2].mxu0 }
 0x17d   : > { %v465_v62 = vpop.f32.mrb[3].mxu1  ;;  %v1310_v63 = vpack.c.bf16 %v1167_v61, %v1166_v57  ;;  %v388_v0 = vpop.f32.mrb[3].mxu0 }
 0x17e   : > { %1217 = vmatmul.mubr.f32.vlgmr.msra.gmra.mrb[8].mxu0 %v465_v62  ;;  %v1306_v1 = vpack.c.bf16 %v388_v0, %v385_v59 }
 0x17f   : > { %1219 = vmatprep.mubr.f32.mxu0 %v1182_v56  ;;  %v587_v56 = vpop.trf.xlu0 }
 0x180   : > { %1307 = vmatprep.subr.bf16.mxu1 %v1306_v1  ;;  %1262 = vmatprep.subr.bf16.mxu0 %v1306_v1 }
 0x181   : > { %1309 = vmatpush3.bf16.xpose.msra.mxu1 %v1306_v1  ;;  %1263 = vmatpush3.bf16.msra.mxu0 %v1306_v1 }
 0x182   : > { %1220 = vmatmul.mubr.f32.gmra.mrb[10].mxu0 %v1183_v60  ;;  %1311 = vmatprep.subr.bf16.mxu1 %v1310_v63  ;;  %v1170_v2 = vpop.f32.mrb[4].mxu0 }
 0x183   : > { %1264 = vmatprep.subr.bf16.mxu0 %v1310_v63  ;;  %v401_v3 = vpop.f32.mrb[5].mxu0  ;;  %v588_v57 = vpop.trf.xlu0 }
 0x184   : > { %v1171_v4 = vpop.f32.mrb[6].mxu0 }
 0x185   : > { %1265 = vmatpush3.bf16.msra.mxu0 %v1310_v63  ;;  %v1318_v5 = vpack.c.bf16 %v1171_v4, %v1170_v2  ;;  %v404_v6 = vpop.f32.mrb[7].mxu0 }
 0x186   : > { %v1314_v7 = vpack.c.bf16 %v404_v6, %v401_v3 }
 0x187   : > { %v589_v58 = vpop.trf.xlu0 }
 0x188   : > { %1266 = vmatprep.subr.bf16.mxu0 %v1314_v7 }
 0x189   : > { %1313 = vmatpush3.bf16.xpose.msra.mxu1 %v1310_v63  ;;  %1267 = vmatpush3.bf16.msra.mxu0 %v1314_v7 }
 0x18a   : > { %1315 = vmatprep.subr.bf16.mxu1 %v1314_v7  ;;  %1268 = vmatprep.subr.bf16.mxu0 %v1318_v5 }
 0x18b   : > { %v590_v59 = vpop.trf.xlu0 }
 0x18d   : > { %1269 = vmatpush3.bf16.msra.mxu0 %v1318_v5 }
 0x18f   : > { %v591_v60 = vpop.trf.xlu0 }
 0x191   : > { %1317 = vmatpush3.bf16.xpose.msra.mxu1 %v1314_v7 }
 0x192   : > { %1319 = vmatprep.subr.bf16.mxu1 %v1318_v5 }
 0x193   : > { %v592_v61 = vpop.trf.xlu0 }
 0x197   : > { %v593_v62 = vpop.trf.xlu0 }
 0x199   : > { %1321 = vmatpush3.bf16.xpose.msra.mxu1 %v1318_v5 }
 0x1a0   : > { %1239 = vmatmul.mubr.f32.vlgmr.msra.gmra.mrb[4].mxu1 %v579_v8 }
 0x1a1   : > { %1241 = vmatprep.mubr.f32.mxu1 %v580_v49  ;;  %v816_v49 = vsub.s32 0, %v1928_v16 }
 0x1a4   : > { %1242 = vmatmul.mubr.f32.gmra.mrb[6].mxu1 %v581_v50  ;;  %v317_v50 = vld [vmem:[#allocation8 + $0xc0] sm:$0xff] }
 0x1a5   : > { %1244 = vmatprep.mubr.f32.mxu1 %v582_v51  ;;  %v817_v51 = vrot.slane %v317_v50, %v816_v49 }
 0x1a8   : > { %1245 = vmatmul.mubr.f32.gmra.mrb[8].mxu1 %v583_v52  ;;  %v876_v52 = vrot.slane %v317_v50, %v746_v17 }
 0x1a9   : > { %1247 = vmatprep.mubr.f32.mxu1 %v584_v53 }
 0x1ac   : > { %1248 = vmatmul.mubr.f32.gmra.mrb[10].mxu1 %v585_v54 }
 0x1ad   : > { %1250 = vmatprep.mubr.f32.mxu1 %v586_v55 }
 0x1b0   : > { %1251 = vmatmul.mubr.f32.gmra.mrb[12].mxu1 %v587_v56 }
 0x1b1   : > { %1253 = vmatprep.mubr.f32.mxu1 %v588_v57 }
 0x1b4   : > { %1254 = vmatmul.mubr.f32.gmra.mrb[14].mxu1 %v589_v58 }
 0x1b5   : > { %1256 = vmatprep.mubr.f32.mxu1 %v590_v59 }
 0x1b8   : > { %1257 = vmatmul.mubr.f32.gmra.mrb[16].mxu1 %v591_v60 }
 0x1b9   : > { %1259 = vmatprep.mubr.f32.mxu1 %v592_v61 }
 0x1bc   : > { %1260 = vmatmul.mubr.f32.gmra.mrb[18].mxu1 %v593_v62 }
 0x251   : > { %v1218_v9 = vpop.f32.mrb[8].mxu0 }
 0x252   : > { %731 = vperm.xlu1 %1401, %v1218_v9   ;;  %v543_v10 = vpop.f32.mrb[9].mxu0 }
 0x255   : > { %v1221_v11 = vpop.f32.mrb[10].mxu0 }
 0x256   : > { %726 = vperm.xlu1 %1401, %v543_v10   ;;  %v553_v12 = vpop.f32.mrb[11].mxu0 }
 0x25a   : > { %736 = vperm.xlu1 %1401, %v553_v12  }
 0x25e   : > { %741 = vperm.xlu1 %1401, %v1221_v11  }
 0x273   : > { %v1240_v13 = vpop.f32.mrb[4].mxu1 }
 0x274   : > { %v660_v14 = vpop.f32.mrb[5].mxu1 }
 0x275   : > { %v747_v18 = vrot.slane %v660_v14, %v746_v17 }
 0x2d1   : > { %v732_v19 = vpop.permute.xlu1 %731 }
 0x2d2   : > { %v749_v21 = vadd.f32 %v747_v18, %v732_v19 }
 0x2d4   : > { %v753_v22 = vmul.f32 0.2, %v749_v21 }
 0x2d5   : > { %v727_v24 = vpop.permute.xlu1 %726 }
 0x2d6   : > { %v757_v25 = vmax.f32 %v749_v21, %v753_v22  ;;  %v748_v26 = vadd.f32 %v747_v18, %v727_v24  ;;  %v1243_v21 = vpop.f32.mrb[6].mxu1 }
 0x2d7   : > { %v669_v22 = vpop.f32.mrb[7].mxu1 }
 0x2d8   : > { %v752_v27 = vmul.f32 0.2, %v748_v26  ;;  %v761_v28 = vadd.f32 %v1086_v23, %v757_v25  ;;  %v1246_v23 = vpop.f32.mrb[8].mxu1 }
 0x2d9   : > { %v737_v30 = vpop.permute.xlu1 %736  ;;  %v677_v24 = vpop.f32.mrb[9].mxu1 }
 0x2da   : > { %v756_v32 = vmax.f32 %v748_v26, %v752_v27  ;;  %v750_v33 = vadd.f32 %v747_v18, %v737_v30  ;;  %v767_v34 = vsel %vm338_vm0, %v761_v28, -inf  ;;  %v1249_v25 = vpop.f32.mrb[10].mxu1 }
 0x2db   : > { %768 = vmax.xlane.f32.xlu1 %v767_v34  ;;  %v685_v26 = vpop.f32.mrb[11].mxu1 }
 0x2dc   : > { %v754_v35 = vmul.f32 0.2, %v750_v33  ;;  %v760_v36 = vadd.f32 %v1085_v29, %v756_v32  ;;  %v1252_v27 = vpop.f32.mrb[12].mxu1 }
 0x2dd   : > { %v742_v38 = vpop.permute.xlu1 %741 }
 0x2de   : > { %v758_v39 = vmax.f32 %v750_v33, %v754_v35  ;;  %v751_v40 = vadd.f32 %v747_v18, %v742_v38  ;;  %v764_v41 = vsel %vm338_vm0, %v760_v36, -inf }
 0x2df   : > { %765 = vmax.xlane.f32.xlu1 %v764_v41 }
 0x2e0   : > { %v755_v42 = vmul.f32 0.2, %v751_v40  ;;  %v762_v43 = vadd.f32 %v1089_v37, %v758_v39 }
 0x2e2   : > { %v759_v45 = vmax.f32 %v751_v40, %v755_v42  ;;  %v770_v46 = vsel %vm338_vm0, %v762_v43, -inf }
 0x2e3   : > { %771 = vmax.xlane.f32.xlu1 %v770_v46 }
 0x2e4   : > { %v763_v47 = vadd.f32 %v1090_v44, %v759_v45 }
 0x2e6   : > { %v773_v48 = vsel %vm338_vm0, %v763_v47, -inf }
 0x2e7   : > { %774 = vmax.xlane.f32.xlu1 %v773_v48 }
 0x368   : > { %v769_v63 = vpop.xlane.xlu1 %768 }
 0x369   : > { %v777_v0 = vsub.f32 %v761_v28, %v769_v63  ;;  %v693_v28 = vpop.f32.mrb[13].mxu1 }
 0x36a   : > { %v1255_v29 = vpop.f32.mrb[14].mxu1 }
 0x36b   : > { %v782_v1 = vmul.f32 1.442695, %v777_v0  ;;  %v701_v30 = vpop.f32.mrb[15].mxu1 }
 0x36c   : > { %v766_v2 = vpop.xlane.xlu1 %765  ;;  %v1258_v31 = vpop.f32.mrb[16].mxu1 }
 0x36d   : > { %1403 = vpow2.f32 %v782_v1  ;;  %v776_v3 = vsub.f32 %v760_v36, %v766_v2  ;;  %v709_v33 = vpop.f32.mrb[17].mxu1 }
 0x36e   : > { %v1261_v35 = vpop.f32.mrb[18].mxu1 }
 0x36f   : > { %v780_v4 = vmul.f32 1.442695, %v776_v3  ;;  %v717_v37 = vpop.f32.mrb[19].mxu1 }
 0x370   : > { %v772_v5 = vpop.xlane.xlu1 %771 }
 0x371   : > { %1405 = vpow2.f32 %v780_v4  ;;  %v778_v6 = vsub.f32 %v762_v43, %v772_v5 }
 0x373   : > { %v784_v7 = vmul.f32 1.442695, %v778_v6 }
 0x374   : > { %v775_v8 = vpop.xlane.xlu1 %774 }
 0x375   : > { %1407 = vpow2.f32 %v784_v7  ;;  %v779_v9 = vsub.f32 %v763_v47, %v775_v8 }
 0x377   : > { %v1404_v10 = vpop.eup %1403  ;;  %v786_v11 = vmul.f32 1.442695, %v779_v9 }
 0x378   : > { %v791_v12 = vsel %vm338_vm0, %v1404_v10, 0.0 }
 0x379   : > { %1409 = vpow2.f32 %v786_v11  ;;  %792 = vadd.xlane.f32.xlu1 %v791_v12 }
 0x37b   : > { %v1406_v13 = vpop.eup %1405 }
 0x37c   : > { %v788_v14 = vsel %vm338_vm0, %v1406_v13, 0.0 }
 0x37d   : > { %789 = vadd.xlane.f32.xlu0 %v788_v14 }
 0x37f   : > { %v1408_v15 = vpop.eup %1407 }
 0x380   : > { %v794_v18 = vsel %vm338_vm0, %v1408_v15, 0.0 }
 0x381   : > { %795 = vadd.xlane.f32.xlu1 %v794_v18 }
 0x383   : > { %v1410_v19 = vpop.eup %1409 }
 0x384   : > { %v797_v20 = vsel %vm338_vm0, %v1410_v19, 0.0 }
 0x385   : > { %798 = vadd.xlane.f32.xlu1 %v797_v20 }
 0x406   : > { %v793_v32 = vpop.xlane.xlu1 %792 }
 0x407   : > { %1411 = vrcp.f32 %v793_v32 }
 0x40a   : > { %v790_v34 = vpop.xlane.xlu0 %789 }
 0x40b   : > { %1413 = vrcp.f32 %v790_v34 }
 0x40e   : > { %v796_v36 = vpop.xlane.xlu1 %795 }
 0x40f   : > { %1415 = vrcp.f32 %v796_v36 }
 0x411   : > { %v1412_v39 = vpop.eup %1411 }
 0x412   : > { %v799_v38 = vpop.xlane.xlu1 %798  ;;  %v805_v42 = vmul.f32 %v1412_v39, %v1404_v10 }
 0x413   : > { %1417 = vrcp.f32 %v799_v38 }
 0x415   : > { %v1414_v40 = vpop.eup %1413 }
 0x416   : > { %v804_v41 = vmul.f32 %v1414_v40, %v1406_v13 }
 0x418   : > { %v808_v43 = vpack.c.bf16 %v805_v42, %v804_v41 }
 0x419   : > { %v1416_v44 = vpop.eup %1415 }
 0x41a   : > { %1270 = vmatprep.mubr.msk.bf16.mxu0 %vm338_vm0, %v808_v43  ;;  %v806_v46 = vmul.f32 %v1416_v44, %v1408_v15 }
 0x41d   : > { %v1418_v45 = vpop.eup %1417 }
 0x41e   : > { %v807_v47 = vmul.f32 %v1418_v45, %v1410_v19 }
 0x420   : > { %v809_v48 = vpack.c.bf16 %v807_v47, %v806_v46 }
 0x422   : > { %1271 = vmatmul.mubr.msk.bf16.vlgmr.msra.gmra.mrb[12].mxu0 %vm338_vm0, %v809_v48 }
 0x4f5   : > { %v1272_v53 = vpop.f32.mrb[12].mxu0 }
 0x4f6   : > { %v867_v54 = vadd.f32 %v1272_v53, %v817_v51  ;;  %v858_v55 = vpop.f32.mrb[13].mxu0 }
 0x4f7   : > { %v859_v56 = vadd.f32 %v858_v55, %v817_v51  ;;  %v1273_v57 = vpop.f32.mrb[14].mxu0 }
 0x4f8   : > { %v870_v58 = vadd.f32 %v1273_v57, %v817_v51  ;;  %v861_v59 = vpop.f32.mrb[15].mxu0  ;;  %v879_v60 = vadd.f32 %v876_v52, %v867_v54 }
 0x4f9   : > { %v862_v61 = vadd.f32 %v861_v59, %v817_v51  ;;  %v877_v62 = vadd.f32 %v876_v52, %v859_v56 }
 0x4fa   : > { %885 = vmax.xlane.f32.xlu1 %v879_v60  ;;  %v880_v0 = vadd.f32 %v876_v52, %v870_v58 }
 0x4fb   : > { %v878_v63 = vadd.f32 %v876_v52, %v862_v61 }
 0x4fe   : > { %881 = vmax.xlane.f32.xlu1 %v877_v62 }
 0x502   : > { %883 = vmax.xlane.f32.xlu1 %v878_v63 }
 0x506   : > { %887 = vmax.xlane.f32.xlu1 %v880_v0 }
 0x587   : > { %v886_v1 = vpop.xlane.xlu1 %885 }
 0x588   : > { %v891_v2 = vsub.f32 %v879_v60, %v886_v1 }
 0x58a   : > { %v897_v16 = vmul.f32 1.442695, %v891_v2 }
 0x58b   : > { %v882_v17 = vpop.xlane.xlu1 %881 }
 0x58c   : > { %1419 = vpow2.f32 %v897_v16  ;;  %v889_v3 = vsub.f32 %v877_v62, %v882_v17 }
 0x58e   : > { %v893_v4 = vmul.f32 1.442695, %v889_v3 }
 0x58f   : > { %v884_v5 = vpop.xlane.xlu1 %883 }
 0x590   : > { %1421 = vpow2.f32 %v893_v4  ;;  %v890_v6 = vsub.f32 %v878_v63, %v884_v5 }
 0x592   : > { %v895_v7 = vmul.f32 1.442695, %v890_v6 }
 0x593   : > { %v888_v8 = vpop.xlane.xlu1 %887 }
 0x594   : > { %1423 = vpow2.f32 %v895_v7  ;;  %v892_v9 = vsub.f32 %v880_v0, %v888_v8 }
 0x596   : > { %v1420_v10 = vpop.eup %1419  ;;  %v899_v11 = vmul.f32 1.442695, %v892_v9 }
 0x597   : > { %905 = vadd.xlane.f32.xlu1 %v1420_v10 }
 0x598   : > { %1425 = vpow2.f32 %v899_v11 }
 0x59a   : > { %v1422_v12 = vpop.eup %1421 }
 0x59b   : > { %901 = vadd.xlane.f32.xlu1 %v1422_v12 }
 0x59e   : > { %v1424_v13 = vpop.eup %1423 }
 0x59f   : > { %903 = vadd.xlane.f32.xlu1 %v1424_v13 }
 0x5a2   : > { %v1426_v14 = vpop.eup %1425 }
 0x5a3   : > { %907 = vadd.xlane.f32.xlu1 %v1426_v14 }
 0x624   : > { %v906_v15 = vpop.xlane.xlu1 %905 }
 0x625   : > { %1427 = vrcp.f32 %v906_v15 }
 0x628   : > { %v902_v18 = vpop.xlane.xlu1 %901 }
 0x629   : > { %1429 = vrcp.f32 %v902_v18 }
 0x62c   : > { %v904_v19 = vpop.xlane.xlu1 %903 }
 0x62d   : > { %1431 = vrcp.f32 %v904_v19 }
 0x62f   : > { %v1428_v20 = vpop.eup %1427 }
 0x630   : > { %v914_v21 = vmul.f32 %v1428_v20, %v1420_v10  ;;  %v908_v22 = vpop.xlane.xlu1 %907 }
 0x631   : > { %1433 = vrcp.f32 %v908_v22 }
 0x632   : > { %919 = vst [vmem:[%s284_s21 + $0x10] sm:$0xff] %v914_v21 }
 0x633   : > { %v1430_v23 = vpop.eup %1429 }
 0x634   : > { %v910_v24 = vmul.f32 %v1430_v23, %v1422_v12 }
 0x636   : > { %917 = vst [vmem:[%s284_s21] sm:$0xff] %v910_v24 }
 0x637   : > { %v1432_v25 = vpop.eup %1431 }
 0x638   : > { %v912_v26 = vmul.f32 %v1432_v25, %v1424_v13 }
 0x63a   : > { %918 = vst [vmem:[%s284_s21 + $0x8] sm:$0xff] %v912_v26 }
 0x63b   : > { %v1434_v27 = vpop.eup %1433 }
 0x63c   : > { %v916_v28 = vmul.f32 %v1434_v27, %v1426_v14 }
 0x63e   : > { %920 = vst [vmem:[%s284_s21 + $0x18] sm:$0xff] %v916_v28 }
 0x63f   : > { %1564 = shalt.err (!%p1561_p7)
}
 0x640   : > { %s1565_s10 = scalar_lea.hbm %s1954_s11, 512  ;;  %s1569_s30 = scalar_lea.hbm %s2004_s4, 1024 }
 0x641   : > { %p1566_p9 = scmp.ne.s32.totalorder %s1954_s11, %s1565_s10  ;;  %p1570_p11 = scmp.lt.u32.totalorder %s1954_s11, %s2004_s4 }
 0x642   : > { %p1571_p2 = scmp.lt.u32.totalorder %s1569_s30, %s1565_s10  ;;  %p1573_p1 = scmp.lt.u32.totalorder %s1565_s10, %s1954_s11 }
 0x643   : > { %p1567_p0 = pnand %p1566_p9, %p2028_p13 }
 0x644   : > { %p1572_p12 = por %p1571_p2, %p1570_p11 }
 0x645   : > { %p1568_p8 = pneg %p1567_p0 }
 0x646   : > { %p1574_p6 = por %p1573_p1, %p1572_p12 }
 0x648   : > { %p1575_p10 = pnand %p1574_p6, %p1568_p8 }
 0x64a   : > { %1578 = shalt.err (!%p1575_p10)
}
 0x64b   : > { %s1641_s12 = smov 128   ;;  %s1642_s25 = smov 8  }
 0x64c   : > { %1334 = dma.vmem_to_hbm [thread:$0]  (%p2028_p13), %s1956_s6, 512, %s1954_s11, %s922_s7, %s1641_s12, %s1641_s12, %s1642_s25  }
 0x64d PF: > { %s950_s21 = sand.u32 1, %s1617_s15   ;;  %p2029_p4 = scmp.ne.s32.totalorder %s2013_s22, 0 }
 0x64e   : > { %p2030_p5 = scmp.ge.s32.totalorder %s1629_s18, 2  ;;  %s951_s27 = scalar_lea.sflag [#allocation4], %s950_s21 }
 0x650   : > { %p1351_p3 = pnand %p2030_p5, %p2029_p4 }
 0x652   : > { %1612 = dma.done.wait (!%p1351_p3), %s951_s27, 512  }
 0x653   : > { %1614 = vsyncadd (!%p1351_p3), %s951_s27, 4294966784  ;;  %p21_p7 = scmp.ge.s32.totalorder %s1784_s26, 4   ;;  %s2031_s15 = smov %s1621_s16 }
 0x654   : > { %s2032_s16 = smov %s1625_s17  ;;  %s2033_s17 = smov %s1800_s14 }
 0x655   : > { %s2034_s18 = smov %s1784_s26  ;;  %23 = sbr.rel (!%p21_p7) target bundleno = 11 (0xb), region = 102 }
 0x65c   :  { %956 = vsyncpa [#allocation3], 1 }
 0x65d   :  { %958 = vsyncpa [#allocation3 + $0x1], 1 }
 0x65e   :  { %959 = vsyncpa [#allocation6], 1 }
 0x65f   :  { %961 = vsyncpa [#allocation6 + $0x1], 1 }
 0x660   :  { %962 = vsyncpa [#allocation9], 1 }
 0x661   :  { %963 = vsyncpa [#allocation4], 1 }
 0x662   :  { %965 = vsyncpa [#allocation4 + $0x1], 1 }

// kernel: graph_attention_network.2
= control target key start
LH: loop header
LB: loop body
LE: loop exit
PB: predicated region body
PF: predicated region fallthrough
CT: control target
= control target key end

     0   :  { %s4187_s0 = inlined_call_operand.hbm [shape: bf16[64,64], index: 0, kind: input, shape index: {}]   ;;  %s4188_s1 = inlined_call_operand.hbm [shape: f32[64,8], index: 1, kind: input, shape index: {}, may-alias: {1,2}]   ;;  %s4189_s2 = inlined_call_operand.hbm [shape: f32[64,8], index: 2, kind: input, shape index: {}, may-alias: {1,2}]   ;;  %s4190_s3 = inlined_call_operand.hbm [shape: f32[80,64], index: 3, kind: input, shape index: {}]   ;;  %s4191_s4 = inlined_call_operand.hbm [shape: f32[64,64], index: 4, kind: output, shape index: {}]  }
   0x1   :  { %4209 = sst [smem:[#allocation27_spill]] %s4187_s0 }
   0x2   :  { %4210 = sst [smem:[#allocation28_spill]] %s4189_s2 }
   0x3   :  { %9 = vsyncpa [#allocation3], 0 }
   0x4   :  { %11 = vsyncpa [#allocation3 + $0x1], 0 }
   0x5   :  { %12 = vsyncpa [#allocation6], 0 }
   0x6   :  { %14 = vsyncpa [#allocation6 + $0x1], 0 }
   0x7   :  { %15 = vsyncpa [#allocation9], 0 }
   0x8   :  { %16 = vsyncpa [#allocation4], 0 }
   0x9   :  { %18 = vsyncpa [#allocation4 + $0x1], 0  ;;  %s3127_s15 = smov 0   ;;  %s3129_s16 = smov 0  }
   0xa   :  { %s3131_s17 = smov 0   ;;  %s3133_s18 = smov 0  }
   0xb LB: > { %s3148_s19 = sadd.s32 4294967295, %s3068_s18   ;;  %s2238_s20 = sadd.s32 4294967294, %s3068_s18   ;;  %s3068_s18 = sphi %s3133_s18, %s4258_s18   ;;  %s3064_s17 = sphi %s3131_s17, %s4257_s17   ;;  %s3060_s16 = sphi %s3129_s16, %s4256_s16   ;;  %s3056_s15 = sphi %s3127_s15, %s4255_s15  }
   0xc   : > { %p44_p0 = scmp.ne.s32.totalorder %s3060_s16, %s3056_s15  ;;  %p4192_p1 = scmp.eq.s32.totalorder %s3148_s19, 0 }
   0xd   : > { %p142_p3 = scmp.eq.s32.totalorder %s2238_s20, 1  ;;  %p2239_p5 = scmp.ge.s32.totalorder %s3068_s18, 1 }
   0xe   : > { %p3157_p4 = por %p4192_p1, %p44_p0  ;;  %p149_p7 = scmp.lt.s32.totalorder %s3068_s18, 3 }
   0xf   : > { %p3162_p6 = por %p142_p3, %p44_p0  ;;  %s3070_s24 = smov [#allocation7]  }
  0x10   : > { %s4211_s21 = scalar_select %p3157_p4, 1, 0 }
  0x11   : > { %s4212_s22 = scalar_select %p3162_p6, 1, 0 }
  0x12   : > { %p3167_p8 = pnand %p2239_p5, %p149_p7  ;;  %s161_s25 = sshll.u32 %s3070_s24, 4  ;;  %s3171_s25 = int_to_ptr.vmem [resolvable:$true] %s161_s25 }
  0x13   : > { %s3071_s27 = smov [#allocation8]   ;;  %s4215_s2 = sld [smem:[#allocation28_spill]] }
  0x14   : > { %p2620_p9 = pneg %p3167_p8  ;;  %s174_s28 = sshll.u32 %s3071_s27, 4  ;;  %s3182_s28 = int_to_ptr.vmem [resolvable:$true] %s174_s28 }
  0x16   : > { %p3178_p11 = pnand %p2620_p9, %p4192_p1 }
  0x18   : > { %p2876_p13 = pneg %p3178_p11 }
  0x19   : > { %s2874_s5 = scalar_lea.hbm %s4215_s2, 1024 }
  0x1a   : > { %p2875_p12 = scmp.ne.s32.totalorder %s4215_s2, %s2874_s5  ;;  %p2881_p5 = scmp.lt.u32.totalorder %s2874_s5, %s4215_s2 }
  0x1c   : > { %p2877_p0 = pnand %p2876_p13, %p2875_p12 }
  0x1e   : > { %p2878_p3 = pneg %p2877_p0 }
  0x20   : > { %p2883_p7 = pnand %p2881_p5, %p2878_p3 }
  0x22   : > { %2886 = shalt.err (!%p2883_p7)
}
  0x23   : > { %s2887_s10 = scalar_lea.vmem %s3171_s25, 1024  ;;  %p2895_p2 = scmp.lt.s32.totalorder %s3171_s25, %s3171_s25 }
  0x24   : > { %p2888_p9 = scmp.ne.s32.totalorder %s3171_s25, %s2887_s10  ;;  %p2896_p12 = scmp.lt.s32.totalorder %s2887_s10, %s2887_s10 }
  0x26   : > { %p2890_p10 = pnand %p2888_p9, %p2876_p13  ;;  %p2897_p0 = por %p2896_p12, %p2895_p2 }
  0x28   : > { %p2891_p1 = pneg %p2890_p10 }
  0x2a   : > { %p2898_p6 = pnand %p2897_p0, %p2891_p1 }
  0x2c   : > { %2901 = shalt.err (!%p2898_p6)
}
  0x2d   : > { %s4195_s11 = smov 128   ;;  %s4196_s12 = smov 8  }
  0x2e   : > { %2623 = dma.hbm_to_vmem [thread:$0]  (!%p3178_p11), %s4215_s2, 1024, %s3171_s25, [#allocation6], %s4195_s11, %s4195_s11, %s4196_s12  }
  0x2f   : > { %s2902_s27 = scalar_lea.hbm %s4190_s3, 1280 }
  0x30   : > { %p2903_p1 = scmp.ne.s32.totalorder %s4190_s3, %s2902_s27  ;;  %p2909_p10 = scmp.lt.u32.totalorder %s2902_s27, %s4190_s3 }
  0x32   : > { %p2905_p2 = pnand %p2903_p1, %p2876_p13 }
  0x34   : > { %p2906_p6 = pneg %p2905_p2 }
  0x36   : > { %p2911_p3 = pnand %p2909_p10, %p2906_p6 }
  0x38   : > { %2914 = shalt.err (!%p2911_p3)
}
  0x39   : > { %s2915_s25 = scalar_lea.vmem %s3182_s28, 1280  ;;  %p2923_p12 = scmp.lt.s32.totalorder %s3182_s28, %s3182_s28 }
  0x3a   : > { %p2916_p5 = scmp.ne.s32.totalorder %s3182_s28, %s2915_s25  ;;  %p2924_p0 = scmp.lt.s32.totalorder %s2915_s25, %s2915_s25 }
  0x3c   : > { %p2918_p7 = pnand %p2916_p5, %p2876_p13  ;;  %p2925_p1 = por %p2924_p0, %p2923_p12 }
  0x3e   : > { %p2919_p9 = pneg %p2918_p7 }
  0x40   : > { %p2926_p2 = pnand %p2925_p1, %p2919_p9 }
  0x42   : > { %2929 = shalt.err (!%p2926_p2)
}
  0x43   : > { %2626 = dma.hbm_to_vmem [thread:$0]  (!%p3178_p11), %s4190_s3, 1280, %s3182_s28, [#allocation9], %s4195_s11, %s4195_s11, %s4196_s12  }
  0x44   : > { %s3243_s26 = sadd.s32 1, %s3068_s18   ;;  %s31_s9 = sadd.s32 1, %s3064_s17 }
  0x45   : > { %s28_s10 = ssub.s32 %s3068_s18, %s3243_s26  ;;  %p38_p13 = scmp.ne.s32.totalorder %s3064_s17, %s3060_s16 }
  0x46   : > { %p29_p6 = scmp.eq.s32.totalorder %s28_s10, 0  ;;  %p39_p10 = scmp.eq.s32.totalorder %s3068_s18, 0 }
  0x47   : > { %p4216_p3 = scmp.eq.s32.totalorder %s3148_s19, 1  ;;  %p2640_p7 = scmp.lt.s32.totalorder %s3068_s18, 2 }
  0x48   : > { %s3259_s14 = scalar_select %p29_p6, %s3064_s17, %s31_s9  }
  0x49   : > { %p3253_p5 = por %p4216_p3, %p38_p13  ;;  %p40_p9 = por %p39_p10, %p38_p13 }
  0x4a   : > { %s3262_s20 = sand.u32 1, %s3064_s17   ;;  %s2306_s24 = sshll.u32 %s3068_s18, 8 }
  0x4b   : > { %s4217_s13 = scalar_select %p3253_p5, 1, 0 }
  0x4c   : > { %s2243_s28 = sshll.u32 %s3262_s20, 4  ;;  %s4218_s0 = sld [smem:[#allocation27_spill]] }
  0x4d   : > { %s192_s5 = scalar_lea.vmem [#allocation2], %s2243_s28  ;;  %p3273_p11 = pnand %p2640_p7, %p40_p9 }
  0x4e   : > { %s199_s6 = sshll.u32 %s192_s5, 4  ;;  %s209_s7 = sand.u32 1, %s3068_s18   ;;  %s3271_s6 = int_to_ptr.vmem [resolvable:$true] %s199_s6 }
  0x4f   : > { %s189_s8 = scalar_lea.sflag [#allocation3], %s3262_s20  ;;  %p2932_p0 = pneg %p3273_p11 }
  0x52   : > { %s3269_s30 = scalar_lea.hbm %s4218_s0, %s2306_s24  ;;  %s2935_s24 = scalar_lea.hbm %s4218_s0, 512 }
  0x53   : > { %s2930_s9 = scalar_lea.hbm %s3269_s30, 256  ;;  %p2936_p13 = scmp.lt.u32.totalorder %s3269_s30, %s4218_s0 }
  0x54   : > { %p2931_p12 = scmp.ne.s32.totalorder %s3269_s30, %s2930_s9  ;;  %p2937_p6 = scmp.lt.u32.totalorder %s2935_s24, %s2930_s9 }
  0x55   : > { %p2939_p3 = scmp.lt.u32.totalorder %s2930_s9, %s3269_s30 }
  0x56   : > { %p2933_p1 = pnand %p2932_p0, %p2931_p12  ;;  %p2938_p10 = por %p2937_p6, %p2936_p13 }
  0x58   : > { %p2934_p2 = pneg %p2933_p1  ;;  %p2940_p7 = por %p2939_p3, %p2938_p10 }
  0x5a   : > { %p2941_p9 = pnand %p2940_p7, %p2934_p2 }
  0x5c   : > { %2944 = shalt.err (!%p2941_p9)
}
  0x5d   : > { %s2945_s5 = scalar_lea.vmem %s3271_s6, 256  ;;  %s3074_s10 = smov [#allocation2]  }
  0x5e   : > { %p2946_p12 = scmp.ne.s32.totalorder %s3271_s6, %s2945_s5  ;;  %s2950_s28 = sshll.u32 %s3074_s10, 4  ;;  %s2951_s28 = int_to_ptr.vmem [resolvable:$false] %s2950_s28 }
  0x5f   : > { %s2952_s27 = scalar_lea.vmem %s2951_s28, 512  ;;  %p2953_p4 = scmp.lt.s32.totalorder %s3271_s6, %s2951_s28 }
  0x60   : > { %p2948_p1 = pnand %p2946_p12, %p2932_p0  ;;  %p2954_p13 = scmp.lt.s32.totalorder %s2952_s27, %s2945_s5 }
  0x62   : > { %p2949_p5 = pneg %p2948_p1  ;;  %p2955_p6 = por %p2954_p13, %p2953_p4 }
  0x64   : > { %p2956_p10 = pnand %p2955_p6, %p2949_p5 }
  0x66   : > { %2959 = shalt.err (!%p2956_p10)
}
  0x67   : > { %s3075_s9 = smov 64   ;;  %s3076_s24 = smov 4  }
  0x68   : > { %2630 = dma.hbm_to_vmem [thread:$0]  (!%p3273_p11), %s3269_s30, 256, %s3271_s6, %s189_s8, %s3075_s9, %s3075_s9, %s3076_s24  }
  0x69   : > { %s2246_s29 = sshll.u32 %s3262_s20, 5  ;;  %s2307_s10 = sshll.u32 %s3068_s18, 9 }
  0x6a   : > { %s3311_s27 = scalar_lea.hbm %s4188_s1, %s2307_s10  ;;  %s213_s11 = scalar_lea.vmem [#allocation5], %s2246_s29 }
  0x6b   : > { %s220_s12 = sshll.u32 %s213_s11, 4  ;;  %s3317_s0 = scalar_lea.sflag [#allocation6], %s209_s7  ;;  %s3313_s12 = int_to_ptr.vmem [resolvable:$true] %s220_s12 }
  0x6c   : > { %s2960_s2 = scalar_lea.hbm %s3311_s27, 512  ;;  %s2965_s6 = scalar_lea.hbm %s4188_s1, 1024 }
  0x6d   : > { %p2961_p4 = scmp.ne.s32.totalorder %s3311_s27, %s2960_s2  ;;  %p2966_p3 = scmp.lt.u32.totalorder %s3311_s27, %s4188_s1 }
  0x6e   : > { %p2967_p7 = scmp.lt.u32.totalorder %s2965_s6, %s2960_s2  ;;  %p2969_p12 = scmp.lt.u32.totalorder %s2960_s2, %s3311_s27 }
  0x6f   : > { %p2963_p5 = pnand %p2961_p4, %p2932_p0 }
  0x70   : > { %p2968_p9 = por %p2967_p7, %p2966_p3 }
  0x71   : > { %p2964_p2 = pneg %p2963_p5 }
  0x72   : > { %p2970_p1 = por %p2969_p12, %p2968_p9 }
  0x74   : > { %p2971_p13 = pnand %p2970_p1, %p2964_p2 }
  0x76   : > { %2974 = shalt.err (!%p2971_p13)
}
  0x77   : > { %s2975_s11 = scalar_lea.vmem %s3313_s12, 512  ;;  %s3077_s7 = smov [#allocation5]  }
  0x78   : > { %p2976_p6 = scmp.ne.s32.totalorder %s3313_s12, %s2975_s11  ;;  %s2980_s24 = sshll.u32 %s3077_s7, 4  ;;  %s2981_s24 = int_to_ptr.vmem [resolvable:$false] %s2980_s24 }
  0x79   : > { %s2982_s29 = scalar_lea.vmem %s2981_s24, 1024  ;;  %p2983_p5 = scmp.lt.s32.totalorder %s3313_s12, %s2981_s24 }
  0x7a   : > { %p2978_p10 = pnand %p2976_p6, %p2932_p0  ;;  %p2984_p3 = scmp.lt.s32.totalorder %s2982_s29, %s2975_s11 }
  0x7c   : > { %p2979_p4 = pneg %p2978_p10  ;;  %p2985_p7 = por %p2984_p3, %p2983_p5 }
  0x7e   : > { %p2986_p9 = pnand %p2985_p7, %p2979_p4 }
  0x80   : > { %2989 = shalt.err (!%p2986_p9)
}
  0x81   : > { %s4220_s2 = smov 8   ;;  %s4221_s10 = smov 128  }
  0x82   : > { %2633 = dma.hbm_to_vmem [thread:$0]  (!%p3273_p11), %s3311_s27, 512, %s3313_s12, %s3317_s0, %s4221_s10, %s4221_s10, %s4220_s2  }
  0x83   : > { %232 = sbr.rel (%p3167_p8) target bundleno = 1618 (0x652), region = 36 }
  0x8a   : > { %s3349_s28 = sand.u32 1, %s3060_s16   ;;  %p4222_p0 = scmp.ne.s32.totalorder %s4211_s21, 0 }
  0x8b   : > { %s2250_s5 = sshll.u32 %s3349_s28, 4  ;;  %s235_s20 = scalar_lea.sflag [#allocation3], %s3349_s28 }
  0x8c   : > { %s3353_s30 = scalar_lea.vmem [#allocation2], %s2250_s5 }
  0x8d   : > { %3035 = dma.done.wait (%p4222_p0), %s235_s20, 256  }
  0x8e   : > { %3037 = vsyncadd (%p4222_p0), %s235_s20, 4294967040  ;;  %s243_s0 = sand.u32 1, %s3148_s19   ;;  %s2251_s23 = sshll.u32 %s3349_s28, 5 }
  0x8f   : > { %s244_s12 = scalar_lea.sflag [#allocation6], %s243_s0  ;;  %s247_s25 = scalar_lea.vmem [#allocation5], %s2251_s23 }
  0x90   : > { %3039 = dma.done.wait (%p4222_p0), %s244_s12, 512  }
  0x91   : > { %3041 = vsyncadd (%p4222_p0), %s244_s12, 4294966784  ;;  %p4223_p8 = scmp.eq.s32.totalorder %s3148_s19, 0 }
  0x93   : > { %3043 = dma.done.wait (%p4223_p8), [#allocation6], 1024   ;;  %p4224_p11 = pmov %p4223_p8 }
  0x94   : > { %p4225_p2 = pmov %p4223_p8 }
  0x95   : > { %3045 = vsyncadd (%p4224_p11), [#allocation6], 4294966272 }
  0x96   : > { %3047 = dma.done.wait (%p4225_p2), [#allocation9], 1280   ;;  %p4226_p12 = pmov %p4225_p2 }
  0x97   : > { %v289_v0 = vld [vmem:[#allocation8] sm:$0xff]  ;;  %vm333_vm0 = vcmask 1043456   ;;  %vm320_vm1 = vcmask 64512   ;;  %v403_v2 = vld [vmem:[%s247_s25 + $0x8] sm:$0xff]  ;;  %v404_v5 = vld [vmem:[%s247_s25 + $0x10] sm:$0xff]  ;;  %vm463_vm2 = vcmask 523264  }
  0x98   : > { %3049 = vsyncadd (%p4226_p12), [#allocation9], 4294966016  ;;  %v402_v1 = vld [vmem:[%s247_s25] sm:$0xff]  ;;  %v290_v3 = vpack.c.bf16 %v289_v0, %v289_v0  ;;  %v405_v6 = vld [vmem:[%s247_s25 + $0x18] sm:$0xff]  ;;  %v3078_v34 = vmov 0   ;;  %v3079_v35 = vmov 6  }
  0x99   : > { %v406_v4 = vpack.c.bf16 %v403_v2, %v402_v1  ;;  %v308_v7 = vld [vmem:[#allocation7] sm:$0xff]  ;;  %v309_v8 = vld [vmem:[#allocation7 + $0x8] sm:$0xff]  ;;  %v310_v9 = vld [vmem:[#allocation7 + $0x10] sm:$0xff]  ;;  %v407_v12 = vpack.c.bf16 %v405_v6, %v404_v5  ;;  %2706 = vset.pattern.permute.xlu1 %v3078_v34  ;;  %s3080_s21 = smov 112   ;;  %s3081_s27 = smov 120   ;;  %vm2047_vm4 = vcmask 130048  }
  0x9a   : > { %v311_v10 = vld [vmem:[#allocation7 + $0x18] sm:$0xff]  ;;  %2605 = vmatprep.subr.msk.bf16.mxu1 %vm333_vm0, %v290_v3  ;;  %v335_v11 = vsel %vm333_vm0, %v290_v3, 0  ;;  %v316_v13 = vpack.c.bf16 %v309_v8, %v308_v7  ;;  %v312_v14 = vld [vmem:[#allocation7 + $0x20] sm:$0xff]  ;;  %v313_v15 = vld [vmem:[#allocation7 + $0x28] sm:$0xff]  ;;  %2604 = vmatprep.subr.msk.bf16.mxu0 %vm333_vm0, %v290_v3  ;;  %s3082_s6 = smov 96   ;;  %s3083_s8 = smov 104  }
  0x9b   : > { %2414 = vmatprep.mubr.msk.bf16.mxu1 %vm320_vm1, %v406_v4  ;;  %2413 = vmatpush3.bf16.msra.mxu1 %v335_v11  ;;  %v317_v16 = vpack.c.bf16 %v311_v10, %v310_v9  ;;  %v291_v17 = vld [vmem:[#allocation8 + $0x8] sm:$0xff]  ;;  %v292_v18 = vld [vmem:[#allocation8 + $0x10] sm:$0xff]  ;;  %v318_v19 = vpack.c.bf16 %v313_v15, %v312_v14  ;;  %v293_v21 = vld [vmem:[#allocation8 + $0x18] sm:$0xff]  ;;  %s3084_s9 = smov 88   ;;  %s3085_s11 = smov 72   ;;  %vm2052_vm5 = vcmask 195584  }
  0x9c   : > { %2403 = vmatpush3.bf16.msra.mxu0 %v335_v11  ;;  %2404 = vmatprep.mubr.msk.bf16.mxu0 %vm320_vm1, %v316_v13  ;;  %v2564_v20 = vpack.c.bf16 %v292_v18, %v291_v17  ;;  %v294_v22 = vld [vmem:[#allocation8 + $0x20] sm:$0xff]  ;;  %v295_v24 = vld [vmem:[#allocation8 + $0x28] sm:$0xff]  ;;  %v296_v25 = vld [vmem:[#allocation8 + $0x30] sm:$0xff]  ;;  %s3086_s7 = smov 80   ;;  %s3093_s24 = smov 16   ;;  %vm2057_vm6 = vcmask 261120  }
  0x9d   : > { %v2568_v23 = vpack.c.bf16 %v294_v22, %v293_v21  ;;  %561 = vxpose.xlu0.b32.start [1/8] (short) (narrow) %v291_v17, 64  ;;  %v314_v26 = vld [vmem:[#allocation7 + $0x30] sm:$0xff]  ;;  %v315_v27 = vld [vmem:[#allocation7 + $0x38] sm:$0xff]  ;;  %v2572_v28 = vpack.c.bf16 %v296_v25, %v295_v24  ;;  %v298_v30 = vld [vmem:[#allocation8 + $0x40] sm:$0xff]  ;;  %s3094_s29 = smov 8   ;;  %s3095_s2 = smov 32  }
  0x9e   : > { %2415 = vmatmul.mubr.msk.bf16.vlgmr.msra.gmra.mrb[0].mxu1 %vm320_vm1, %v407_v12  ;;  %2565 = vmatprep.subr.bf16.mxu0 %v2564_v20  ;;  %v297_v29 = vld [vmem:[#allocation8 + $0x38] sm:$0xff]  ;;  %v319_v31 = vpack.c.bf16 %v315_v27, %v314_v26  ;;  %vm3393_vm3 = vmpackc.low %vm463_vm2, %vm463_vm2  ;;  %s3096_s10 = smov 24   ;;  %s3097_s5 = smov 48   ;;  %vm2062_vm7 = vcmask 326656   ;;  %vm2072_vm8 = vcmask 457728   ;;  %vm2067_vm9 = vcmask 392192  }
  0x9f   : > { %2405 = vmatmul.mubr.msk.bf16.vlgmr.msra.gmra.mrb[0].mxu0 %vm320_vm1, %v317_v16  ;;  %v2576_v32 = vpack.c.bf16 %v298_v30, %v297_v29  ;;  %s3098_s20 = smov 40   ;;  %s284_s0 = scalar_lea.vmem [#allocation10], %s2251_s23 }
  0xa0   : > { %2408 = vmatprep.mubr.msk.bf16.mxu0 %vm320_vm1, %v318_v19  ;;  %2567 = vmatpush3.bf16.msra.mxu0 %v2564_v20  ;;  %v3088_v19 = vmov 1   ;;  %s2123_s12 = sshll.u32 %s284_s0, 4  ;;  %s2308_s25 = sshll.u32 %s3148_s19, 9  ;;  %s4135_s12 = int_to_ptr.vmem [resolvable:$true] %s2123_s12 }
  0xa1   : > { %2569 = vmatprep.subr.bf16.mxu0 %v2568_v23  ;;  %562 = vxpose.xlu0.b32.cont [2/8] (short) (narrow) %v292_v18, 64  ;;  %v3087_v18 = vmov 2   ;;  %s2110_s19 = scalar_lea.sflag [#allocation4], %s3349_s28  ;;  %p4252_p13 = scmp.ne.s32.totalorder %s4217_s13, 0 }
  0xa4   : > { %2571 = vmatpush3.bf16.msra.mxu0 %v2568_v23  ;;  %v3091_v23 = vmov 7  }
  0xa5   : > { %2573 = vmatprep.subr.bf16.mxu0 %v2572_v28  ;;  %563 = vxpose.xlu0.b32.cont [3/8] (short) (narrow) %v293_v21, 64  ;;  %v3089_v21 = vmov 5  }
  0xa7   : > { %2409 = vmatmul.mubr.msk.bf16.gmra.mrb[4].mxu0 %vm320_vm1, %v319_v31 }
  0xa8   : > { %2575 = vmatpush3.bf16.msra.mxu0 %v2572_v28 }
  0xa9   : > { %2577 = vmatprep.subr.bf16.mxu0 %v2576_v32  ;;  %564 = vxpose.xlu0.b32.cont [4/8] (short) (narrow) %v294_v22, 64  ;;  %v3090_v22 = vmov 3  }
  0xac   : > { %2579 = vmatpush3.bf16.msra.mxu0 %v2576_v32 }
  0xad   : > { %565 = vxpose.xlu0.b32.cont [5/8] (short) (narrow) %v295_v24, 64  ;;  %v3092_v24 = vmov 4  }
  0xb1   : > { %566 = vxpose.xlu0.b32.cont [6/8] (short) (narrow) %v296_v25, 64 }
  0xb5   : > { %567 = vxpose.xlu0.b32.cont [7/8] (short) (narrow) %v297_v29, 64 }
  0xb9   : > { %568 = vxpose.xlu0.b32.end [8/8] (short) (narrow) %v298_v30, 64 }
  0xe2   : > { %2712 = vset.pattern.permute.xlu0 %v3079_v35 }
 0x11d   : > { %v577_v33 = vpop.trf.xlu0 }
 0x11e   : > { %2456 = vmatprep.mubr.msk.f32.mxu1 %vm463_vm2, %v577_v33 }
 0x121   : > { %v578_v53 = vpop.trf.xlu0 }
 0x125   : > { %v579_v54 = vpop.trf.xlu0 }
 0x129   : > { %v580_v55 = vpop.trf.xlu0 }
 0x12d   : > { %v581_v56 = vpop.trf.xlu0 }
 0x131   : > { %v582_v57 = vpop.trf.xlu0 }
 0x135   : > { %v583_v58 = vpop.trf.xlu0 }
 0x139   : > { %v584_v59 = vpop.trf.xlu0 }
 0x171   : > { %v2416_v36 = vpop.f32.mrb[0].mxu1 }
 0x172   : > { %v448_v37 = vpop.f32.mrb[1].mxu1  ;;  %v2406_v38 = vpop.f32.mrb[0].mxu0 }
 0x173   : > { %v2417_v39 = vpop.f32.mrb[2].mxu1  ;;  %2434 = vmatprep.mubr.msk.f32.mxu0 %vm463_vm2, %v448_v37  ;;  %v371_v40 = vpop.f32.mrb[1].mxu0 }
 0x174   : > { %v451_v41 = vpop.f32.mrb[3].mxu1  ;;  %v2407_v42 = vpop.f32.mrb[2].mxu0 }
 0x175   : > { %2435 = vmatmul.mubr.msk.f32.vlgmr.msra.gmra.mrb[8].mxu0 %vm463_vm2, %v451_v41  ;;  %v3389_v43 = vpack.c.bf16 %v2407_v42, %v2406_v38  ;;  %v374_v44 = vpop.f32.mrb[3].mxu0 }
 0x176   : > { %2437 = vmatprep.mubr.msk.f32.mxu0 %vm463_vm2, %v2416_v36  ;;  %v2580_v46 = vpack.c.bf16 %v374_v44, %v371_v40  ;;  %v3545_v44 = vld [vmem:[%s3353_s30] sm:$0xff]  }
 0x177   : > { %1121 = vrot.lane.b32.xlu1 %v3389_v43, %s3080_s21  ;;  %972 = vrot.lane.b32.xlu0 %v3389_v43, %s3081_s27 }
 0x178   : > { %2582 = vmatprep.subr.msk.bf16.mxu1 %vm3393_vm3, %v2580_v46  ;;  %2468 = vmatprep.subr.bf16.mxu0 %v2580_v46 }
 0x179   : > { %2438 = vmatmul.mubr.msk.f32.gmra.mrb[10].mxu0 %vm463_vm2, %v2417_v39  ;;  %2585 = vmatpush3.bf16.xpose.msk.msra.mxu1 %vm3393_vm3, %v2580_v46 }
 0x17a   : > { %2588 = vmatprep.subr.msk.bf16.mxu1 %vm3393_vm3, %v3389_v43  ;;  %v2410_v47 = vpop.f32.mrb[4].mxu0  ;;  %2469 = vmatpush3.bf16.msra.mxu0 %v2580_v46 }
 0x17b   : > { %1419 = vrot.lane.b32.xlu1 %v3389_v43, %s3082_s6  ;;  %v387_v48 = vpop.f32.mrb[5].mxu0  ;;  %1270 = vrot.lane.b32.xlu0 %v3389_v43, %s3083_s8 }
 0x17c   : > { %v2411_v49 = vpop.f32.mrb[6].mxu0  ;;  %2470 = vmatprep.subr.bf16.mxu0 %v3389_v43 }
 0x17d   : > { %v3415_v50 = vpack.c.bf16 %v2411_v49, %v2410_v47  ;;  %v390_v51 = vpop.f32.mrb[7].mxu0  ;;  %v3552_v47 = vunpack.c.h.bf16 %v3545_v44 }
 0x17e   : > { %v3417_v52 = vpack.c.bf16 %v390_v51, %v387_v48  ;;  %2471 = vmatpush3.bf16.msra.mxu0 %v3389_v43 }
 0x17f   : > { %970 = vrot.lane.b32.xlu1 %v2580_v46, %s3081_s27  ;;  %1568 = vrot.lane.b32.xlu0 %v3389_v43, %s3084_s9 }
 0x180   : > { %2472 = vmatprep.subr.bf16.mxu0 %v3417_v52 }
 0x181   : > { %2591 = vmatpush3.bf16.xpose.msk.msra.mxu1 %vm3393_vm3, %v3389_v43 }
 0x182   : > { %2594 = vmatprep.subr.msk.bf16.mxu1 %vm3393_vm3, %v3417_v52  ;;  %2473 = vmatpush3.bf16.msra.mxu0 %v3417_v52 }
 0x183   : > { %1268 = vrot.lane.b32.xlu1 %v2580_v46, %s3083_s8  ;;  %1119 = vrot.lane.b32.xlu0 %v2580_v46, %s3080_s21 }
 0x184   : > { %2474 = vmatprep.subr.bf16.mxu0 %v3415_v50 }
 0x186   : > { %2475 = vmatpush3.bf16.msra.mxu0 %v3415_v50 }
 0x187   : > { %1417 = vrot.lane.b32.xlu1 %v2580_v46, %s3082_s6  ;;  %1864 = vrot.lane.b32.xlu0 %v2580_v46, %s3085_s11 }
 0x189   : > { %2597 = vmatpush3.bf16.xpose.msk.msra.mxu1 %vm3393_vm3, %v3417_v52 }
 0x18a   : > { %2600 = vmatprep.subr.msk.bf16.mxu1 %vm3393_vm3, %v3415_v50 }
 0x18b   : > { %1566 = vrot.lane.b32.xlu1 %v2580_v46, %s3084_s9  ;;  %1125 = vrot.lane.b32.xlu0 %v3415_v50, %s3080_s21 }
 0x18f   : > { %1715 = vrot.lane.b32.xlu1 %v2580_v46, %s3086_s7 }
 0x191   : > { %2603 = vmatpush3.bf16.xpose.msk.msra.mxu1 %vm3393_vm3, %v3415_v50 }
 0x193   : > { %976 = vrot.lane.b32.xlu1 %v3415_v50, %s3081_s27 }
 0x197   : > { %1274 = vrot.lane.b32.xlu1 %v3415_v50, %s3083_s8 }
 0x198   : > { %2457 = vmatmul.mubr.msk.f32.vlgmr.msra.gmra.mrb[4].mxu1 %vm463_vm2, %v578_v53 }
 0x199   : > { %2459 = vmatprep.mubr.msk.f32.mxu1 %vm463_vm2, %v579_v54 }
 0x19b   : > { %1423 = vrot.lane.b32.xlu1 %v3415_v50, %s3082_s6 }
 0x19c   : > { %2460 = vmatmul.mubr.msk.f32.gmra.mrb[6].mxu1 %vm463_vm2, %v580_v55 }
 0x19d   : > { %2462 = vmatprep.mubr.msk.f32.mxu1 %vm463_vm2, %v581_v56 }
 0x19f   : > { %1572 = vrot.lane.b32.xlu1 %v3415_v50, %s3084_s9 }
 0x1a0   : > { %2463 = vmatmul.mubr.msk.f32.gmra.mrb[8].mxu1 %vm463_vm2, %v582_v57 }
 0x1a1   : > { %2465 = vmatprep.mubr.msk.f32.mxu1 %vm463_vm2, %v583_v58 }
 0x1a3   : > { %974 = vrot.lane.b32.xlu1 %v3417_v52, %s3081_s27  ;;  %s4141_s27 = scalar_lea.hbm %s4191_s4, %s2308_s25 }
 0x1a4   : > { %2466 = vmatmul.mubr.msk.f32.gmra.mrb[10].mxu1 %vm463_vm2, %v584_v59 }
 0x1a7   : > { %1123 = vrot.lane.b32.xlu1 %v3417_v52, %s3080_s21 }
 0x1ab   : > { %1272 = vrot.lane.b32.xlu1 %v3417_v52, %s3083_s8  ;;  %s3100_s8 = smov [#allocation10]  }
 0x1af   : > { %1421 = vrot.lane.b32.xlu1 %v3417_v52, %s3082_s6  ;;  %s2990_s6 = scalar_lea.vmem %s4135_s12, 512 }
 0x1b0   : > { %p2991_p1 = scmp.ne.s32.totalorder %s4135_s12, %s2990_s6 }
 0x1b2   : > { %p2992_p6 = pnand %p2991_p1, %p4252_p13 }
 0x1b3   : > { %1570 = vrot.lane.b32.xlu1 %v3417_v52, %s3084_s9  ;;  %s2994_s9 = sshll.u32 %s3100_s8, 4  ;;  %s2995_s9 = int_to_ptr.vmem [resolvable:$false] %s2994_s9 }
 0x1b4   : > { %p2993_p10 = pneg %p2992_p6  ;;  %p2997_p4 = scmp.lt.s32.totalorder %s4135_s12, %s2995_s9 }
 0x1e9   : > { %v1122_v60 = vpop.permute.xlu1 %1121  ;;  %v3475_v61 = vpop.permute.xlu0 %972 }
 0x1ed   : > { %v3477_v62 = vpop.permute.xlu1 %1419  ;;  %v3479_v63 = vpop.permute.xlu0 %1270 }
 0x1f1   : > { %v3481_v0 = vpop.permute.xlu1 %970  ;;  %v3483_v1 = vpop.permute.xlu0 %1568 }
 0x1f2   : > { %4229 = vst [vmem:[#allocation16_spill] sm:$0xff] %v3483_v1  ;;  %2480 = vmatprep.subr.bf16.mxu0 %v3481_v0 }
 0x1f5   : > { %v3486_v2 = vpop.permute.xlu1 %1268  ;;  %v1120_v3 = vpop.permute.xlu0 %1119 }
 0x1f6   : > { %2492 = vmatprep.subr.bf16.mxu1 %v1120_v3 }
 0x1f7   : > { %2493 = vmatpush3.bf16.msra.mxu1 %v1120_v3 }
 0x1f8   : > { %2494 = vmatprep.subr.bf16.mxu1 %v1122_v60 }
 0x1f9   : > { %v3488_v4 = vpop.permute.xlu1 %1417  ;;  %v3502_v11 = vpop.permute.xlu0 %1864 }
 0x1fa   : > { %4233 = vst [vmem:[#allocation20_spill] sm:$0xff] %v3502_v11 }
 0x1fb   : > { %2495 = vmatpush3.bf16.msra.mxu1 %v1122_v60 }
 0x1fd   : > { %v3490_v5 = vpop.permute.xlu1 %1566  ;;  %v1126_v14 = vpop.permute.xlu0 %1125 }
 0x201   : > { %v3492_v6 = vpop.permute.xlu1 %1715 }
 0x202   : > { %4230 = vst [vmem:[#allocation17_spill] sm:$0xff] %v3492_v6 }
 0x205   : > { %v3494_v7 = vpop.permute.xlu1 %976 }
 0x209   : > { %v3496_v8 = vpop.permute.xlu1 %1274 }
 0x20d   : > { %v3498_v9 = vpop.permute.xlu1 %1423 }
 0x20e   : > { %4231 = vst [vmem:[#allocation18_spill] sm:$0xff] %v3498_v9 }
 0x211   : > { %v3500_v10 = vpop.permute.xlu1 %1572 }
 0x212   : > { %4232 = vst [vmem:[#allocation19_spill] sm:$0xff] %v3500_v10 }
 0x215   : > { %v3504_v12 = vpop.permute.xlu1 %974 }
 0x219   : > { %v1124_v13 = vpop.permute.xlu1 %1123 }
 0x21a   : > { %2496 = vmatprep.subr.bf16.mxu1 %v1124_v13 }
 0x21b   : > { %2497 = vmatpush3.bf16.msra.mxu1 %v1124_v13 }
 0x21c   : > { %2498 = vmatprep.subr.bf16.mxu1 %v1126_v14 }
 0x21d   : > { %v3524_v33 = vpop.permute.xlu1 %1272 }
 0x21f   : > { %2499 = vmatpush3.bf16.msra.mxu1 %v1126_v14 }
 0x220   : > { %2516 = vmatprep.subr.bf16.mxu1 %v3488_v4 }
 0x221   : > { %v3529_v37 = vpop.permute.xlu1 %1421 }
 0x225   : > { %v3534_v39 = vpop.permute.xlu1 %1570 }
 0x226   : > { %4235 = vst [vmem:[#allocation22_spill] sm:$0xff] %v3534_v39 }
 0x248   : > { %v2436_v15 = vpop.f32.mrb[8].mxu0 }
 0x249   : > { %1638 = vperm.xlu0 %2712, %v2436_v15   ;;  %750 = vperm.xlu1 %2706, %v2436_v15   ;;  %v542_v16 = vpop.f32.mrb[9].mxu0 }
 0x24c   : > { %v2439_v17 = vpop.f32.mrb[10].mxu0 }
 0x24d   : > { %2716 = vset.pattern.permute.xlu0 %v3087_v18  ;;  %2707 = vset.pattern.permute.xlu1 %v3088_v19  ;;  %v3507_v20 = vpop.f32.mrb[11].mxu0 }
 0x24e   : > { %889 = vperm.xlu1 %2707, %v2436_v15   ;;  %1038 = vperm.xlu0 %2716, %v542_v16  }
 0x252   : > { %2708 = vset.pattern.permute.xlu1 %v3087_v18  ;;  %2719 = vset.pattern.permute.xlu0 %v3089_v21 }
 0x253   : > { %1042 = vperm.xlu1 %2708, %v2436_v15   ;;  %1485 = vperm.xlu0 %2719, %v542_v16  }
 0x257   : > { %2709 = vset.pattern.permute.xlu1 %v3090_v22  ;;  %2721 = vset.pattern.permute.xlu0 %v3091_v23 }
 0x258   : > { %1191 = vperm.xlu1 %2709, %v2436_v15   ;;  %1783 = vperm.xlu0 %2721, %v542_v16  }
 0x25c   : > { %2710 = vset.pattern.permute.xlu1 %v3092_v24  ;;  %2727 = vset.pattern.permute.xlu0 %v3089_v21 }
 0x25d   : > { %1340 = vperm.xlu1 %2710, %v2436_v15   ;;  %1497 = vperm.xlu0 %2727, %v2439_v17  }
 0x261   : > { %2711 = vset.pattern.permute.xlu1 %v3089_v21  ;;  %2729 = vset.pattern.permute.xlu0 %v3091_v23 }
 0x262   : > { %1489 = vperm.xlu1 %2711, %v2436_v15   ;;  %1795 = vperm.xlu0 %2729, %v2439_v17  }
 0x266   : > { %2713 = vset.pattern.permute.xlu1 %v3091_v23 }
 0x267   : > { %1787 = vperm.xlu1 %2713, %v2436_v15  }
 0x26b   : > { %2714 = vset.pattern.permute.xlu1 %v3078_v34  ;;  %v3513_v25 = vpop.f32.mrb[4].mxu1 }
 0x26c   : > { %745 = vperm.xlu1 %2714, %v542_v16   ;;  %v707_v26 = vpop.f32.mrb[5].mxu1 }
 0x26f   : > { %v2461_v27 = vpop.f32.mrb[6].mxu1 }
 0x270   : > { %2715 = vset.pattern.permute.xlu1 %v3088_v19  ;;  %v716_v28 = vpop.f32.mrb[7].mxu1 }
 0x271   : > { %885 = vperm.xlu1 %2715, %v542_v16  }
 0x273   : > { %v2464_v29 = vpop.f32.mrb[8].mxu1 }
 0x274   : > { %v724_v30 = vpop.f32.mrb[9].mxu1 }
 0x275   : > { %2717 = vset.pattern.permute.xlu1 %v3090_v22 }
 0x276   : > { %1187 = vperm.xlu1 %2717, %v542_v16  }
 0x277   : > { %v2467_v31 = vpop.f32.mrb[10].mxu1 }
 0x278   : > { %v732_v32 = vpop.f32.mrb[11].mxu1 }
 0x27a   : > { %2718 = vset.pattern.permute.xlu1 %v3092_v24 }
 0x27b   : > { %1336 = vperm.xlu1 %2718, %v542_v16  }
 0x27f   : > { %2720 = vset.pattern.permute.xlu1 %v3079_v35 }
 0x280   : > { %1634 = vperm.xlu1 %2720, %v542_v16  }
 0x284   : > { %2722 = vset.pattern.permute.xlu1 %v3078_v34 }
 0x285   : > { %760 = vperm.xlu1 %2722, %v2439_v17  }
 0x289   : > { %2723 = vset.pattern.permute.xlu1 %v3088_v19 }
 0x28a   : > { %897 = vperm.xlu1 %2723, %v2439_v17  }
 0x28e   : > { %2724 = vset.pattern.permute.xlu1 %v3087_v18 }
 0x28f   : > { %1050 = vperm.xlu1 %2724, %v2439_v17  }
 0x293   : > { %2725 = vset.pattern.permute.xlu1 %v3090_v22 }
 0x294   : > { %1199 = vperm.xlu1 %2725, %v2439_v17  }
 0x298   : > { %2726 = vset.pattern.permute.xlu1 %v3092_v24 }
 0x299   : > { %1348 = vperm.xlu1 %2726, %v2439_v17  }
 0x29d   : > { %2728 = vset.pattern.permute.xlu1 %v3079_v35 }
 0x29e   : > { %1646 = vperm.xlu1 %2728, %v2439_v17  }
 0x2a2   : > { %2730 = vset.pattern.permute.xlu1 %v3078_v34  ;;  %v763_v34 = vlaneseq }
 0x2a3   : > { %755 = vperm.xlu1 %2730, %v3507_v20  }
 0x2a4   : > { %v3527_v36 = vshrl.u32 %v763_v34, 7 }
 0x2a6   : > { %4234 = vst [vmem:[#allocation21_spill] sm:$0xff] %v3527_v36  ;;  %v4197_v38 = vsub.s32 0, %v3527_v36  ;;  %v902_v41 = vsub.s32 1, %v3527_v36  ;;  %v1055_v51 = vsub.s32 2, %v3527_v36  ;;  %v1204_v56 = vsub.s32 3, %v3527_v36 }
 0x2a7   : > { %2731 = vset.pattern.permute.xlu1 %v3088_v19  ;;  %v1353_v16 = vsub.s32 4, %v3527_v36  ;;  %v1651_v17 = vsub.s32 6, %v3527_v36  ;;  %v1502_v29 = vsub.s32 5, %v3527_v36 }
 0x2a8   : > { %893 = vperm.xlu1 %2731, %v3507_v20   ;;  %v3540_v40 = vrot.slane %v3513_v25, %v4197_v38  ;;  %v3549_v45 = vrot.slane %v3513_v25, %v902_v41  ;;  %v3561_v57 = vrot.slane %v3513_v25, %v1055_v51  ;;  %v3567_v13 = vrot.slane %v3513_v25, %v1204_v56 }
 0x2ac   : > { %2732 = vset.pattern.permute.xlu1 %v3087_v18 }
 0x2ad   : > { %1046 = vperm.xlu1 %2732, %v3507_v20  }
 0x2b1   : > { %2733 = vset.pattern.permute.xlu1 %v3090_v22  ;;  %v3578_v22 = vrot.slane %v3513_v25, %v1353_v16 }
 0x2b2   : > { %1195 = vperm.xlu1 %2733, %v3507_v20  }
 0x2b6   : > { %2734 = vset.pattern.permute.xlu1 %v3092_v24  ;;  %v3584_v24 = vrot.slane %v3513_v25, %v1651_v17 }
 0x2b7   : > { %1344 = vperm.xlu1 %2734, %v3507_v20  }
 0x2bb   : > { %2735 = vset.pattern.permute.xlu1 %v3089_v21 }
 0x2bc   : > { %1493 = vperm.xlu1 %2735, %v3507_v20  }
 0x2c0   : > { %2736 = vset.pattern.permute.xlu1 %v3079_v35 }
 0x2c1   : > { %1642 = vperm.xlu1 %2736, %v3507_v20  }
 0x2c5   : > { %2737 = vset.pattern.permute.xlu1 %v3091_v23 }
 0x2c6   : > { %1791 = vperm.xlu1 %2737, %v3507_v20  }
 0x2c8   : > { %v751_v42 = vpop.permute.xlu1 %750  ;;  %v1639_v27 = vpop.permute.xlu0 %1638 }
 0x2c9   : > { %v768_v35 = vadd.f32 %v3540_v40, %v751_v42  ;;  %v1654_v34 = vadd.f32 %v3584_v24, %v1639_v27 }
 0x2cb   : > { %v772_v46 = vmul.f32 0.2, %v768_v35 }
 0x2cd   : > { %v776_v48 = vmax.f32 %v768_v35, %v772_v46  ;;  %v890_v49 = vpop.permute.xlu1 %889  ;;  %v3595_v35 = vrot.slane %v3513_v25, %v1502_v29 }
 0x2ce   : > { %v905_v53 = vadd.f32 %v3549_v45, %v890_v49 }
 0x2cf   : > { %v3557_v54 = vadd.f32 %v3552_v47, %v776_v48  ;;  %v1800_v48 = vsub.s32 7, %v3527_v36 }
 0x2d0   : > { %v909_v55 = vmul.f32 0.2, %v905_v53 }
 0x2d1   : > { %v786_v58 = vsel %vm463_vm2, %v3557_v54, -inf }
 0x2d2   : > { %v913_v59 = vmax.f32 %v905_v53, %v909_v55  ;;  %v1043_v60 = vpop.permute.xlu1 %1042  ;;  %787 = vmax.xlane.f32.xlu0 %v786_v58  ;;  %v1658_v53 = vmul.f32 0.2, %v1654_v34 }
 0x2d3   : > { %v1058_v3 = vadd.f32 %v3561_v57, %v1043_v60 }
 0x2d4   : > { %v3570_v14 = vadd.f32 %v3552_v47, %v913_v59  ;;  %v3605_v59 = vrot.slane %v3513_v25, %v1800_v48 }
 0x2d5   : > { %v1062_v15 = vmul.f32 0.2, %v1058_v3 }
 0x2d6   : > { %v923_v18 = vsel %vm463_vm2, %v3570_v14, -inf }
 0x2d7   : > { %v1066_v19 = vmax.f32 %v1058_v3, %v1062_v15  ;;  %v1192_v20 = vpop.permute.xlu1 %1191  ;;  %924 = vmax.xlane.f32.xlu0 %v923_v18  ;;  %v1662_v3 = vmax.f32 %v1654_v34, %v1658_v53 }
 0x2d8   : > { %v1207_v21 = vadd.f32 %v3567_v13, %v1192_v20  ;;  %v1039_v20 = vpop.permute.xlu0 %1038 }
 0x2d9   : > { %v3581_v23 = vadd.f32 %v3552_v47, %v1066_v19  ;;  %v3616_v25 = vadd.f32 %v3552_v47, %v1662_v3  ;;  %v1057_v29 = vadd.f32 %v3561_v57, %v1039_v20 }
 0x2da   : > { %v1211_v26 = vmul.f32 0.2, %v1207_v21 }
 0x2db   : > { %v1076_v28 = vsel %vm463_vm2, %v3581_v23, -inf  ;;  %v1061_v48 = vmul.f32 0.2, %v1057_v29 }
 0x2dc   : > { %v1215_v30 = vmax.f32 %v1207_v21, %v1211_v26  ;;  %v1341_v31 = vpop.permute.xlu1 %1340  ;;  %1077 = vmax.xlane.f32.xlu0 %v1076_v28 }
 0x2dd   : > { %v1356_v32 = vadd.f32 %v3578_v22, %v1341_v31  ;;  %v1672_v31 = vsel %vm463_vm2, %v3616_v25, -inf }
 0x2de   : > { %v3592_v41 = vadd.f32 %v3552_v47, %v1215_v30 }
 0x2df   : > { %v1360_v42 = vmul.f32 0.2, %v1356_v32 }
 0x2e0   : > { %v1225_v46 = vsel %vm463_vm2, %v3592_v41, -inf }
 0x2e1   : > { %v1364_v49 = vmax.f32 %v1356_v32, %v1360_v42  ;;  %v1490_v51 = vpop.permute.xlu1 %1489  ;;  %1226 = vmax.xlane.f32.xlu0 %v1225_v46  ;;  %v2311_v46 = vunpack.c.l.bf16 %v3545_v44 }
 0x2e2   : > { %v1505_v55 = vadd.f32 %v3595_v35, %v1490_v51 }
 0x2e3   : > { %v3602_v56 = vadd.f32 %v3552_v47, %v1364_v49 }
 0x2e4   : > { %v1509_v58 = vmul.f32 0.2, %v1505_v55 }
 0x2e5   : > { %v1374_v60 = vsel %vm463_vm2, %v3602_v56, -inf }
 0x2e6   : > { %v1513_v15 = vmax.f32 %v1505_v55, %v1509_v58  ;;  %v1788_v16 = vpop.permute.xlu1 %1787  ;;  %1375 = vmax.xlane.f32.xlu0 %v1374_v60  ;;  %v1486_v60 = vpop.permute.xlu0 %1485 }
 0x2e7   : > { %v1803_v17 = vadd.f32 %v3605_v59, %v1788_v16 }
 0x2e8   : > { %v3611_v18 = vadd.f32 %v3552_v47, %v1513_v15 }
 0x2e9   : > { %v1807_v19 = vmul.f32 0.2, %v1803_v17 }
 0x2ea   : > { %v1523_v21 = vsel %vm463_vm2, %v3611_v18, -inf }
 0x2eb   : > { %v1811_v26 = vmax.f32 %v1803_v17, %v1807_v19  ;;  %v746_v27 = vpop.permute.xlu1 %745  ;;  %1524 = vmax.xlane.f32.xlu0 %v1523_v21  ;;  %v1504_v17 = vadd.f32 %v3595_v35, %v1486_v60 }
 0x2ec   : > { %v767_v28 = vadd.f32 %v3540_v40, %v746_v27 }
 0x2ed   : > { %v3623_v32 = vadd.f32 %v3552_v47, %v1811_v26  ;;  %v1065_v47 = vmax.f32 %v1057_v29, %v1061_v48  ;;  %v1508_v29 = vmul.f32 0.2, %v1504_v17 }
 0x2ee   : > { %v771_v30 = vmul.f32 0.2, %v767_v28 }
 0x2ef   : > { %1673 = vmax.xlane.f32.xlu0 %v1672_v31  ;;  %v1821_v51 = vsel %vm463_vm2, %v3623_v32, -inf  ;;  %v3639_v21 = vadd.f32 %v2311_v46, %v1065_v47 }
 0x2f0   : > { %v775_v34 = vmax.f32 %v767_v28, %v771_v30  ;;  %v886_v42 = vpop.permute.xlu1 %885 }
 0x2f1   : > { %v904_v49 = vadd.f32 %v3549_v45, %v886_v42  ;;  %v1073_v31 = vsel %vm463_vm2, %v3639_v21, -inf  ;;  %v1784_v42 = vpop.permute.xlu0 %1783 }
 0x2f2   : > { %v3629_v53 = vadd.f32 %v2311_v46, %v775_v34 }
 0x2f3   : > { %v908_v55 = vmul.f32 0.2, %v904_v49  ;;  %1822 = vmax.xlane.f32.xlu0 %v1821_v51  ;;  %v1512_v51 = vmax.f32 %v1504_v17, %v1508_v29 }
 0x2f4   : > { %v783_v58 = vsel %vm463_vm2, %v3629_v53, -inf }
 0x2f5   : > { %v912_v3 = vmax.f32 %v904_v49, %v908_v55  ;;  %v1188_v15 = vpop.permute.xlu1 %1187  ;;  %784 = vmax.xlane.f32.xlu1 %v783_v58  ;;  %v1802_v58 = vadd.f32 %v3605_v59, %v1784_v42 }
 0x2f6   : > { %v1206_v44 = vadd.f32 %v3567_v13, %v1188_v15 }
 0x2f7   : > { %v3634_v16 = vadd.f32 %v2311_v46, %v912_v3 }
 0x2f8   : > { %v1210_v19 = vmul.f32 0.2, %v1206_v44 }
 0x2f9   : > { %v920_v20 = vsel %vm463_vm2, %v3634_v16, -inf }
 0x2fa   : > { %v1214_v26 = vmax.f32 %v1206_v44, %v1210_v19  ;;  %v1337_v27 = vpop.permute.xlu1 %1336  ;;  %921 = vmax.xlane.f32.xlu1 %v920_v20  ;;  %v3652_v44 = vadd.f32 %v2311_v46, %v1512_v51  ;;  %v1806_v19 = vmul.f32 0.2, %v1802_v58 }
 0x2fb   : > { %v1355_v28 = vadd.f32 %v3578_v22, %v1337_v27  ;;  %v3658_v27 = vld [vmem:[%s3353_s30 + $0x8] sm:$0xff]   ;;  %s3099_s30 = smov 56  }
 0x2fc   : > { %v3644_v34 = vadd.f32 %v2311_v46, %v1214_v26  ;;  %v3661_v29 = vunpack.c.h.bf16 %v3658_v27 }
 0x2fd   : > { %v1359_v30 = vmul.f32 0.2, %v1355_v28 }
 0x2fe   : > { %1074 = vmax.xlane.f32.xlu1 %v1073_v31  ;;  %v1222_v47 = vsel %vm463_vm2, %v3644_v34, -inf }
 0x2ff   : > { %v1363_v48 = vmax.f32 %v1355_v28, %v1359_v30  ;;  %v1635_v49 = vpop.permute.xlu1 %1634  ;;  %v1810_v30 = vmax.f32 %v1802_v58, %v1806_v19 }
 0x300   : > { %v1653_v55 = vadd.f32 %v3584_v24, %v1635_v49 }
 0x301   : > { %v3650_v60 = vadd.f32 %v2311_v46, %v1363_v48  ;;  %v1520_v48 = vsel %vm463_vm2, %v3652_v44, -inf }
 0x302   : > { %v1657_v3 = vmul.f32 0.2, %v1653_v55  ;;  %1223 = vmax.xlane.f32.xlu1 %v1222_v47 }
 0x303   : > { %v1371_v17 = vsel %vm463_vm2, %v3650_v60, -inf }
 0x304   : > { %v761_v15 = vpop.permute.xlu1 %760  ;;  %v1661_v20 = vmax.f32 %v1653_v55, %v1657_v3 }
 0x305   : > { %v770_v26 = vadd.f32 %v3540_v40, %v761_v15  ;;  %v3675_v15 = vadd.f32 %v2311_v46, %v1810_v30 }
 0x306   : > { %1372 = vmax.xlane.f32.xlu1 %v1371_v17  ;;  %v3665_v49 = vadd.f32 %v2311_v46, %v1661_v20 }
 0x307   : > { %v774_v28 = vmul.f32 0.2, %v770_v26 }
 0x308   : > { %v1669_v58 = vsel %vm463_vm2, %v3665_v49, -inf }
 0x309   : > { %v778_v31 = vmax.f32 %v770_v26, %v774_v28  ;;  %v898_v42 = vpop.permute.xlu1 %897 }
 0x30a   : > { %v907_v51 = vadd.f32 %v3549_v45, %v898_v42  ;;  %1521 = vmax.xlane.f32.xlu1 %v1520_v48  ;;  %v1498_v42 = vpop.permute.xlu0 %1497 }
 0x30b   : > { %v3669_v55 = vadd.f32 %v3661_v29, %v778_v31  ;;  %v1818_v31 = vsel %vm463_vm2, %v3675_v15, -inf }
 0x30c   : > { %v911_v47 = vmul.f32 0.2, %v907_v51 }
 0x30d   : > { %v792_v3 = vsel %vm463_vm2, %v3669_v55, -inf }
 0x30e   : > { %v915_v19 = vmax.f32 %v907_v51, %v911_v47  ;;  %793 = vmax.xlane.f32.xlu0 %v792_v3  ;;  %v1051_v26 = vpop.permute.xlu1 %1050  ;;  %1670 = vmax.xlane.f32.xlu1 %v1669_v58  ;;  %v1507_v47 = vadd.f32 %v3595_v35, %v1498_v42 }
 0x30f   : > { %v1060_v20 = vadd.f32 %v3561_v57, %v1051_v26 }
 0x310   : > { %v3679_v17 = vadd.f32 %v3661_v29, %v915_v19  ;;  %v1511_v38 = vmul.f32 0.2, %v1507_v47 }
 0x311   : > { %v1064_v28 = vmul.f32 0.2, %v1060_v20 }
 0x312   : > { %1819 = vmax.xlane.f32.xlu1 %v1818_v31  ;;  %v929_v48 = vsel %vm463_vm2, %v3679_v17, -inf }
 0x313   : > { %v1068_v46 = vmax.f32 %v1060_v20, %v1064_v28  ;;  %930 = vmax.xlane.f32.xlu0 %v929_v48  ;;  %v1200_v30 = vpop.permute.xlu1 %1199  ;;  %v1796_v20 = vpop.permute.xlu0 %1795 }
 0x314   : > { %v1209_v51 = vadd.f32 %v3567_v13, %v1200_v30  ;;  %v1805_v30 = vadd.f32 %v3605_v59, %v1796_v20 }
 0x315   : > { %v3688_v3 = vadd.f32 %v3661_v29, %v1068_v46  ;;  %v1515_v46 = vmax.f32 %v1507_v47, %v1511_v38 }
 0x316   : > { %v1213_v58 = vmul.f32 0.2, %v1209_v51 }
 0x317   : > { %v1082_v19 = vsel %vm463_vm2, %v3688_v3, -inf  ;;  %v3706_v10 = vadd.f32 %v3661_v29, %v1515_v46 }
 0x318   : > { %v1217_v26 = vmax.f32 %v1209_v51, %v1213_v58  ;;  %1083 = vmax.xlane.f32.xlu0 %v1082_v19  ;;  %v1349_v31 = vpop.permute.xlu1 %1348 }
 0x319   : > { %v1358_v36 = vadd.f32 %v3578_v22, %v1349_v31  ;;  %v1809_v31 = vmul.f32 0.2, %v1805_v30 }
 0x31a   : > { %v3694_v28 = vadd.f32 %v3661_v29, %v1217_v26 }
 0x31b   : > { %v1362_v48 = vmul.f32 0.2, %v1358_v36  ;;  %v1813_v47 = vmax.f32 %v1805_v30, %v1809_v31 }
 0x31c   : > { %v1231_v42 = vsel %vm463_vm2, %v3694_v28, -inf }
 0x31d   : > { %v1366_v11 = vmax.f32 %v1358_v36, %v1362_v48  ;;  %1232 = vmax.xlane.f32.xlu0 %v1231_v42  ;;  %v1647_v6 = vpop.permute.xlu1 %1646 }
 0x31e   : > { %v1656_v51 = vadd.f32 %v3584_v24, %v1647_v6  ;;  %v1529_v6 = vsel %vm463_vm2, %v3706_v10, -inf }
 0x31f   : > { %v3701_v58 = vadd.f32 %v3661_v29, %v1366_v11 }
 0x320   : > { %v1660_v19 = vmul.f32 0.2, %v1656_v51 }
 0x321   : > { %v1380_v26 = vsel %vm463_vm2, %v3701_v58, -inf }
 0x322   : > { %v1664_v39 = vmax.f32 %v1656_v51, %v1660_v19  ;;  %1381 = vmax.xlane.f32.xlu0 %v1380_v26  ;;  %v756_v38 = vpop.permute.xlu1 %755  ;;  %v3718_v51 = vadd.f32 %v3661_v29, %v1813_v47 }
 0x323   : > { %v769_v36 = vadd.f32 %v3540_v40, %v756_v38  ;;  %v3721_v40 = vunpack.c.l.bf16 %v3658_v27 }
 0x324   : > { %v3712_v11 = vadd.f32 %v3661_v29, %v1664_v39  ;;  %v1827_v39 = vsel %vm463_vm2, %v3718_v51, -inf }
 0x325   : > { %v773_v20 = vmul.f32 0.2, %v769_v36 }
 0x326   : > { %1530 = vmax.xlane.f32.xlu0 %v1529_v6  ;;  %v1678_v46 = vsel %vm463_vm2, %v3712_v11, -inf }
 0x327   : > { %v894_v48 = vpop.permute.xlu1 %893  ;;  %v777_v9 = vmax.f32 %v769_v36, %v773_v20 }
 0x328   : > { %v906_v42 = vadd.f32 %v3549_v45, %v894_v48 }
 0x329   : > { %v3726_v31 = vadd.f32 %v3721_v40, %v777_v9 }
 0x32a   : > { %v910_v30 = vmul.f32 0.2, %v906_v42  ;;  %1679 = vmax.xlane.f32.xlu0 %v1678_v46 }
 0x32b   : > { %v789_v27 = vsel %vm463_vm2, %v3726_v31, -inf }
 0x32c   : > { %v914_v19 = vmax.f32 %v906_v42, %v910_v30  ;;  %v1047_v26 = vpop.permute.xlu1 %1046 }
 0x32d   : > { %v1059_v36 = vadd.f32 %v3561_v57, %v1047_v26 }
 0x32e   : > { %1828 = vmax.xlane.f32.xlu0 %v1827_v39  ;;  %v3729_v45 = vadd.f32 %v3721_v40, %v914_v19 }
 0x32f   : > { %v1063_v20 = vmul.f32 0.2, %v1059_v36 }
 0x330   : > { %v926_v29 = vsel %vm463_vm2, %v3729_v45, -inf }
 0x331   : > { %927 = vmax.xlane.f32.xlu1 %v926_v29  ;;  %v1196_v9 = vpop.permute.xlu1 %1195  ;;  %v1067_v46 = vmax.f32 %v1059_v36, %v1063_v20 }
 0x332   : > { %790 = vmax.xlane.f32.xlu0 %v789_v27  ;;  %v1208_v47 = vadd.f32 %v3567_v13, %v1196_v9 }
 0x333   : > { %v3745_v1 = vadd.f32 %v3721_v40, %v1067_v46 }
 0x334   : > { %v1212_v48 = vmul.f32 0.2, %v1208_v47 }
 0x336   : > { %v1345_v38 = vpop.permute.xlu1 %1344  ;;  %v1216_v19 = vmax.f32 %v1208_v47, %v1212_v48 }
 0x337   : > { %v1357_v42 = vadd.f32 %v3578_v22, %v1345_v38 }
 0x338   : > { %v3748_v9 = vadd.f32 %v3721_v40, %v1216_v19 }
 0x339   : > { %v1361_v39 = vmul.f32 0.2, %v1357_v42 }
 0x33a   : > { %v1228_v20 = vsel %vm463_vm2, %v3748_v9, -inf }
 0x33b   : > { %v1494_v6 = vpop.permute.xlu1 %1493  ;;  %v1365_v26 = vmax.f32 %v1357_v42, %v1361_v39 }
 0x340   : > { %v1643_v29 = vpop.permute.xlu1 %1642 }
 0x341   : > { %v1655_v38 = vadd.f32 %v3584_v24, %v1643_v29 }
 0x342   : > { %1717 = vrot.lane.b32.xlu1 %v3389_v43, %s3086_s7 }
 0x343   : > { %v1659_v42 = vmul.f32 0.2, %v1655_v38 }
 0x345   : > { %v1792_v47 = vpop.permute.xlu1 %1791  ;;  %v1663_v19 = vmax.f32 %v1655_v38, %v1659_v42 }
 0x346   : > { %v1804_v46 = vadd.f32 %v3605_v59, %v1792_v47 }
 0x347   : > { %v3774_v38 = vadd.f32 %v3721_v40, %v1663_v19 }
 0x348   : > { %1866 = vrot.lane.b32.xlu0 %v3389_v43, %s3085_s11  ;;  %v1506_v43 = vadd.f32 %v3595_v35, %v1494_v6  ;;  %v3757_v6 = vadd.f32 %v3721_v40, %v1365_v26  ;;  %v1808_v39 = vmul.f32 0.2, %v1804_v46 }
 0x34a   : > { %v1510_v22 = vmul.f32 0.2, %v1506_v43  ;;  %v1377_v29 = vsel %vm463_vm2, %v3757_v6, -inf  ;;  %v1812_v26 = vmax.f32 %v1804_v46, %v1808_v39 }
 0x34c   : > { %v1514_v48 = vmax.f32 %v1506_v43, %v1510_v22 }
 0x35f   : > { %v788_v30 = vpop.xlane.xlu0 %787 }
 0x360   : > { %v796_v27 = vsub.f32 %v3557_v54, %v788_v30  ;;  %v1079_v54 = vsel %vm463_vm2, %v3745_v1, -inf }
 0x362   : > { %v801_v57 = vmul.f32 1.442695, %v796_v27  ;;  %v3764_v27 = vadd.f32 %v3721_v40, %v1514_v48 }
 0x364   : > { %2738 = vpow2.f32 %v801_v57  ;;  %v925_v13 = vpop.xlane.xlu0 %924  ;;  %v1526_v22 = vsel %vm463_vm2, %v3764_v27, -inf }
 0x365   : > { %v933_v36 = vsub.f32 %v3570_v14, %v925_v13 }
 0x366   : > { %1080 = vmax.xlane.f32.xlu1 %v1079_v54 }
 0x367   : > { %v938_v35 = vmul.f32 1.442695, %v933_v36 }
 0x369   : > { %2740 = vpow2.f32 %v938_v35  ;;  %v1078_v24 = vpop.xlane.xlu0 %1077  ;;  %v1675_v35 = vsel %vm463_vm2, %v3774_v38, -inf }
 0x36a   : > { %v1086_v14 = vsub.f32 %v3581_v23, %v1078_v24  ;;  %1229 = vmax.xlane.f32.xlu1 %v1228_v20  ;;  %v3784_v20 = vadd.f32 %v3721_v40, %v1812_v26 }
 0x36c   : > { %v1091_v30 = vmul.f32 1.442695, %v1086_v14  ;;  %v1824_v14 = vsel %vm463_vm2, %v3784_v20, -inf }
 0x36e   : > { %v3766_v57 = vpop.eup %2738  ;;  %2742 = vpow2.f32 %v1091_v30  ;;  %v1227_v43 = vpop.xlane.xlu0 %1226  ;;  %1378 = vmax.xlane.f32.xlu1 %v1377_v29 }
 0x36f   : > { %v1235_v59 = vsub.f32 %v3592_v41, %v1227_v43  ;;  %v810_v23 = vsel %vm463_vm2, %v3766_v57, 0.0 }
 0x370   : > { %811 = vadd.xlane.f32.xlu0 %v810_v23 }
 0x371   : > { %v1240_v13 = vmul.f32 1.442695, %v1235_v59 }
 0x372   : > { %1527 = vmax.xlane.f32.xlu1 %v1526_v22 }
 0x373   : > { %v3776_v36 = vpop.eup %2740  ;;  %2744 = vpow2.f32 %v1240_v13  ;;  %v1376_v54 = vpop.xlane.xlu0 %1375 }
 0x374   : > { %v1384_v47 = vsub.f32 %v3602_v56, %v1376_v54  ;;  %v947_v41 = vsel %vm463_vm2, %v3776_v36, 0.0 }
 0x375   : > { %948 = vadd.xlane.f32.xlu0 %v947_v41 }
 0x376   : > { %v1389_v48 = vmul.f32 1.442695, %v1384_v47  ;;  %1676 = vmax.xlane.f32.xlu1 %v1675_v35 }
 0x378   : > { %v3786_v42 = vpop.eup %2742  ;;  %2746 = vpow2.f32 %v1389_v48  ;;  %v1525_v46 = vpop.xlane.xlu0 %1524 }
 0x379   : > { %v1533_v24 = vsub.f32 %v3611_v18, %v1525_v46  ;;  %v1100_v56 = vsel %vm463_vm2, %v3786_v42, 0.0 }
 0x37a   : > { %1101 = vadd.xlane.f32.xlu0 %v1100_v56  ;;  %1825 = vmax.xlane.f32.xlu1 %v1824_v14 }
 0x37b   : > { %v1538_v30 = vmul.f32 1.442695, %v1533_v24 }
 0x37c   : > { %v1674_v19 = vpop.xlane.xlu0 %1673 }
 0x37d   : > { %v3793_v40 = vpop.eup %2744  ;;  %2748 = vpow2.f32 %v1538_v30  ;;  %v1682_v39 = vsub.f32 %v3616_v25, %v1674_v19 }
 0x37e   : > { %v1249_v29 = vsel %vm463_vm2, %v3793_v40, 0.0 }
 0x37f   : > { %v1687_v43 = vmul.f32 1.442695, %v1682_v39  ;;  %1250 = vadd.xlane.f32.xlu0 %v1249_v29 }
 0x380   : > { %v1823_v18 = vpop.xlane.xlu0 %1822 }
 0x381   : > { %2750 = vpow2.f32 %v1687_v43  ;;  %v1831_v59 = vsub.f32 %v3623_v32, %v1823_v18 }
 0x382   : > { %v3799_v23 = vpop.eup %2746  ;;  %v785_v26 = vpop.xlane.xlu1 %784 }
 0x383   : > { %v1836_v13 = vmul.f32 1.442695, %v1831_v59  ;;  %v795_v22 = vsub.f32 %v3629_v53, %v785_v26  ;;  %v1398_v54 = vsel %vm463_vm2, %v3799_v23, 0.0 }
 0x384   : > { %1399 = vadd.xlane.f32.xlu0 %v1398_v54 }
 0x385   : > { %2752 = vpow2.f32 %v1836_v13  ;;  %v799_v25 = vmul.f32 1.442695, %v795_v22 }
 0x387   : > { %v3804_v47 = vpop.eup %2748  ;;  %2754 = vpow2.f32 %v799_v25  ;;  %v922_v41 = vpop.xlane.xlu1 %921 }
 0x388   : > { %v932_v35 = vsub.f32 %v3634_v16, %v922_v41  ;;  %v1547_v32 = vsel %vm463_vm2, %v3804_v47, 0.0 }
 0x389   : > { %1548 = vadd.xlane.f32.xlu0 %v1547_v32 }
 0x38a   : > { %v936_v48 = vmul.f32 1.442695, %v932_v35 }
 0x38b   : > { %v3809_v46 = vpop.eup %2750  ;;  %v1075_v53 = vpop.xlane.xlu1 %1074 }
 0x38c   : > { %2756 = vpow2.f32 %v936_v48  ;;  %v1085_v24 = vsub.f32 %v3639_v21, %v1075_v53  ;;  %v1696_v56 = vsel %vm463_vm2, %v3809_v46, 0.0 }
 0x38d   : > { %1697 = vadd.xlane.f32.xlu0 %v1696_v56 }
 0x38e   : > { %v1089_v14 = vmul.f32 1.442695, %v1085_v24 }
 0x38f   : > { %v3814_v30 = vpop.eup %2752  ;;  %v1224_v19 = vpop.xlane.xlu1 %1223 }
 0x390   : > { %2758 = vpow2.f32 %v1089_v14  ;;  %v1234_v16 = vsub.f32 %v3644_v34, %v1224_v19  ;;  %v1845_v39 = vsel %vm463_vm2, %v3814_v30, 0.0 }
 0x391   : > { %v3819_v29 = vpop.eup %2754  ;;  %1846 = vadd.xlane.f32.xlu0 %v1845_v39 }
 0x392   : > { %v1238_v43 = vmul.f32 1.442695, %v1234_v16  ;;  %v807_v21 = vsel %vm463_vm2, %v3819_v29, 0.0 }
 0x393   : > { %808 = vadd.xlane.f32.xlu1 %v807_v21  ;;  %v1373_v18 = vpop.xlane.xlu1 %1372 }
 0x394   : > { %2760 = vpow2.f32 %v1238_v43  ;;  %v1383_v59 = vsub.f32 %v3650_v60, %v1373_v18 }
 0x396   : > { %v3824_v26 = vpop.eup %2756  ;;  %v1387_v13 = vmul.f32 1.442695, %v1383_v59 }
 0x397   : > { %v1522_v22 = vpop.xlane.xlu1 %1521  ;;  %v944_v34 = vsel %vm463_vm2, %v3824_v26, 0.0 }
 0x398   : > { %2762 = vpow2.f32 %v1387_v13  ;;  %v1532_v54 = vsub.f32 %v3652_v44, %v1522_v22  ;;  %945 = vadd.xlane.f32.xlu1 %v944_v34 }
 0x39a   : > { %v3829_v25 = vpop.eup %2758  ;;  %v1536_v41 = vmul.f32 1.442695, %v1532_v54 }
 0x39b   : > { %v794_v35 = vpop.xlane.xlu0 %793  ;;  %v1671_v32 = vpop.xlane.xlu1 %1670  ;;  %v1097_v48 = vsel %vm463_vm2, %v3829_v25, 0.0 }
 0x39c   : > { %2764 = vpow2.f32 %v1536_v41  ;;  %v798_v60 = vsub.f32 %v3669_v55, %v794_v35  ;;  %v1681_v53 = vsub.f32 %v3665_v49, %v1671_v32  ;;  %1098 = vadd.xlane.f32.xlu0 %v1097_v48 }
 0x39e   : > { %v3835_v24 = vpop.eup %2760  ;;  %v805_v56 = vmul.f32 1.442695, %v798_v60  ;;  %v1685_v14 = vmul.f32 1.442695, %v1681_v53 }
 0x39f   : > { %v1820_v44 = vpop.xlane.xlu1 %1819  ;;  %v1246_v19 = vsel %vm463_vm2, %v3835_v24, 0.0 }
 0x3a0   : > { %2766 = vpow2.f32 %v805_v56  ;;  %v1830_v16 = vsub.f32 %v3675_v15, %v1820_v44  ;;  %v931_v39 = vpop.xlane.xlu0 %930  ;;  %1247 = vadd.xlane.f32.xlu1 %v1246_v19 }
 0x3a1   : > { %2768 = vpow2.f32 %v1685_v14  ;;  %v935_v43 = vsub.f32 %v3679_v17, %v931_v39 }
 0x3a2   : > { %v3841_v55 = vpop.eup %2762  ;;  %v1834_v49 = vmul.f32 1.442695, %v1830_v16 }
 0x3a3   : > { %v942_v21 = vmul.f32 1.442695, %v935_v43  ;;  %v1395_v18 = vsel %vm463_vm2, %v3841_v55, 0.0 }
 0x3a4   : > { %2770 = vpow2.f32 %v1834_v49  ;;  %1396 = vadd.xlane.f32.xlu1 %v1395_v18 }
 0x3a5   : > { %2772 = vpow2.f32 %v942_v21  ;;  %v1084_v59 = vpop.xlane.xlu0 %1083 }
 0x3a6   : > { %v3845_v13 = vpop.eup %2764  ;;  %v1088_v15 = vsub.f32 %v3688_v3, %v1084_v59 }
 0x3a7   : > { %v1544_v22 = vsel %vm463_vm2, %v3845_v13, 0.0 }
 0x3a8   : > { %v1095_v34 = vmul.f32 1.442695, %v1088_v15  ;;  %1545 = vadd.xlane.f32.xlu1 %v1544_v22 }
 0x3aa   : > { %v3850_v17 = vpop.eup %2766  ;;  %2774 = vpow2.f32 %v1095_v34  ;;  %v1233_v54 = vpop.xlane.xlu0 %1232 }
 0x3ab   : > { %v3852_v41 = vpop.eup %2768  ;;  %v1237_v35 = vsub.f32 %v3694_v28, %v1233_v54  ;;  %v816_v32 = vsel %vm463_vm2, %v3850_v17, 0.0 }
 0x3ac   : > { %817 = vadd.xlane.f32.xlu0 %v816_v32  ;;  %v1693_v3 = vsel %vm463_vm2, %v3852_v41, 0.0 }
 0x3ad   : > { %v1244_v48 = vmul.f32 1.442695, %v1237_v35  ;;  %1694 = vadd.xlane.f32.xlu1 %v1693_v3 }
 0x3ae   : > { %v3859_v60 = vpop.eup %2770 }
 0x3af   : > { %v3861_v53 = vpop.eup %2772  ;;  %2776 = vpow2.f32 %v1244_v48  ;;  %v1382_v56 = vpop.xlane.xlu0 %1381  ;;  %v1842_v14 = vsel %vm463_vm2, %v3859_v60, 0.0 }
 0x3b0   : > { %v1386_v28 = vsub.f32 %v3701_v58, %v1382_v56  ;;  %v953_v44 = vsel %vm463_vm2, %v3861_v53, 0.0 }
 0x3b1   : > { %1843 = vadd.xlane.f32.xlu1 %v1842_v14  ;;  %954 = vadd.xlane.f32.xlu0 %v953_v44 }
 0x3b2   : > { %v1393_v19 = vmul.f32 1.442695, %v1386_v28 }
 0x3b3   : > { %v1531_v16 = vpop.xlane.xlu0 %1530 }
 0x3b4   : > { %v3868_v39 = vpop.eup %2774  ;;  %2778 = vpow2.f32 %v1393_v19  ;;  %v1535_v43 = vsub.f32 %v3706_v10, %v1531_v16 }
 0x3b5   : > { %v1106_v49 = vsel %vm463_vm2, %v3868_v39, 0.0 }
 0x3b6   : > { %v1542_v21 = vmul.f32 1.442695, %v1535_v43  ;;  %1107 = vadd.xlane.f32.xlu0 %v1106_v49 }
 0x3b7   : > { %v1680_v18 = vpop.xlane.xlu0 %1679 }
 0x3b8   : > { %2780 = vpow2.f32 %v1542_v21  ;;  %v1684_v58 = vsub.f32 %v3712_v11, %v1680_v18 }
 0x3b9   : > { %v3874_v59 = vpop.eup %2776 }
 0x3ba   : > { %v1691_v15 = vmul.f32 1.442695, %v1684_v58  ;;  %v1255_v22 = vsel %vm463_vm2, %v3874_v59, 0.0 }
 0x3bb   : > { %v1829_v34 = vpop.xlane.xlu0 %1828  ;;  %1256 = vadd.xlane.f32.xlu1 %v1255_v22 }
 0x3bc   : > { %2782 = vpow2.f32 %v1691_v15  ;;  %v1833_v10 = vsub.f32 %v3718_v51, %v1829_v34 }
 0x3be   : > { %v3879_v54 = vpop.eup %2778  ;;  %v1840_v35 = vmul.f32 1.442695, %v1833_v10  ;;  %v928_v32 = vpop.xlane.xlu1 %927 }
 0x3bf   : > { %v934_v3 = vsub.f32 %v3729_v45, %v928_v32  ;;  %v791_v48 = vpop.xlane.xlu0 %790  ;;  %v1404_v11 = vsel %vm463_vm2, %v3879_v54, 0.0 }
 0x3c0   : > { %2784 = vpow2.f32 %v1840_v35  ;;  %v797_v56 = vsub.f32 %v3726_v31, %v791_v48  ;;  %1405 = vadd.xlane.f32.xlu0 %v1404_v11 }
 0x3c1   : > { %v940_v28 = vmul.f32 1.442695, %v934_v3 }
 0x3c2   : > { %v3885_v14 = vpop.eup %2780  ;;  %v803_v44 = vmul.f32 1.442695, %v797_v56  ;;  %v3907_v58 = vpop.permute.xlu1 %1717 }
 0x3c3   : > { %v1553_v51 = vsel %vm463_vm2, %v3885_v14, 0.0  ;;  %v3911_v32 = vpop.permute.xlu0 %1866 }
 0x3c4   : > { %2786 = vpow2.f32 %v803_v44  ;;  %1554 = vadd.xlane.f32.xlu1 %v1553_v51  ;;  %4238 = vst [vmem:[#allocation25_spill] sm:$0xff] %v3911_v32 }
 0x3c5   : > { %2788 = vpow2.f32 %v940_v28 }
 0x3c6   : > { %v3889_v19 = vpop.eup %2782 }
 0x3c7   : > { %4236 = vst [vmem:[#allocation23_spill] sm:$0xff] %v3889_v19  ;;  %v1702_v45 = vsel %vm463_vm2, %v3889_v19, 0.0 }
 0x3c8   : > { %1703 = vadd.xlane.f32.xlu0 %v1702_v45 }
 0x3ca   : > { %v3893_v16 = vpop.eup %2784 }
 0x3cb   : > { %4237 = vst [vmem:[#allocation24_spill] sm:$0xff] %v3893_v16  ;;  %v1851_v31 = vsel %vm463_vm2, %v3893_v16, 0.0 }
 0x3cc   : > { %1852 = vadd.xlane.f32.xlu0 %v1851_v31 }
 0x3ce   : > { %v3897_v43 = vpop.eup %2786 }
 0x3cf   : > { %v813_v49 = vsel %vm463_vm2, %v3897_v43, 0.0  ;;  %v3901_v21 = vpop.eup %2788 }
 0x3d0   : > { %814 = vadd.xlane.f32.xlu1 %v813_v49  ;;  %v950_v18 = vsel %vm463_vm2, %v3901_v21, 0.0 }
 0x3d4   : > { %951 = vadd.xlane.f32.xlu1 %v950_v18 }
 0x3e5   : > { %1719 = vrot.lane.b32.xlu1 %v3417_v52, %s3086_s7 }
 0x3f3   : > { %v1081_v15 = vpop.xlane.xlu1 %1080 }
 0x3f4   : > { %v1087_v22 = vsub.f32 %v3745_v1, %v1081_v15 }
 0x3f6   : > { %v1093_v34 = vmul.f32 1.442695, %v1087_v22 }
 0x3f7   : > { %v1230_v10 = vpop.xlane.xlu1 %1229 }
 0x3f8   : > { %2790 = vpow2.f32 %v1093_v34  ;;  %v1236_v35 = vsub.f32 %v3748_v9, %v1230_v10 }
 0x3fa   : > { %v1242_v3 = vmul.f32 1.442695, %v1236_v35 }
 0x3fb   : > { %v1379_v48 = vpop.xlane.xlu1 %1378 }
 0x3fc   : > { %2792 = vpow2.f32 %v1242_v3  ;;  %v1385_v11 = vsub.f32 %v3757_v6, %v1379_v48 }
 0x3fd   : > { %v812_v56 = vpop.xlane.xlu0 %811 }
 0x3fe   : > { %v1391_v28 = vmul.f32 1.442695, %v1385_v11 }
 0x3ff   : > { %v1528_v44 = vpop.xlane.xlu1 %1527 }
 0x400   : > { %2794 = vpow2.f32 %v1391_v28  ;;  %v1534_v51 = vsub.f32 %v3764_v27, %v1528_v44 }
 0x402   : > { %v3915_v45 = vpop.eup %2790  ;;  %v1540_v1 = vmul.f32 1.442695, %v1534_v51  ;;  %v3917_v31 = vpop.xlane.xlu0 %948 }
 0x403   : > { %v1677_v49 = vpop.xlane.xlu1 %1676  ;;  %v1103_v9 = vsel %vm463_vm2, %v3915_v45, 0.0 }
 0x404   : > { %2796 = vpow2.f32 %v1540_v1  ;;  %v1683_v18 = vsub.f32 %v3774_v38, %v1677_v49  ;;  %1104 = vadd.xlane.f32.xlu0 %v1103_v9 }
 0x406   : > { %v3922_v6 = vpop.eup %2792  ;;  %v1689_v15 = vmul.f32 1.442695, %v1683_v18 }
 0x407   : > { %v1102_v22 = vpop.xlane.xlu0 %1101  ;;  %v1252_v27 = vsel %vm463_vm2, %v3922_v6, 0.0  ;;  %v1826_v51 = vpop.xlane.xlu1 %1825 }
 0x408   : > { %2798 = vpow2.f32 %v1689_v15  ;;  %1253 = vadd.xlane.f32.xlu0 %v1252_v27  ;;  %v1832_v16 = vsub.f32 %v3784_v20, %v1826_v51 }
 0x409   : > { %2800 = vrcp.f32 %v812_v56 }
 0x40a   : > { %v3926_v34 = vpop.eup %2794 }
 0x40b   : > { %v1401_v10 = vsel %vm463_vm2, %v3926_v34, 0.0 }
 0x40c   : > { %1402 = vadd.xlane.f32.xlu0 %v1401_v10  ;;  %v3930_v35 = vpop.xlane.xlu0 %1250 }
 0x40e   : > { %v3932_v3 = vpop.eup %2796 }
 0x40f   : > { %v1550_v38 = vsel %vm463_vm2, %v3932_v3, 0.0 }
 0x410   : > { %1551 = vadd.xlane.f32.xlu0 %v1550_v38 }
 0x411   : > { %v1400_v11 = vpop.xlane.xlu0 %1399 }
 0x412   : > { %v3936_v48 = vpop.eup %2798 }
 0x413   : > { %4239 = vst [vmem:[#allocation26_spill] sm:$0xff] %v3936_v48  ;;  %v1699_v28 = vsel %vm463_vm2, %v3936_v48, 0.0  ;;  %v2801_v18 = vpop.eup %2800 }
 0x414   : > { %1700 = vadd.xlane.f32.xlu1 %v1699_v28  ;;  %v824_v56 = vmul.f32 %v2801_v18, %v3766_v57 }
 0x416   : > { %v1549_v44 = vpop.xlane.xlu0 %1548 }
 0x41a   : > { %v1698_v1 = vpop.xlane.xlu0 %1697 }
 0x41e   : > { %v1847_v9 = vpop.xlane.xlu0 %1846 }
 0x420   : > { %v809_v49 = vpop.xlane.xlu1 %808 }
 0x421   : > { %2802 = vrcp.f32 %v809_v49 }
 0x422   : > { %2804 = vrcp.f32 %v1102_v22  ;;  %v1838_v22 = vmul.f32 1.442695, %v1832_v16 }
 0x425   : > { %1721 = vrot.lane.b32.xlu1 %v3415_v50, %s3086_s7  ;;  %v946_v15 = vpop.xlane.xlu1 %945 }
 0x426   : > { %1868 = vrot.lane.b32.xlu0 %v3417_v52, %s3085_s11 }
 0x429   : > { %v1099_v27 = vpop.xlane.xlu0 %1098 }
 0x42a   : > { %2806 = vrcp.f32 %v1099_v27 }
 0x42b   : > { %v2803_v10 = vpop.eup %2802  ;;  %2808 = vrcp.f32 %v1400_v11 }
 0x42c   : > { %v823_v38 = vmul.f32 %v2803_v10, %v3819_v29  ;;  %v2805_v52 = vpop.eup %2804 }
 0x42d   : > { %v3946_v28 = vpop.xlane.xlu1 %1247  ;;  %v1114_v29 = vmul.f32 %v2805_v52, %v3786_v42 }
 0x42e   : > { %v827_v49 = vpack.c.bf16 %v824_v56, %v823_v38 }
 0x430   : > { %2476 = vmatprep.mubr.msk.bf16.mxu0 %vm463_vm2, %v827_v49 }
 0x431   : > { %v1397_v19 = vpop.xlane.xlu1 %1396 }
 0x432   : > { %2810 = vrcp.f32 %v1397_v19 }
 0x433   : > { %2812 = vrcp.f32 %v1549_v44 }
 0x434   : > { %v2807_v48 = vpop.eup %2806 }
 0x435   : > { %v1546_v27 = vpop.xlane.xlu1 %1545  ;;  %v1113_v32 = vmul.f32 %v2807_v48, %v3829_v25  ;;  %v2809_v20 = vpop.eup %2808 }
 0x436   : > { %2814 = vrcp.f32 %v1546_v27  ;;  %v3957_v16 = vmul.f32 %v2809_v20, %v3799_v23 }
 0x437   : > { %2816 = vpow2.f32 %v1838_v22  ;;  %v1117_v57 = vpack.c.bf16 %v1114_v29, %v1113_v32 }
 0x438   : > { %2818 = vrcp.f32 %v1698_v1 }
 0x439   : > { %2500 = vmatprep.mubr.msk.bf16.mxu1 %vm463_vm2, %v1117_v57 }
 0x43a   : > { %v1695_v11 = vpop.xlane.xlu1 %1694 }
 0x43b   : > { %2820 = vrcp.f32 %v1695_v11 }
 0x43c   : > { %v2811_v51 = vpop.eup %2810  ;;  %2822 = vrcp.f32 %v1847_v9 }
 0x43d   : > { %v3954_v19 = vmul.f32 %v2811_v51, %v3841_v55  ;;  %v2813_v25 = vpop.eup %2812 }
 0x43e   : > { %v1844_v48 = vpop.xlane.xlu1 %1843  ;;  %v3967_v9 = vmul.f32 %v2813_v25, %v3804_v47 }
 0x43f   : > { %2824 = vrcp.f32 %v1844_v48  ;;  %v1415_v42 = vpack.c.bf16 %v3957_v16, %v3954_v19  ;;  %v4242_v16 = vld [vmem:[#allocation22_spill] sm:$0xff] }
 0x440   : > { %v2815_v32 = vpop.eup %2814  ;;  %2826 = vrcp.f32 %v946_v15 }
 0x441   : > { %v3961_v44 = vpop.eup %2816  ;;  %v3964_v1 = vmul.f32 %v2815_v32, %v3845_v13 }
 0x442   : > { %v2819_v55 = vpop.eup %2818  ;;  %v1848_v18 = vsel %vm463_vm2, %v3961_v44, 0.0 }
 0x443   : > { %v1564_v23 = vpack.c.bf16 %v3967_v9, %v3964_v1  ;;  %v3977_v56 = vmul.f32 %v2819_v55, %v3809_v46  ;;  %v4243_v1 = vld [vmem:[#allocation19_spill] sm:$0xff]  ;;  %v4244_v9 = vld [vmem:[#allocation17_spill] sm:$0xff] }
 0x445   : > { %v2821_v10 = vpop.eup %2820  ;;  %1849 = vadd.xlane.f32.xlu0 %v1848_v18 }
 0x446   : > { %v3974_v38 = vmul.f32 %v2821_v10, %v3852_v41  ;;  %v2823_v13 = vpop.eup %2822  ;;  %v818_v41 = vpop.xlane.xlu0 %817 }
 0x447   : > { %v3985_v22 = vmul.f32 %v2823_v13, %v3814_v30  ;;  %2828 = vrcp.f32 %v818_v41 }
 0x448   : > { %v1713_v47 = vpack.c.bf16 %v3977_v56, %v3974_v38  ;;  %v1257_v29 = vpop.xlane.xlu1 %1256  ;;  %2830 = vrcp.f32 %v3917_v31  ;;  %v4246_v38 = vld [vmem:[#allocation25_spill] sm:$0xff] }
 0x449   : > { %v2825_v49 = vpop.eup %2824 }
 0x44a   : > { %v3982_v52 = vmul.f32 %v2825_v49, %v3859_v60  ;;  %v2827_v60 = vpop.eup %2826  ;;  %v955_v32 = vpop.xlane.xlu0 %954 }
 0x44b   : > { %v960_v25 = vmul.f32 %v2827_v60, %v3824_v26 }
 0x44c   : > { %v1862_v27 = vpack.c.bf16 %v3985_v22, %v3982_v52 }
 0x451   : > { %v3989_v57 = vpop.xlane.xlu1 %1554  ;;  %v2829_v20 = vpop.eup %2828 }
 0x452   : > { %v2831_v30 = vpop.eup %2830  ;;  %v826_v48 = vmul.f32 %v2829_v20, %v3850_v17 }
 0x45b   : > { %1870 = vrot.lane.b32.xlu0 %v3415_v50, %s3085_s11  ;;  %v961_v50 = vmul.f32 %v2831_v30, %v3776_v36  ;;  %s2996_s11 = scalar_lea.vmem %s2995_s9, 1024 }
 0x45c   : > { %p2998_p5 = scmp.lt.s32.totalorder %s2996_s11, %s2990_s6 }
 0x45d   : > { %v815_v46 = vpop.xlane.xlu1 %814  ;;  %v964_v55 = vpack.c.bf16 %v961_v50, %v960_v25  ;;  %v4249_v50 = vld [vmem:[#allocation24_spill] sm:$0xff] }
 0x45e   : > { %2832 = vrcp.f32 %v815_v46  ;;  %p2999_p3 = por %p2998_p5, %p2997_p4 }
 0x460   : > { %p3000_p7 = pnand %p2999_p3, %p2993_p10 }
 0x461   : > { %v952_v11 = vpop.xlane.xlu1 %951 }
 0x462   : > { %2834 = vrcp.f32 %v952_v11 }
 0x463   : > { %2836 = vrcp.f32 %v3946_v28 }
 0x464   : > { %2838 = vrcp.f32 %v955_v32 }
 0x465   : > { %2840 = vrcp.f32 %v3930_v35 }
 0x468   : > { %v2833_v51 = vpop.eup %2832 }
 0x469   : > { %v825_v15 = vmul.f32 %v2833_v51, %v3897_v43  ;;  %v4247_v51 = vld [vmem:[#allocation26_spill] sm:$0xff] }
 0x46b   : > { %v828_v31 = vpack.c.bf16 %v826_v48, %v825_v15 }
 0x46c   : > { %v2835_v36 = vpop.eup %2834 }
 0x46d   : > { %2477 = vmatmul.mubr.msk.bf16.vlgmr.msra.gmra.mrb[12].mxu0 %vm463_vm2, %v828_v31  ;;  %v2837_v26 = vpop.eup %2836  ;;  %v962_v35 = vmul.f32 %v2835_v36, %v3901_v21 }
 0x46e   : > { %2481 = vmatpush3.bf16.msra.mxu0 %v3481_v0  ;;  %2488 = vmatprep.mubr.msk.bf16.mxu0 %vm463_vm2, %v964_v55  ;;  %v2839_v17 = vpop.eup %2838  ;;  %v1262_v0 = vmul.f32 %v2837_v26, %v3835_v24 }
 0x46f   : > { %2482 = vmatprep.subr.bf16.mxu0 %v3475_v61  ;;  %v2841_v43 = vpop.eup %2840  ;;  %v963_v28 = vmul.f32 %v2839_v17, %v3861_v53 }
 0x471   : > { %v965_v18 = vpack.c.bf16 %v963_v28, %v962_v35 }
 0x472   : > { %2483 = vmatpush3.bf16.msra.mxu0 %v3475_v61  ;;  %v1263_v61 = vmul.f32 %v2841_v43, %v3793_v40 }
 0x473   : > { %2484 = vmatprep.subr.bf16.mxu0 %v3504_v12 }
 0x474   : > { %v1266_v10 = vpack.c.bf16 %v1263_v61, %v1262_v0 }
 0x476   : > { %2485 = vmatpush3.bf16.msra.mxu0 %v3504_v12  ;;  %v1108_v12 = vpop.xlane.xlu0 %1107 }
 0x477   : > { %2486 = vmatprep.subr.bf16.mxu0 %v3494_v7  ;;  %2842 = vrcp.f32 %v1108_v12 }
 0x47a   : > { %2487 = vmatpush3.bf16.msra.mxu0 %v3494_v7  ;;  %v1406_v24 = vpop.xlane.xlu0 %1405 }
 0x47b   : > { %2504 = vmatprep.subr.bf16.mxu0 %v3486_v2 }
 0x47d   : > { %2489 = vmatmul.mubr.msk.bf16.vlgmr.msra.gmra.mrb[16].mxu0 %vm463_vm2, %v965_v18 }
 0x47e   : > { %2505 = vmatpush3.bf16.msra.mxu0 %v3486_v2  ;;  %2512 = vmatprep.mubr.msk.bf16.mxu0 %vm463_vm2, %v1266_v10  ;;  %v1704_v7 = vpop.xlane.xlu0 %1703 }
 0x47f   : > { %2506 = vmatprep.subr.bf16.mxu0 %v3479_v63 }
 0x481   : > { %v2843_v21 = vpop.eup %2842 }
 0x482   : > { %2507 = vmatpush3.bf16.msra.mxu0 %v3479_v63  ;;  %v4024_v2 = vpop.xlane.xlu0 %1852 }
 0x483   : > { %2508 = vmatprep.subr.bf16.mxu0 %v3524_v33 }
 0x486   : > { %2509 = vmatpush3.bf16.msra.mxu0 %v3524_v33  ;;  %v1116_v33 = vmul.f32 %v2843_v21, %v3868_v39 }
 0x487   : > { %2510 = vmatprep.subr.bf16.mxu0 %v3496_v8 }
 0x48a   : > { %2511 = vmatpush3.bf16.msra.mxu0 %v3496_v8 }
 0x48b   : > { %2528 = vmatprep.subr.bf16.mxu0 %v3490_v5 }
 0x491   : > { %v1105_v40 = vpop.xlane.xlu0 %1104 }
 0x492   : > { %2844 = vrcp.f32 %v1105_v40 }
 0x493   : > { %2846 = vrcp.f32 %v1257_v29 }
 0x495   : > { %v1254_v53 = vpop.xlane.xlu0 %1253 }
 0x496   : > { %2848 = vrcp.f32 %v1254_v53 }
 0x499   : > { %v1403_v63 = vpop.xlane.xlu0 %1402 }
 0x49a   : > { %2850 = vrcp.f32 %v1403_v63 }
 0x49b   : > { %2852 = vrcp.f32 %v1406_v24 }
 0x49c   : > { %v2845_v13 = vpop.eup %2844 }
 0x49d   : > { %v1115_v49 = vmul.f32 %v2845_v13, %v3915_v45  ;;  %v2847_v41 = vpop.eup %2846  ;;  %v1552_v46 = vpop.xlane.xlu0 %1551 }
 0x49e   : > { %v1265_v20 = vmul.f32 %v2847_v41, %v3874_v59  ;;  %2854 = vrcp.f32 %v1552_v46  ;;  %v1720_v59 = vpop.permute.xlu1 %1719 }
 0x49f   : > { %v1118_v8 = vpack.c.bf16 %v1116_v33, %v1115_v49  ;;  %2856 = vrcp.f32 %v3989_v57 }
 0x4a0   : > { %v2849_v60 = vpop.eup %2848 }
 0x4a1   : > { %v1264_v30 = vmul.f32 %v2849_v60, %v3922_v6  ;;  %2501 = vmatmul.mubr.msk.bf16.vlgmr.msra.gmra.mrb[12].mxu1 %vm463_vm2, %v1118_v8 }
 0x4a2   : > { %2517 = vmatpush3.bf16.msra.mxu1 %v3488_v4  ;;  %2524 = vmatprep.mubr.msk.bf16.mxu1 %vm463_vm2, %v1415_v42  ;;  %v4240_v4 = vld [vmem:[#allocation16_spill] sm:$0xff]  ;;  %v1701_v19 = vpop.xlane.xlu1 %1700 }
 0x4a3   : > { %2518 = vmatprep.subr.bf16.mxu1 %v3477_v62  ;;  %v1267_v39 = vpack.c.bf16 %v1265_v20, %v1264_v30  ;;  %2858 = vrcp.f32 %v1701_v19 }
 0x4a4   : > { %v2851_v45 = vpop.eup %2850  ;;  %2860 = vrcp.f32 %v1704_v7 }
 0x4a5   : > { %2513 = vmatmul.mubr.msk.bf16.vlgmr.msra.gmra.mrb[20].mxu0 %vm463_vm2, %v1267_v39  ;;  %v2853_v6 = vpop.eup %2852  ;;  %2862 = vrcp.f32 %v4024_v2 }
 0x4a6   : > { %2519 = vmatpush3.bf16.msra.mxu1 %v3477_v62  ;;  %2529 = vmatpush3.bf16.msra.mxu0 %v3490_v5  ;;  %v1413_v62 = vmul.f32 %v2851_v45, %v3926_v34  ;;  %v4241_v5 = vld [vmem:[#allocation18_spill] sm:$0xff]  ;;  %v1414_v29 = vmul.f32 %v2853_v6, %v3879_v54  ;;  %v1722_v11 = vpop.permute.xlu1 %1721 }
 0x4a7   : > { %2520 = vmatprep.subr.bf16.mxu1 %v3529_v37  ;;  %2530 = vmatprep.subr.bf16.mxu0 %v4240_v4 }
 0x4a8   : > { %2536 = vmatprep.mubr.msk.bf16.mxu0 %vm463_vm2, %v1564_v23  ;;  %v2855_v42 = vpop.eup %2854  ;;  %v1416_v34 = vpack.c.bf16 %v1414_v29, %v1413_v62 }
 0x4a9   : > { %v2857_v57 = vpop.eup %2856 }
 0x4aa   : > { %2521 = vmatpush3.bf16.msra.mxu1 %v3529_v37  ;;  %2531 = vmatpush3.bf16.msra.mxu0 %v4240_v4  ;;  %v1562_v37 = vmul.f32 %v2855_v42, %v3932_v3  ;;  %v1563_v23 = vmul.f32 %v2857_v57, %v3885_v14  ;;  %v4245_v3 = vld [vmem:[#allocation20_spill] sm:$0xff] }
 0x4ab   : > { %2522 = vmatprep.subr.bf16.mxu1 %v4241_v5  ;;  %2532 = vmatprep.subr.bf16.mxu0 %v4242_v16 }
 0x4ac   : > { %v1565_v54 = vpack.c.bf16 %v1563_v23, %v1562_v37 }
 0x4ad   : > { %v2859_v14 = vpop.eup %2858 }
 0x4ae   : > { %2523 = vmatpush3.bf16.msra.mxu1 %v4241_v5  ;;  %2533 = vmatpush3.bf16.msra.mxu0 %v4242_v16  ;;  %v2861_v56 = vpop.eup %2860  ;;  %v1711_v25 = vmul.f32 %v2859_v14, %v4247_v51 }
 0x4af   : > { %2534 = vmatprep.subr.bf16.mxu0 %v4243_v1  ;;  %2540 = vmatprep.subr.bf16.mxu1 %v4244_v9  ;;  %v2863_v32 = vpop.eup %2862 }
 0x4b0   : > { %v1861_v31 = vmul.f32 %v2863_v32, %v4249_v50 }
 0x4b1   : > { %2525 = vmatmul.mubr.msk.bf16.vlgmr.msra.gmra.mrb[16].mxu1 %vm463_vm2, %v1416_v34 }
 0x4b2   : > { %2535 = vmatpush3.bf16.msra.mxu0 %v4243_v1  ;;  %2541 = vmatpush3.bf16.msra.mxu1 %v4244_v9 }
 0x4b3   : > { %2548 = vmatprep.mubr.msk.bf16.mxu1 %vm463_vm2, %v1713_v47  ;;  %2542 = vmatprep.subr.bf16.mxu1 %v3907_v58  ;;  %v1869_v47 = vpop.permute.xlu0 %1868 }
 0x4b4   : > { %2552 = vmatprep.subr.bf16.mxu0 %v4245_v3 }
 0x4b5   : > { %2537 = vmatmul.mubr.msk.bf16.vlgmr.msra.gmra.mrb[24].mxu0 %vm463_vm2, %v1565_v54 }
 0x4b6   : > { %2543 = vmatpush3.bf16.msra.mxu1 %v3907_v58  ;;  %2553 = vmatpush3.bf16.msra.mxu0 %v4245_v3  ;;  %v4248_v58 = vld [vmem:[#allocation23_spill] sm:$0xff] }
 0x4b7   : > { %2560 = vmatprep.mubr.msk.bf16.mxu0 %vm463_vm2, %v1862_v27  ;;  %2544 = vmatprep.subr.bf16.mxu1 %v1720_v59  ;;  %v1712_v48 = vmul.f32 %v2861_v56, %v4248_v58 }
 0x4b8   : > { %2554 = vmatprep.subr.bf16.mxu0 %v4246_v38 }
 0x4b9   : > { %v1714_v52 = vpack.c.bf16 %v1712_v48, %v1711_v25 }
 0x4ba   : > { %2545 = vmatpush3.bf16.msra.mxu1 %v1720_v59  ;;  %2555 = vmatpush3.bf16.msra.mxu0 %v4246_v38 }
 0x4bb   : > { %2546 = vmatprep.subr.bf16.mxu1 %v1722_v11  ;;  %2556 = vmatprep.subr.bf16.mxu0 %v1869_v47 }
 0x4be   : > { %2547 = vmatpush3.bf16.msra.mxu1 %v1722_v11  ;;  %2557 = vmatpush3.bf16.msra.mxu0 %v1869_v47 }
 0x4c1   : > { %2549 = vmatmul.mubr.msk.bf16.vlgmr.msra.gmra.mrb[20].mxu1 %vm463_vm2, %v1714_v52 }
 0x4d2   : > { %v1850_v22 = vpop.xlane.xlu0 %1849 }
 0x4d3   : > { %2864 = vrcp.f32 %v1850_v22 }
 0x4d6   : > { %v1871_v27 = vpop.permute.xlu0 %1870 }
 0x4d7   : > { %2558 = vmatprep.subr.bf16.mxu0 %v1871_v27 }
 0x4d8   : > { %2559 = vmatpush3.bf16.msra.mxu0 %v1871_v27 }
 0x4dd   : > { %v2865_v15 = vpop.eup %2864 }
 0x4de   : > { %v1860_v55 = vmul.f32 %v2865_v15, %v3961_v44 }
 0x4e0   : > { %v1863_v36 = vpack.c.bf16 %v1861_v31, %v1860_v55 }
 0x4e2   : > { %2561 = vmatmul.mubr.msk.bf16.vlgmr.msra.gmra.mrb[28].mxu0 %vm463_vm2, %v1863_v36  ;;  %v299_v36 = vld [vmem:[#allocation8 + $0x48] sm:$0xff] }
 0x540   : > { %v4084_v26 = vpop.f32.mrb[12].mxu0 }
 0x541   : > { %v4086_v17 = vpop.f32.mrb[13].mxu0 }
 0x542   : > { %v4088_v43 = vpop.f32.mrb[14].mxu0 }
 0x543   : > { %v4090_v35 = vpop.f32.mrb[15].mxu0 }
 0x550   : > { %v2490_v0 = vpop.f32.mrb[16].mxu0 }
 0x551   : > { %v1022_v28 = vpop.f32.mrb[17].mxu0 }
 0x552   : > { %v2491_v61 = vpop.f32.mrb[18].mxu0 }
 0x553   : > { %v1025_v18 = vpop.f32.mrb[19].mxu0 }
 0x574   : > { %v2502_v10 = vpop.f32.mrb[12].mxu1 }
 0x575   : > { %v1171_v12 = vpop.f32.mrb[13].mxu1  ;;  %1955 = vrot.lane.b32.xlu1 %v2502_v10, %s3093_s24 }
 0x576   : > { %v2503_v44 = vpop.f32.mrb[14].mxu1 }
 0x577   : > { %v1174_v24 = vpop.f32.mrb[15].mxu1  ;;  %1957 = vrot.lane.b32.xlu0 %v2503_v44, %s3093_s24 }
 0x578   : > { %v2514_v7 = vpop.f32.mrb[20].mxu0 }
 0x579   : > { %1951 = vrot.lane.b32.xlu1 %v1171_v12, %s3093_s24  ;;  %v1320_v2 = vpop.f32.mrb[21].mxu0 }
 0x57a   : > { %v2515_v40 = vpop.f32.mrb[22].mxu0 }
 0x57b   : > { %1953 = vrot.lane.b32.xlu0 %v1174_v24, %s3093_s24  ;;  %v1323_v53 = vpop.f32.mrb[23].mxu0 }
 0x57d   : > { %1939 = vrot.lane.b32.xlu1 %v2490_v0, %s3094_s29 }
 0x57f   : > { %1941 = vrot.lane.b32.xlu0 %v2491_v61, %s3094_s29 }
 0x584   : > { %v2526_v63 = vpop.f32.mrb[16].mxu1 }
 0x585   : > { %v1469_v21 = vpop.f32.mrb[17].mxu1  ;;  %1987 = vrot.lane.b32.xlu1 %v2526_v63, %s3095_s2 }
 0x586   : > { %v2527_v13 = vpop.f32.mrb[18].mxu1 }
 0x587   : > { %v1472_v33 = vpop.f32.mrb[19].mxu1  ;;  %1989 = vrot.lane.b32.xlu0 %v2527_v13, %s3095_s2 }
 0x588   : > { %v2538_v49 = vpop.f32.mrb[24].mxu0 }
 0x589   : > { %1935 = vrot.lane.b32.xlu1 %v1022_v28, %s3094_s29  ;;  %v1618_v41 = vpop.f32.mrb[25].mxu0 }
 0x58a   : > { %v2539_v8 = vpop.f32.mrb[26].mxu0 }
 0x58b   : > { %1937 = vrot.lane.b32.xlu0 %v1025_v18, %s3094_s29  ;;  %v1621_v46 = vpop.f32.mrb[27].mxu0 }
 0x58d   : > { %1983 = vrot.lane.b32.xlu1 %v1469_v21, %s3095_s2 }
 0x58f   : > { %1985 = vrot.lane.b32.xlu0 %v1472_v33, %s3095_s2 }
 0x591   : > { %1971 = vrot.lane.b32.xlu1 %v2514_v7, %s3096_s10 }
 0x593   : > { %1973 = vrot.lane.b32.xlu0 %v2515_v40, %s3096_s10 }
 0x594   : > { %v2550_v60 = vpop.f32.mrb[20].mxu1 }
 0x595   : > { %2019 = vrot.lane.b32.xlu1 %v2550_v60, %s3097_s5  ;;  %v1767_v20 = vpop.f32.mrb[21].mxu1 }
 0x596   : > { %v2551_v30 = vpop.f32.mrb[22].mxu1 }
 0x597   : > { %2021 = vrot.lane.b32.xlu0 %v2551_v30, %s3097_s5  ;;  %v1770_v39 = vpop.f32.mrb[23].mxu1 }
 0x599   : > { %1967 = vrot.lane.b32.xlu1 %v1320_v2, %s3096_s10 }
 0x59b   : > { %1969 = vrot.lane.b32.xlu0 %v1323_v53, %s3096_s10 }
 0x59d   : > { %2015 = vrot.lane.b32.xlu1 %v1767_v20, %s3097_s5 }
 0x59f   : > { %2017 = vrot.lane.b32.xlu0 %v1770_v39, %s3097_s5 }
 0x5a1   : > { %2003 = vrot.lane.b32.xlu1 %v2538_v49, %s3098_s20 }
 0x5a3   : > { %2005 = vrot.lane.b32.xlu0 %v2539_v8, %s3098_s20 }
 0x5a5   : > { %1999 = vrot.lane.b32.xlu1 %v1618_v41, %s3098_s20 }
 0x5a7   : > { %2001 = vrot.lane.b32.xlu0 %v1621_v46, %s3098_s20 }
 0x5b5   : > { %v2562_v59 = vpop.f32.mrb[28].mxu0 }
 0x5b6   : > { %v1916_v4 = vpop.f32.mrb[29].mxu0 }
 0x5b7   : > { %v2563_v45 = vpop.f32.mrb[30].mxu0  ;;  %2031 = vrot.lane.b32.xlu1 %v1916_v4, %s3099_s30 }
 0x5b8   : > { %v1919_v6 = vpop.f32.mrb[31].mxu0 }
 0x5b9   : > { %2033 = vrot.lane.b32.xlu0 %v1919_v6, %s3099_s30 }
 0x5bb   : > { %2035 = vrot.lane.b32.xlu1 %v2562_v59, %s3099_s30 }
 0x5bd   : > { %2037 = vrot.lane.b32.xlu0 %v2563_v45, %s3099_s30 }
 0x5e7   : > { %v1956_v62 = vpop.permute.xlu1 %1955 }
 0x5e9   : > { %v1958_v19 = vpop.permute.xlu0 %1957 }
 0x5eb   : > { %v1952_v5 = vpop.permute.xlu1 %1951 }
 0x5ed   : > { %v1954_v16 = vpop.permute.xlu0 %1953 }
 0x5ef   : > { %v1940_v42 = vpop.permute.xlu1 %1939 }
 0x5f0   : > { %v2045_v27 = vsel %vm320_vm1, %v4084_v26, %v1940_v42 }
 0x5f1   : > { %v1942_v29 = vpop.permute.xlu0 %1941 }
 0x5f2   : > { %v2046_v31 = vsel %vm320_vm1, %v4088_v43, %v1942_v29  ;;  %v4250_v43 = vld [vmem:[#allocation21_spill] sm:$0xff] }
 0x5f3   : > { %v2051_v61 = vsel %vm2047_vm4, %v2046_v31, %v1958_v19  ;;  %v4251_v10 = vsub.s32 0, %v4250_v43 }
 0x5f5   : > { %v2080_v12 = vrot.slane %v299_v36, %v4251_v10 }
 0x5f7   : > { %v1988_v57 = vpop.permute.xlu1 %1987 }
 0x5f9   : > { %v1990_v37 = vpop.permute.xlu0 %1989 }
 0x5fb   : > { %v1936_v1 = vpop.permute.xlu1 %1935 }
 0x5fc   : > { %v2043_v58 = vsel %vm320_vm1, %v4086_v17, %v1936_v1  ;;  %v2050_v17 = vsel %vm2047_vm4, %v2045_v27, %v1956_v62 }
 0x5fd   : > { %v1938_v9 = vpop.permute.xlu0 %1937  ;;  %v2048_v22 = vsel %vm2047_vm4, %v2043_v58, %v1952_v5 }
 0x5fe   : > { %v2044_v52 = vsel %vm320_vm1, %v4090_v35, %v1938_v9 }
 0x5ff   : > { %v1984_v34 = vpop.permute.xlu1 %1983  ;;  %v2049_v15 = vsel %vm2047_vm4, %v2044_v52, %v1954_v16 }
 0x601   : > { %v1986_v23 = vpop.permute.xlu0 %1985 }
 0x603   : > { %v1972_v54 = vpop.permute.xlu1 %1971 }
 0x604   : > { %v2055_v26 = vsel %vm2052_vm5, %v2050_v17, %v1972_v54 }
 0x605   : > { %v1974_v3 = vpop.permute.xlu0 %1973  ;;  %v2060_v7 = vsel %vm2057_vm6, %v2055_v26, %v1988_v57 }
 0x606   : > { %v2056_v44 = vsel %vm2052_vm5, %v2051_v61, %v1974_v3 }
 0x607   : > { %v2020_v14 = vpop.permute.xlu1 %2019  ;;  %v2061_v21 = vsel %vm2057_vm6, %v2056_v44, %v1990_v37 }
 0x609   : > { %v2022_v38 = vpop.permute.xlu0 %2021 }
 0x60b   : > { %v1968_v56 = vpop.permute.xlu1 %1967 }
 0x60c   : > { %v2053_v32 = vsel %vm2052_vm5, %v2048_v22, %v1968_v56 }
 0x60d   : > { %v1970_v47 = vpop.permute.xlu0 %1969  ;;  %v2058_v35 = vsel %vm2057_vm6, %v2053_v32, %v1984_v34 }
 0x60e   : > { %v2054_v55 = vsel %vm2052_vm5, %v2049_v15, %v1970_v47 }
 0x60f   : > { %v2016_v11 = vpop.permute.xlu1 %2015  ;;  %v2059_v18 = vsel %vm2057_vm6, %v2054_v55, %v1986_v23 }
 0x611   : > { %v2018_v51 = vpop.permute.xlu0 %2017 }
 0x613   : > { %v2004_v25 = vpop.permute.xlu1 %2003 }
 0x614   : > { %v2065_v53 = vsel %vm2062_vm7, %v2060_v7, %v2004_v25 }
 0x615   : > { %v2006_v48 = vpop.permute.xlu0 %2005  ;;  %v2070_v20 = vsel %vm2067_vm9, %v2065_v53, %v2020_v14 }
 0x616   : > { %v2066_v41 = vsel %vm2062_vm7, %v2061_v21, %v2006_v48 }
 0x617   : > { %v2000_v50 = vpop.permute.xlu1 %1999  ;;  %v2071_v45 = vsel %vm2067_vm9, %v2066_v41, %v2022_v38 }
 0x618   : > { %v2063_v28 = vsel %vm2062_vm7, %v2058_v35, %v2000_v50 }
 0x619   : > { %v2002_v0 = vpop.permute.xlu0 %2001  ;;  %v2068_v2 = vsel %vm2067_vm9, %v2063_v28, %v2016_v11 }
 0x61a   : > { %v2064_v24 = vsel %vm2062_vm7, %v2059_v18, %v2002_v0 }
 0x61b   : > { %v2069_v33 = vsel %vm2067_vm9, %v2064_v24, %v2018_v51 }
 0x629   : > { %v2032_v40 = vpop.permute.xlu1 %2031 }
 0x62a   : > { %v2073_v63 = vsel %vm2072_vm8, %v2068_v2, %v2032_v40 }
 0x62b   : > { %v2081_v13 = vadd.f32 %v2080_v12, %v2073_v63  ;;  %v2034_v49 = vpop.permute.xlu0 %2033 }
 0x62c   : > { %v2074_v8 = vsel %vm2072_vm8, %v2069_v33, %v2034_v49 }
 0x62d   : > { %v2089_v46 = vmul.f32 1.442695, %v2081_v13  ;;  %v2082_v60 = vadd.f32 %v2080_v12, %v2074_v8  ;;  %v2036_v30 = vpop.permute.xlu1 %2035  ;;  %vm2085_vm10 = vcmp.gt.f32.partialorder %v2081_v13, 0.0 }
 0x62e   : > { %v2075_v39 = vsel %vm2072_vm8, %v2070_v20, %v2036_v30 }
 0x62f   : > { %2866 = vpow2.f32 %v2089_v46  ;;  %v2091_v59 = vmul.f32 1.442695, %v2082_v60  ;;  %v2083_v4 = vadd.f32 %v2080_v12, %v2075_v39  ;;  %v2038_v6 = vpop.permute.xlu0 %2037  ;;  %vm2086_vm11 = vcmp.gt.f32.partialorder %v2082_v60, 0.0 }
 0x630   : > { %v2076_v62 = vsel %vm2072_vm8, %v2071_v45, %v2038_v6 }
 0x631   : > { %2868 = vpow2.f32 %v2091_v59  ;;  %v2093_v19 = vmul.f32 1.442695, %v2083_v4  ;;  %v2084_v5 = vadd.f32 %v2080_v12, %v2076_v62  ;;  %vm2087_vm12 = vcmp.gt.f32.partialorder %v2083_v4, 0.0 }
 0x633   : > { %2870 = vpow2.f32 %v2093_v19  ;;  %v2095_v16 = vmul.f32 1.442695, %v2084_v5  ;;  %vm2088_vm13 = vcmp.gt.f32.partialorder %v2084_v5, 0.0 }
 0x635   : > { %2872 = vpow2.f32 %v2095_v16 }
 0x639   : > { %v2867_v42 = vpop.eup %2866 }
 0x63a   : > { %v2297_v29 = vadd.f32 -1.0, %v2867_v42 }
 0x63b   : > { %v2869_v57 = vpop.eup %2868 }
 0x63c   : > { %v2101_v37 = vsel %vm2085_vm10, %v2081_v13, %v2297_v29  ;;  %v2298_v1 = vadd.f32 -1.0, %v2869_v57 }
 0x63d   : > { %v2871_v9 = vpop.eup %2870  ;;  %2105 = vst.msk [vmem:[%s284_s0] sm:$0xff] %vm463_vm2, %v2101_v37 }
 0x63e   : > { %v2102_v34 = vsel %vm2086_vm11, %v2082_v60, %v2298_v1  ;;  %v2299_v23 = vadd.f32 -1.0, %v2871_v9 }
 0x63f   : > { %v2873_v54 = vpop.eup %2872  ;;  %2106 = vst.msk [vmem:[%s284_s0 + $0x8] sm:$0xff] %vm463_vm2, %v2102_v34 }
 0x640   : > { %v2103_v3 = vsel %vm2087_vm12, %v2083_v4, %v2299_v23  ;;  %v2300_v14 = vadd.f32 -1.0, %v2873_v54 }
 0x641   : > { %2107 = vst.msk [vmem:[%s284_s0 + $0x10] sm:$0xff] %vm463_vm2, %v2103_v3 }
 0x642   : > { %v2104_v38 = vsel %vm2088_vm13, %v2084_v5, %v2300_v14 }
 0x643   : > { %2108 = vst.msk [vmem:[%s284_s0 + $0x18] sm:$0xff] %vm463_vm2, %v2104_v38 }
 0x644   : > { %3003 = shalt.err (!%p3000_p7)
}
 0x645   : > { %s3004_s7 = scalar_lea.hbm %s4141_s27, 512  ;;  %s3008_s10 = scalar_lea.hbm %s4191_s4, 1024 }
 0x646   : > { %p3005_p9 = scmp.ne.s32.totalorder %s4141_s27, %s3004_s7  ;;  %p3009_p11 = scmp.lt.u32.totalorder %s4141_s27, %s4191_s4 }
 0x647   : > { %p3010_p2 = scmp.lt.u32.totalorder %s3008_s10, %s3004_s7  ;;  %p3012_p1 = scmp.lt.u32.totalorder %s3004_s7, %s4141_s27 }
 0x648   : > { %p3006_p0 = pnand %p3005_p9, %p4252_p13 }
 0x649   : > { %p3011_p12 = por %p3010_p2, %p3009_p11 }
 0x64a   : > { %p3007_p8 = pneg %p3006_p0 }
 0x64b   : > { %p3013_p6 = por %p3012_p1, %p3011_p12 }
 0x64d   : > { %p3014_p10 = pnand %p3013_p6, %p3007_p8 }
 0x64f   : > { %3017 = shalt.err (!%p3014_p10)
}
 0x650   : > { %s3101_s30 = smov 128  }
 0x651   : > { %2618 = dma.vmem_to_hbm [thread:$0]  (%p4252_p13), %s4135_s12, 512, %s4141_s27, %s2110_s19, %s3101_s30, %s3101_s30, %s3094_s29  }
 0x652 PF: > { %s2138_s0 = sand.u32 1, %s3056_s15   ;;  %p4253_p4 = scmp.ne.s32.totalorder %s4212_s22, 0 }
 0x653   : > { %p4254_p5 = scmp.ge.s32.totalorder %s3068_s18, 2  ;;  %s2139_s25 = scalar_lea.sflag [#allocation4], %s2138_s0 }
 0x655   : > { %p2635_p3 = pnand %p4254_p5, %p4253_p4 }
 0x657   : > { %3051 = dma.done.wait (!%p2635_p3), %s2139_s25, 512  }
 0x658   : > { %3053 = vsyncadd (!%p2635_p3), %s2139_s25, 4294966784  ;;  %p21_p7 = scmp.ge.s32.totalorder %s3243_s26, 4   ;;  %s4255_s15 = smov %s3060_s16 }
 0x659   : > { %s4256_s16 = smov %s3064_s17  ;;  %s4257_s17 = smov %s3259_s14 }
 0x65a   : > { %s4258_s18 = smov %s3243_s26  ;;  %23 = sbr.rel (!%p21_p7) target bundleno = 11 (0xb), region = 102 }
 0x661   :  { %2144 = vsyncpa [#allocation3], 1 }
 0x662   :  { %2146 = vsyncpa [#allocation3 + $0x1], 1 }
 0x663   :  { %2147 = vsyncpa [#allocation6], 1 }
 0x664   :  { %2149 = vsyncpa [#allocation6 + $0x1], 1 }
 0x665   :  { %2150 = vsyncpa [#allocation9], 1 }
 0x666   :  { %2151 = vsyncpa [#allocation4], 1 }
 0x667   :  { %2153 = vsyncpa [#allocation4 + $0x1], 1 }

</bundles_post_ra>
